<compile_context>
chip_gen: v6e
topology: v6e:2x2x1
jax: 0.10.0
libtpu: 0.0.40
codegen_flags: <defaults>
</compile_context>

<pallas_src>
import math

import jax
import jax.numpy as jnp
from jax import lax
from jax.experimental import pallas as pl
from jax.experimental.pallas import tpu as pltpu

# Small config mirroring the CLIP structure
# (real module: vocab=49408, dim=768, seq=77 -> pad to 80, heads=12, layers=12)
VOCAB = 512
SEQ = 16            # multiple of 8 (real CLIP S=77 should be padded + key-masked)
DIM = 128
HEADS = 4
DHEAD = DIM // HEADS
LAYERS = 2
EPS = 1e-5          # nn.LayerNorm default
NEG_INF = -1e30     # finite mask value (safe even under reduced precision)

STACK_NAMES = ("ln1w", "ln1b", "wqkv", "bqkv", "wo", "bo",
               "ln2w", "ln2b", "w1", "b1", "w2", "b2")


def _layernorm(x, w, b):
    mu = jnp.mean(x, axis=-1, keepdims=True)
    var = jnp.mean((x - mu) ** 2, axis=-1, keepdims=True)
    return (x - mu) * lax.rsqrt(var + EPS) * w + b


def clip_stack_kernel(x_ref,
                      ln1w_ref, ln1b_ref, wqkv_ref, bqkv_ref, wo_ref, bo_ref,
                      ln2w_ref, ln2b_ref, w1_ref, b1_ref, w2_ref, b2_ref,
                      lnfw_ref, lnfb_ref,
                      o_ref):
    l = pl.program_id(1)              # layer index (inner, "arbitrary" grid axis)
    n_layers = pl.num_programs(1)
    BB, S, D = x_ref.shape

    # First layer step for this batch block: seed the resident residual stream
    # (the output VMEM block stays resident across the whole layer axis).
    @pl.when(l == 0)
    def _():
        o_ref[...] = x_ref[...]

    x = o_ref[...].reshape(BB * S, D)                 # (rows, D) f32 residual

    # ---- attention block: LN1 -> causal MHA -> residual ----
    h = _layernorm(x, ln1w_ref[0], ln1b_ref[0])
    qkv = jnp.dot(h.astype(jnp.bfloat16), wqkv_ref[0],
                  preferred_element_type=jnp.float32) + bqkv_ref[0]   # (rows, 3D)

    # fold 1/sqrt(DHEAD) into q instead of scaling the (S, S) score matrix
    q = qkv[:, :D] * (1.0 / math.sqrt(DHEAD))
    k = qkv[:, D:2 * D]
    v = qkv[:, 2 * D:]

    # TODO(synk): the head split/merge keeps explicit transposes; a multi-batch
    # dot_general form would avoid them but is not reliably lowered by Mosaic,
    # and at these sizes the XLU cost is negligible next to the projections.
    def to_heads(t):                                  # (rows, D) -> (BB*H, S, DHEAD)
        return (t.reshape(BB, S, HEADS, DHEAD)
                 .transpose(0, 2, 1, 3)
                 .reshape(BB * HEADS, S, DHEAD))

    qh = to_heads(q).astype(jnp.bfloat16)
    kh = to_heads(k).astype(jnp.bfloat16)
    vh = to_heads(v).astype(jnp.bfloat16)

    s = jnp.einsum("bqd,bkd->bqk", qh, kh,
                   preferred_element_type=jnp.float32)   # (BB*H, S, S) f32
    row = lax.broadcasted_iota(jnp.int32, (S, S), 0)
    col = lax.broadcasted_iota(jnp.int32, (S, S), 1)
    s = jnp.where((col <= row)[None, :, :], s, NEG_INF)  # keep lower triangle
    s = s - jnp.max(s, axis=-1, keepdims=True)            # stable softmax in f32
    p = jnp.exp(s)
    p = p / jnp.sum(p, axis=-1, keepdims=True)

    ao = jnp.einsum("bqk,bkd->bqd", p.astype(jnp.bfloat16), vh,
                    preferred_element_type=jnp.float32)   # (BB*H, S, DHEAD)
    ao = (ao.reshape(BB, HEADS, S, DHEAD)
            .transpose(0, 2, 1, 3)
            .reshape(BB * S, D))                           # merge heads
    attn = jnp.dot(ao.astype(jnp.bfloat16), wo_ref[0],
                   preferred_element_type=jnp.float32) + bo_ref[0]
    x = x + attn                                           # residual

    # ---- MLP block: LN2 -> quick-GELU MLP -> residual ----
    h = _layernorm(x, ln2w_ref[0], ln2b_ref[0])
    h1 = jnp.dot(h.astype(jnp.bfloat16), w1_ref[0],
                 preferred_element_type=jnp.float32) + b1_ref[0]
    h1 = h1 * jax.nn.sigmoid(1.702 * h1)                   # quick-GELU in f32
    h2 = jnp.dot(h1.astype(jnp.bfloat16), w2_ref[0],
                 preferred_element_type=jnp.float32) + b2_ref[0]
    out = x + h2                                           # residual

    @pl.when(l < n_layers - 1)
    def _():
        o_ref[...] = out.reshape(BB, S, D).astype(o_ref.dtype)

    @pl.when(l == n_layers - 1)       # fuse final LayerNorm into the last step
    def _():
        o_ref[...] = (_layernorm(out, lnfw_ref[...], lnfb_ref[...])
                      .reshape(BB, S, D).astype(o_ref.dtype))


def _pick_block_batch(B, S, D, act_budget_bytes):
    """Largest divisor of B whose activation working set fits the budget.
    Prefer the whole batch: the grid is a serial loop per TensorCore, so
    splitting only reduces MXU row fill and adds per-step overhead."""
    def act_bytes(bb):
        rows = bb * S
        resid = 2 * 2 * rows * D * 4            # x + out blocks, double-buffered
        inter = rows * (3 * D + 2 * 4 * D) * 4  # qkv + MLP-hidden f32 intermediates
        scores = 2 * bb * HEADS * S * S * 4     # attention scores / probs
        return resid + inter + scores
    bb = B
    while bb > 1 and act_bytes(bb) > act_budget_bytes:
        bb = next(d for d in range(bb - 1, 0, -1) if B % d == 0)
    return bb


def _run_layers(x, params):
    B, S, D = x.shape
    stacked = [params[n] for n in STACK_NAMES]
    L = stacked[0].shape[0]
    weight_block_bytes = sum(int(a.size // L) * a.dtype.itemsize for a in stacked)

    # VMEM budget: cap at 48 MiB (safe on v7x's 64 MiB physical VMEM), reserve
    # 2x the per-layer weight block (double-buffered layer-axis prefetch).
    VMEM_CAP = 48 * 1024 * 1024
    act_budget = max(VMEM_CAP - 2 * weight_block_bytes - (4 << 20), 4 << 20)
    bb = _pick_block_batch(B, S, D, act_budget)

    in_specs = [pl.BlockSpec((bb, S, D), lambda b, l: (b, 0, 0))]
    for a in stacked:
        nz = (0,) * (a.ndim - 1)
        in_specs.append(
            pl.BlockSpec((1,) + tuple(a.shape[1:]),
                         lambda b, l, nz=nz: (l,) + nz))
    lnf_spec = pl.BlockSpec(params["lnf_w"].shape, lambda b, l: (0, 0))
    in_specs += [lnf_spec, lnf_spec]

    # derive vmem_limit from actual block sizes (+50% margin), floor 16 MiB.
    rows = bb * S
    need = (2 * weight_block_bytes
            + 4 * rows * D * 4
            + 3 * rows * (3 * D + 4 * D) * 4
            + 4 * bb * HEADS * S * S * 4
            + (1 << 20))
    vmem_limit = int(min(max(need * 3 // 2, 16 << 20), VMEM_CAP))

    # advisory cost estimate (matmul flops + exp/sigmoid + DMA bytes)
    flops = L * B * S * D * (24 * D + 4 * S)
    transcendentals = L * (B * HEADS * S * S + B * S * 4 * D)
    bytes_accessed = (2 * int(x.size) * x.dtype.itemsize
                      + sum(int(a.size) * a.dtype.itemsize for a in stacked)
                      + 2 * int(params["lnf_w"].size) * 4)

    return pl.pallas_call(
        clip_stack_kernel,
        out_shape=jax.ShapeDtypeStruct((B, S, D), jnp.float32),
        grid_spec=pltpu.PrefetchScalarGridSpec(
            num_scalar_prefetch=0,
            grid=(B // bb, L),                      # layer axis last (sequential)
            in_specs=in_specs,
            out_specs=pl.BlockSpec((bb, S, D), lambda b, l: (b, 0, 0)),
        ),
        compiler_params=pltpu.CompilerParams(
            dimension_semantics=("parallel", "arbitrary"),
            vmem_limit_bytes=vmem_limit,
        ),
        cost_estimate=pl.CostEstimate(
            flops=int(flops),
            transcendentals=int(transcendentals),
            bytes_accessed=int(bytes_accessed),
        ),
    )(x, *stacked, params["lnf_w"], params["lnf_b"])


def init_params(key):
    keys = jax.random.split(key, 6)
    D, L = DIM, LAYERS

    def bf16_normal(k, shape):
        return (jax.random.normal(k, shape, jnp.float32) * 0.02).astype(jnp.bfloat16)

    # NOTE: linear weights are quantized to bf16 by design (MXU operands); the
    # f32 reference therefore matches only to a loose tolerance.
    return {
        "token_emb": jax.random.normal(keys[0], (VOCAB, D), jnp.float32) * 0.02,
        "pos_emb": jax.random.normal(keys[1], (SEQ, D), jnp.float32) * 0.02,
        "lnf_w": jnp.ones((1, D), jnp.float32),
        "lnf_b": jnp.zeros((1, D), jnp.float32),
        # per-layer weights stacked on a leading (L, ...) axis for the fused kernel
        "ln1w": jnp.ones((L, 1, D), jnp.float32),
        "ln1b": jnp.zeros((L, 1, D), jnp.float32),
        "wqkv": bf16_normal(keys[2], (L, D, 3 * D)),
        "bqkv": jnp.zeros((L, 1, 3 * D), jnp.float32),
        "wo": bf16_normal(keys[3], (L, D, D)),
        "bo": jnp.zeros((L, 1, D), jnp.float32),
        "ln2w": jnp.ones((L, 1, D), jnp.float32),
        "ln2b": jnp.zeros((L, 1, D), jnp.float32),
        "w1": bf16_normal(keys[4], (L, D, 4 * D)),
        "b1": jnp.zeros((L, 1, 4 * D), jnp.float32),
        "w2": bf16_normal(keys[5], (L, 4 * D, D)),
        "b2": jnp.zeros((L, 1, D), jnp.float32),
    }


def clip_forward(tokens, params):
    # TODO(synk): the nn.Embedding token gather is a data-dependent gather; it
    # stays in plain JAX (fusing it via scalar prefetch + pl.Element is possible
    # but low value at these sizes).  Everything downstream — all LAYERS
    # transformer blocks + final LayerNorm — is a single fused Pallas call.
    tokens = tokens.astype(jnp.int32)
    x = jnp.take(params["token_emb"], tokens, axis=0) + params["pos_emb"]  # (B,S,D)
    return _run_layers(x, params)


def clip_reference(tokens, params):
    """Pure-JAX f32 reference following the PyTorch module's op order."""
    tokens = tokens.astype(jnp.int32)
    x = jnp.take(params["token_emb"], tokens, axis=0) + params["pos_emb"]
    B, S, D = x.shape
    scale = 1.0 / math.sqrt(DHEAD)
    row = lax.broadcasted_iota(jnp.int32, (S, S), 0)
    col = lax.broadcasted_iota(jnp.int32, (S, S), 1)
    causal = col <= row
    for i in range(params["wqkv"].shape[0]):
        h = _layernorm(x, params["ln1w"][i], params["ln1b"][i])
        qkv = h @ params["wqkv"][i].astype(jnp.float32) + params["bqkv"][i]
        q, k, v = qkv[..., :D], qkv[..., D:2 * D], qkv[..., 2 * D:]
        q = q.reshape(B, S, HEADS, DHEAD).transpose(0, 2, 1, 3)
        k = k.reshape(B, S, HEADS, DHEAD).transpose(0, 2, 1, 3)
        v = v.reshape(B, S, HEADS, DHEAD).transpose(0, 2, 1, 3)
        s = jnp.einsum("bhqd,bhkd->bhqk", q, k)
        s = jnp.where(causal, s, -jnp.inf) * scale     # reference order: mask, then scale
        p = jax.nn.softmax(s, axis=-1)
        ao = jnp.einsum("bhqk,bhkd->bhqd", p, v)
        ao = ao.transpose(0, 2, 1, 3).reshape(B, S, D)
        x = x + (ao @ params["wo"][i].astype(jnp.float32) + params["bo"][i])
        h = _layernorm(x, params["ln2w"][i], params["ln2b"][i])
        h1 = h @ params["w1"][i].astype(jnp.float32) + params["b1"][i]
        h1 = h1 * jax.nn.sigmoid(1.702 * h1)
        x = x + (h1 @ params["w2"][i].astype(jnp.float32) + params["b2"][i])
    return _layernorm(x, params["lnf_w"], params["lnf_b"])


if __name__ == "__main__":
    key = jax.random.PRNGKey(0)
    kp, kt = jax.random.split(key)
    params = init_params(kp)
    B = 4
    tokens = jax.random.randint(kt, (B, SEQ), 0, VOCAB, dtype=jnp.int32)

    out = jax.jit(clip_forward)(tokens, params)
    out = jax.block_until_ready(out)

    assert out.shape == (B, SEQ, DIM)
    assert bool(jnp.all(jnp.isfinite(out)))
    ref = clip_reference(tokens, params)
    assert bool(jnp.allclose(out, ref, atol=2e-1, rtol=2e-1))
    print("KERNEL_OK")
</pallas_src>

<mosaic_0001>
module attributes {stable_mosaic.version = 11 : i64} {
  func.func @clip_stack_kernel(%arg0: i32, %arg1: i32, %arg2: memref<4x16x128xf32, #tpu.memory_space<vmem>>, %arg3: memref<1x1x128xf32, #tpu.memory_space<vmem>>, %arg4: memref<1x1x128xf32, #tpu.memory_space<vmem>>, %arg5: memref<1x128x384xbf16, #tpu.memory_space<vmem>>, %arg6: memref<1x1x384xf32, #tpu.memory_space<vmem>>, %arg7: memref<1x128x128xbf16, #tpu.memory_space<vmem>>, %arg8: memref<1x1x128xf32, #tpu.memory_space<vmem>>, %arg9: memref<1x1x128xf32, #tpu.memory_space<vmem>>, %arg10: memref<1x1x128xf32, #tpu.memory_space<vmem>>, %arg11: memref<1x128x512xbf16, #tpu.memory_space<vmem>>, %arg12: memref<1x1x512xf32, #tpu.memory_space<vmem>>, %arg13: memref<1x512x128xbf16, #tpu.memory_space<vmem>>, %arg14: memref<1x1x128xf32, #tpu.memory_space<vmem>>, %arg15: memref<1x128xf32, #tpu.memory_space<vmem>>, %arg16: memref<1x128xf32, #tpu.memory_space<vmem>>, %arg17: memref<4x16x128xf32, #tpu.memory_space<vmem>>) attributes {dimension_semantics = [#tpu.dimension_semantics<parallel>, #tpu.dimension_semantics<arbitrary>], iteration_bounds = array<i64: 1, 2>, scalar_prefetch = 0 : i64, scratch_operands = 0 : i64, tpu.core_type = #tpu.core_type<tc>, window_params = [{transform_indices = @transform_0, window_bounds = array<i64: 4, 16, 128>}, {transform_indices = @transform_1, window_bounds = array<i64: 1, 1, 128>}, {transform_indices = @transform_2, window_bounds = array<i64: 1, 1, 128>}, {transform_indices = @transform_3, window_bounds = array<i64: 1, 128, 384>}, {transform_indices = @transform_4, window_bounds = array<i64: 1, 1, 384>}, {transform_indices = @transform_5, window_bounds = array<i64: 1, 128, 128>}, {transform_indices = @transform_6, window_bounds = array<i64: 1, 1, 128>}, {transform_indices = @transform_7, window_bounds = array<i64: 1, 1, 128>}, {transform_indices = @transform_8, window_bounds = array<i64: 1, 1, 128>}, {transform_indices = @transform_9, window_bounds = array<i64: 1, 128, 512>}, {transform_indices = @transform_10, window_bounds = array<i64: 1, 1, 512>}, {transform_indices = @transform_11, window_bounds = array<i64: 1, 512, 128>}, {transform_indices = @transform_12, window_bounds = array<i64: 1, 1, 128>}, {pipeline_mode = #tpu.pipeline_mode<synchronous>, transform_indices = @transform_13, window_bounds = array<i64: 1, 128>}, {pipeline_mode = #tpu.pipeline_mode<synchronous>, transform_indices = @transform_14, window_bounds = array<i64: 1, 128>}, {transform_indices = @transform_15, window_bounds = array<i64: 4, 16, 128>}]} {
    %c0_i32 = arith.constant 0 : i32
    %0 = arith.cmpi eq, %arg1, %c0_i32 : i32
    %1 = arith.extui %0 : i1 to i32
    %c0_i32_0 = arith.constant 0 : i32
    %2 = arith.cmpi ne, %1, %c0_i32_0 : i32
    scf.if %2 {
      %c0_63 = arith.constant 0 : index
      %c0_64 = arith.constant 0 : index
      %c0_65 = arith.constant 0 : index
      %145 = vector.load %arg2[%c0_63, %c0_64, %c0_65] : memref<4x16x128xf32, #tpu.memory_space<vmem>>, vector<4x16x128xf32>
      %c0_66 = arith.constant 0 : index
      %c0_67 = arith.constant 0 : index
      %c0_68 = arith.constant 0 : index
      %146 = vector.load %arg17[%c0_66, %c0_67, %c0_68] : memref<4x16x128xf32, #tpu.memory_space<vmem>>, vector<4x16x128xf32>
      tpu.vector_store %arg17[%c0_66, %c0_67, %c0_68], %145 {strides = array<i32>} : memref<4x16x128xf32, #tpu.memory_space<vmem>>, vector<4x16x128xf32>,
    } else {
    }
    %c0 = arith.constant 0 : index
    %c0_1 = arith.constant 0 : index
    %c0_2 = arith.constant 0 : index
    %3 = vector.load %arg17[%c0, %c0_1, %c0_2] : memref<4x16x128xf32, #tpu.memory_space<vmem>>, vector<4x16x128xf32>
    %4 = vector.shape_cast %3 : vector<4x16x128xf32> to vector<64x128xf32>
    %c0_3 = arith.constant 0 : index
    %c0_4 = arith.constant 0 : index
    %c0_5 = arith.constant 0 : index
    %5 = vector.load %arg3[%c0_3, %c0_4, %c0_5] : memref<1x1x128xf32, #tpu.memory_space<vmem>>, vector<1x1x128xf32>
    %6 = vector.shape_cast %5 : vector<1x1x128xf32> to vector<1x128xf32>
    %c0_6 = arith.constant 0 : index
    %c0_7 = arith.constant 0 : index
    %c0_8 = arith.constant 0 : index
    %7 = vector.load %arg4[%c0_6, %c0_7, %c0_8] : memref<1x1x128xf32, #tpu.memory_space<vmem>>, vector<1x1x128xf32>
    %8 = vector.shape_cast %7 : vector<1x1x128xf32> to vector<1x128xf32>
    %cst = arith.constant dense<0.000000e+00> : vector<64xf32>
    %9 = vector.multi_reduction <add>, %4, %cst [1] : vector<64x128xf32> to vector<64xf32>
    %10 = vector.shape_cast %9 : vector<64xf32> to vector<64x1xf32>
    %cst_9 = arith.constant 1.280000e+02 : f32
    %11 = vector.broadcast %cst_9 : f32 to vector<64x1xf32>
    %12 = arith.divf %10, %11 : vector<64x1xf32>
    %13 = vector.broadcast %12 : vector<64x1xf32> to vector<64x128xf32>
    %14 = arith.subf %4, %13 : vector<64x128xf32>
    %15 = arith.mulf %14, %14 : vector<64x128xf32>
    %cst_10 = arith.constant dense<0.000000e+00> : vector<64xf32>
    %16 = vector.multi_reduction <add>, %15, %cst_10 [1] : vector<64x128xf32> to vector<64xf32>
    %17 = vector.shape_cast %16 : vector<64xf32> to vector<64x1xf32>
    %cst_11 = arith.constant 1.280000e+02 : f32
    %18 = vector.broadcast %cst_11 : f32 to vector<64x1xf32>
    %19 = arith.divf %17, %18 : vector<64x1xf32>
    %20 = vector.broadcast %12 : vector<64x1xf32> to vector<64x128xf32>
    %21 = arith.subf %4, %20 : vector<64x128xf32>
    %cst_12 = arith.constant 9.99999974E-6 : f32
    %22 = vector.broadcast %cst_12 : f32 to vector<64x1xf32>
    %23 = arith.addf %19, %22 : vector<64x1xf32>
    %24 = math.rsqrt %23 : vector<64x1xf32>
    %25 = vector.broadcast %24 : vector<64x1xf32> to vector<64x128xf32>
    %26 = arith.mulf %21, %25 : vector<64x128xf32>
    %27 = vector.broadcast %6 : vector<1x128xf32> to vector<64x128xf32>
    %28 = arith.mulf %26, %27 : vector<64x128xf32>
    %29 = vector.broadcast %8 : vector<1x128xf32> to vector<64x128xf32>
    %30 = arith.addf %28, %29 : vector<64x128xf32>
    %31 = arith.truncf %30 : vector<64x128xf32> to vector<64x128xbf16>
    %c0_13 = arith.constant 0 : index
    %c0_14 = arith.constant 0 : index
    %c0_15 = arith.constant 0 : index
    %32 = vector.load %arg5[%c0_13, %c0_14, %c0_15] : memref<1x128x384xbf16, #tpu.memory_space<vmem>>, vector<1x128x384xbf16>
    %33 = vector.shape_cast %32 : vector<1x128x384xbf16> to vector<128x384xbf16>
    %cst_16 = arith.constant dense<0.000000e+00> : vector<64x384xf32>
    %34 = tpu.matmul %31, %33, %cst_16 {dimension_numbers = #tpu.dot_dimension_numbers<[1], [0], [0], [1], [0, 0, 1, 1], [], []>} : vector<64x128xbf16>, vector<128x384xbf16>, vector<64x384xf32> -> vector<64x384xf32>
    %c0_17 = arith.constant 0 : index
    %c0_18 = arith.constant 0 : index
    %c0_19 = arith.constant 0 : index
    %35 = vector.load %arg6[%c0_17, %c0_18, %c0_19] : memref<1x1x384xf32, #tpu.memory_space<vmem>>, vector<1x1x384xf32>
    %36 = vector.shape_cast %35 : vector<1x1x384xf32> to vector<1x384xf32>
    %37 = vector.broadcast %36 : vector<1x384xf32> to vector<64x384xf32>
    %38 = arith.addf %34, %37 : vector<64x384xf32>
    %39 = vector.extract_strided_slice %38 {offsets = [0, 0], sizes = [64, 128], strides = [1, 1]} : vector<64x384xf32> to vector<64x128xf32>
    %cst_20 = arith.constant 0.176776692 : f32
    %40 = vector.broadcast %cst_20 : f32 to vector<64x128xf32>
    %41 = arith.mulf %39, %40 : vector<64x128xf32>
    %42 = vector.extract_strided_slice %38 {offsets = [0, 128], sizes = [64, 128], strides = [1, 1]} : vector<64x384xf32> to vector<64x128xf32>
    %43 = vector.extract_strided_slice %38 {offsets = [0, 256], sizes = [64, 128], strides = [1, 1]} : vector<64x384xf32> to vector<64x128xf32>
    %44 = vector.shape_cast %41 : vector<64x128xf32> to vector<4x16x4x32xf32>
    %45 = tpu.transpose %44, [0, 2, 1, 3] : vector<4x16x4x32xf32> -> vector<4x4x16x32xf32>
    %46 = vector.shape_cast %45 : vector<4x4x16x32xf32> to vector<16x16x32xf32>
    %47 = arith.truncf %46 : vector<16x16x32xf32> to vector<16x16x32xbf16>
    %48 = vector.shape_cast %42 : vector<64x128xf32> to vector<4x16x4x32xf32>
    %49 = tpu.transpose %48, [0, 2, 1, 3] : vector<4x16x4x32xf32> -> vector<4x4x16x32xf32>
    %50 = vector.shape_cast %49 : vector<4x4x16x32xf32> to vector<16x16x32xf32>
    %51 = arith.truncf %50 : vector<16x16x32xf32> to vector<16x16x32xbf16>
    %52 = vector.shape_cast %43 : vector<64x128xf32> to vector<4x16x4x32xf32>
    %53 = tpu.transpose %52, [0, 2, 1, 3] : vector<4x16x4x32xf32> -> vector<4x4x16x32xf32>
    %54 = vector.shape_cast %53 : vector<4x4x16x32xf32> to vector<16x16x32xf32>
    %55 = arith.truncf %54 : vector<16x16x32xf32> to vector<16x16x32xbf16>
    "tpu.trace_start"() <{level = 10 : i32, message = "bqd,bkd->bqk"}> : () -> ()
    %cst_21 = arith.constant dense<0.000000e+00> : vector<16x16x16xf32>
    %56 = tpu.matmul %47, %51, %cst_21 {dimension_numbers = #tpu.dot_dimension_numbers<[2], [2], [1], [1], [0, 0, 0, 1, 1, 1], [0], [0]>} : vector<16x16x32xbf16>, vector<16x16x32xbf16>, vector<16x16x16xf32> -> vector<16x16x16xf32>
    "tpu.trace_stop"() : () -> ()
    %57 = tpu.iota {dimensions = array<i32: 0>} : vector<16x16xi32>
    %58 = tpu.iota {dimensions = array<i32: 1>} : vector<16x16xi32>
    %59 = arith.cmpi sle, %58, %57 : vector<16x16xi32>
    %60 = vector.shape_cast %59 : vector<16x16xi1> to vector<1x16x16xi1>
    %cst_22 = arith.constant -1.000000e+30 : f32
    %61 = vector.shape_cast %60 : vector<1x16x16xi1> to vector<1x16x16xi1>
    %62 = vector.broadcast %61 : vector<1x16x16xi1> to vector<16x16x16xi1>
    %63 = vector.broadcast %cst_22 : f32 to vector<16x16x16xf32>
    %64 = arith.select %62, %56, %63 : vector<16x16x16xi1>, vector<16x16x16xf32>
    %cst_23 = arith.constant dense<0xFF800000> : vector<16x16xf32>
    %65 = vector.multi_reduction <maximumf>, %64, %cst_23 [2] : vector<16x16x16xf32> to vector<16x16xf32>
    %66 = vector.shape_cast %65 : vector<16x16xf32> to vector<16x16x1xf32>
    %67 = vector.broadcast %66 : vector<16x16x1xf32> to vector<16x16x16xf32>
    %68 = arith.subf %64, %67 : vector<16x16x16xf32>
    %69 = math.exp %68 : vector<16x16x16xf32>
    %cst_24 = arith.constant dense<0.000000e+00> : vector<16x16xf32>
    %70 = vector.multi_reduction <add>, %69, %cst_24 [2] : vector<16x16x16xf32> to vector<16x16xf32>
    %71 = vector.shape_cast %70 : vector<16x16xf32> to vector<16x16x1xf32>
    %72 = vector.broadcast %71 : vector<16x16x1xf32> to vector<16x16x16xf32>
    %73 = arith.divf %69, %72 : vector<16x16x16xf32>
    %74 = arith.truncf %73 : vector<16x16x16xf32> to vector<16x16x16xbf16>
    "tpu.trace_start"() <{level = 10 : i32, message = "bqk,bkd->bqd"}> : () -> ()
    %cst_25 = arith.constant dense<0.000000e+00> : vector<16x16x32xf32>
    %75 = tpu.matmul %74, %55, %cst_25 {dimension_numbers = #tpu.dot_dimension_numbers<[2], [1], [1], [2], [0, 0, 0, 1, 1, 2], [0], [0]>} : vector<16x16x16xbf16>, vector<16x16x32xbf16>, vector<16x16x32xf32> -> vector<16x16x32xf32>
    "tpu.trace_stop"() : () -> ()
    %76 = vector.shape_cast %75 : vector<16x16x32xf32> to vector<4x4x16x32xf32>
    %77 = tpu.transpose %76, [0, 2, 1, 3] : vector<4x4x16x32xf32> -> vector<4x16x4x32xf32>
    %78 = vector.shape_cast %77 : vector<4x16x4x32xf32> to vector<64x128xf32>
    %79 = arith.truncf %78 : vector<64x128xf32> to vector<64x128xbf16>
    %c0_26 = arith.constant 0 : index
    %c0_27 = arith.constant 0 : index
    %c0_28 = arith.constant 0 : index
    %80 = vector.load %arg7[%c0_26, %c0_27, %c0_28] : memref<1x128x128xbf16, #tpu.memory_space<vmem>>, vector<1x128x128xbf16>
    %81 = vector.shape_cast %80 : vector<1x128x128xbf16> to vector<128x128xbf16>
    %cst_29 = arith.constant dense<0.000000e+00> : vector<64x128xf32>
    %82 = tpu.matmul %79, %81, %cst_29 {dimension_numbers = #tpu.dot_dimension_numbers<[1], [0], [0], [1], [0, 0, 1, 1], [], []>} : vector<64x128xbf16>, vector<128x128xbf16>, vector<64x128xf32> -> vector<64x128xf32>
    %c0_30 = arith.constant 0 : index
    %c0_31 = arith.constant 0 : index
    %c0_32 = arith.constant 0 : index
    %83 = vector.load %arg8[%c0_30, %c0_31, %c0_32] : memref<1x1x128xf32, #tpu.memory_space<vmem>>, vector<1x1x128xf32>
    %84 = vector.shape_cast %83 : vector<1x1x128xf32> to vector<1x128xf32>
    %85 = vector.broadcast %84 : vector<1x128xf32> to vector<64x128xf32>
    %86 = arith.addf %82, %85 : vector<64x128xf32>
    %87 = arith.addf %4, %86 : vector<64x128xf32>
    %c0_33 = arith.constant 0 : index
    %c0_34 = arith.constant 0 : index
    %c0_35 = arith.constant 0 : index
    %88 = vector.load %arg9[%c0_33, %c0_34, %c0_35] : memref<1x1x128xf32, #tpu.memory_space<vmem>>, vector<1x1x128xf32>
    %89 = vector.shape_cast %88 : vector<1x1x128xf32> to vector<1x128xf32>
    %c0_36 = arith.constant 0 : index
    %c0_37 = arith.constant 0 : index
    %c0_38 = arith.constant 0 : index
    %90 = vector.load %arg10[%c0_36, %c0_37, %c0_38] : memref<1x1x128xf32, #tpu.memory_space<vmem>>, vector<1x1x128xf32>
    %91 = vector.shape_cast %90 : vector<1x1x128xf32> to vector<1x128xf32>
    %cst_39 = arith.constant dense<0.000000e+00> : vector<64xf32>
    %92 = vector.multi_reduction <add>, %87, %cst_39 [1] : vector<64x128xf32> to vector<64xf32>
    %93 = vector.shape_cast %92 : vector<64xf32> to vector<64x1xf32>
    %cst_40 = arith.constant 1.280000e+02 : f32
    %94 = vector.broadcast %cst_40 : f32 to vector<64x1xf32>
    %95 = arith.divf %93, %94 : vector<64x1xf32>
    %96 = vector.broadcast %95 : vector<64x1xf32> to vector<64x128xf32>
    %97 = arith.subf %87, %96 : vector<64x128xf32>
    %98 = arith.mulf %97, %97 : vector<64x128xf32>
    %cst_41 = arith.constant dense<0.000000e+00> : vector<64xf32>
    %99 = vector.multi_reduction <add>, %98, %cst_41 [1] : vector<64x128xf32> to vector<64xf32>
    %100 = vector.shape_cast %99 : vector<64xf32> to vector<64x1xf32>
    %cst_42 = arith.constant 1.280000e+02 : f32
    %101 = vector.broadcast %cst_42 : f32 to vector<64x1xf32>
    %102 = arith.divf %100, %101 : vector<64x1xf32>
    %103 = vector.broadcast %95 : vector<64x1xf32> to vector<64x128xf32>
    %104 = arith.subf %87, %103 : vector<64x128xf32>
    %cst_43 = arith.constant 9.99999974E-6 : f32
    %105 = vector.broadcast %cst_43 : f32 to vector<64x1xf32>
    %106 = arith.addf %102, %105 : vector<64x1xf32>
    %107 = math.rsqrt %106 : vector<64x1xf32>
    %108 = vector.broadcast %107 : vector<64x1xf32> to vector<64x128xf32>
    %109 = arith.mulf %104, %108 : vector<64x128xf32>
    %110 = vector.broadcast %89 : vector<1x128xf32> to vector<64x128xf32>
    %111 = arith.mulf %109, %110 : vector<64x128xf32>
    %112 = vector.broadcast %91 : vector<1x128xf32> to vector<64x128xf32>
    %113 = arith.addf %111, %112 : vector<64x128xf32>
    %114 = arith.truncf %113 : vector<64x128xf32> to vector<64x128xbf16>
    %c0_44 = arith.constant 0 : index
    %c0_45 = arith.constant 0 : index
    %c0_46 = arith.constant 0 : index
    %115 = vector.load %arg11[%c0_44, %c0_45, %c0_46] : memref<1x128x512xbf16, #tpu.memory_space<vmem>>, vector<1x128x512xbf16>
    %116 = vector.shape_cast %115 : vector<1x128x512xbf16> to vector<128x512xbf16>
    %cst_47 = arith.constant dense<0.000000e+00> : vector<64x512xf32>
    %117 = tpu.matmul %114, %116, %cst_47 {dimension_numbers = #tpu.dot_dimension_numbers<[1], [0], [0], [1], [0, 0, 1, 1], [], []>} : vector<64x128xbf16>, vector<128x512xbf16>, vector<64x512xf32> -> vector<64x512xf32>
    %c0_48 = arith.constant 0 : index
    %c0_49 = arith.constant 0 : index
    %c0_50 = arith.constant 0 : index
    %118 = vector.load %arg12[%c0_48, %c0_49, %c0_50] : memref<1x1x512xf32, #tpu.memory_space<vmem>>, vector<1x1x512xf32>
    %119 = vector.shape_cast %118 : vector<1x1x512xf32> to vector<1x512xf32>
    %120 = vector.broadcast %119 : vector<1x512xf32> to vector<64x512xf32>
    %121 = arith.addf %117, %120 : vector<64x512xf32>
    %cst_51 = arith.constant 1.702000e+00 : f32
    %122 = vector.broadcast %cst_51 : f32 to vector<64x512xf32>
    %123 = arith.mulf %122, %121 : vector<64x512xf32>
    %124 = arith.negf %123 : vector<64x512xf32>
    %125 = math.exp %124 : vector<64x512xf32>
    %cst_52 = arith.constant 1.000000e+00 : f32
    %126 = vector.broadcast %cst_52 : f32 to vector<64x512xf32>
    %127 = arith.addf %126, %125 : vector<64x512xf32>
    %128 = arith.divf %126, %127 : vector<64x512xf32>
    %129 = arith.mulf %121, %128 : vector<64x512xf32>
    %130 = arith.truncf %129 : vector<64x512xf32> to vector<64x512xbf16>
    %c0_53 = arith.constant 0 : index
    %c0_54 = arith.constant 0 : index
    %c0_55 = arith.constant 0 : index
    %131 = vector.load %arg13[%c0_53, %c0_54, %c0_55] : memref<1x512x128xbf16, #tpu.memory_space<vmem>>, vector<1x512x128xbf16>
    %132 = vector.shape_cast %131 : vector<1x512x128xbf16> to vector<512x128xbf16>
    %cst_56 = arith.constant dense<0.000000e+00> : vector<64x128xf32>
    %133 = tpu.matmul %130, %132, %cst_56 {dimension_numbers = #tpu.dot_dimension_numbers<[1], [0], [0], [1], [0, 0, 1, 1], [], []>} : vector<64x512xbf16>, vector<512x128xbf16>, vector<64x128xf32> -> vector<64x128xf32>
    %c0_57 = arith.constant 0 : index
    %c0_58 = arith.constant 0 : index
    %c0_59 = arith.constant 0 : index
    %134 = vector.load %arg14[%c0_57, %c0_58, %c0_59] : memref<1x1x128xf32, #tpu.memory_space<vmem>>, vector<1x1x128xf32>
    %135 = vector.shape_cast %134 : vector<1x1x128xf32> to vector<1x128xf32>
    %136 = vector.broadcast %135 : vector<1x128xf32> to vector<64x128xf32>
    %137 = arith.addf %133, %136 : vector<64x128xf32>
    %138 = arith.addf %87, %137 : vector<64x128xf32>
    %c1_i32 = arith.constant 1 : i32
    %139 = arith.cmpi slt, %arg1, %c1_i32 : i32
    %140 = arith.extui %139 : i1 to i32
    %c0_i32_60 = arith.constant 0 : i32
    %141 = arith.cmpi ne, %140, %c0_i32_60 : i32
    scf.if %141 {
      %145 = vector.shape_cast %138 : vector<64x128xf32> to vector<4x16x128xf32>
      %c0_63 = arith.constant 0 : index
      %c0_64 = arith.constant 0 : index
      %c0_65 = arith.constant 0 : index
      %146 = vector.load %arg17[%c0_63, %c0_64, %c0_65] : memref<4x16x128xf32, #tpu.memory_space<vmem>>, vector<4x16x128xf32>
      tpu.vector_store %arg17[%c0_63, %c0_64, %c0_65], %145 {strides = array<i32>} : memref<4x16x128xf32, #tpu.memory_space<vmem>>, vector<4x16x128xf32>,
    } else {
    }
    %c1_i32_61 = arith.constant 1 : i32
    %142 = arith.cmpi eq, %arg1, %c1_i32_61 : i32
    %143 = arith.extui %142 : i1 to i32
    %c0_i32_62 = arith.constant 0 : i32
    %144 = arith.cmpi ne, %143, %c0_i32_62 : i32
    scf.if %144 {
      %c0_63 = arith.constant 0 : index
      %c0_64 = arith.constant 0 : index
      %145 = vector.load %arg15[%c0_63, %c0_64] : memref<1x128xf32, #tpu.memory_space<vmem>>, vector<1x128xf32>
      %c0_65 = arith.constant 0 : index
      %c0_66 = arith.constant 0 : index
      %146 = vector.load %arg16[%c0_65, %c0_66] : memref<1x128xf32, #tpu.memory_space<vmem>>, vector<1x128xf32>
      %cst_67 = arith.constant dense<0.000000e+00> : vector<64xf32>
      %147 = vector.multi_reduction <add>, %138, %cst_67 [1] : vector<64x128xf32> to vector<64xf32>
      %148 = vector.shape_cast %147 : vector<64xf32> to vector<64x1xf32>
      %cst_68 = arith.constant 1.280000e+02 : f32
      %149 = vector.broadcast %cst_68 : f32 to vector<64x1xf32>
      %150 = arith.divf %148, %149 : vector<64x1xf32>
      %151 = vector.broadcast %150 : vector<64x1xf32> to vector<64x128xf32>
      %152 = arith.subf %138, %151 : vector<64x128xf32>
      %153 = arith.mulf %152, %152 : vector<64x128xf32>
      %cst_69 = arith.constant dense<0.000000e+00> : vector<64xf32>
      %154 = vector.multi_reduction <add>, %153, %cst_69 [1] : vector<64x128xf32> to vector<64xf32>
      %155 = vector.shape_cast %154 : vector<64xf32> to vector<64x1xf32>
      %cst_70 = arith.constant 1.280000e+02 : f32
      %156 = vector.broadcast %cst_70 : f32 to vector<64x1xf32>
      %157 = arith.divf %155, %156 : vector<64x1xf32>
      %158 = vector.broadcast %150 : vector<64x1xf32> to vector<64x128xf32>
      %159 = arith.subf %138, %158 : vector<64x128xf32>
      %cst_71 = arith.constant 9.99999974E-6 : f32
      %160 = vector.broadcast %cst_71 : f32 to vector<64x1xf32>
      %161 = arith.addf %157, %160 : vector<64x1xf32>
      %162 = math.rsqrt %161 : vector<64x1xf32>
      %163 = vector.broadcast %162 : vector<64x1xf32> to vector<64x128xf32>
      %164 = arith.mulf %159, %163 : vector<64x128xf32>
      %165 = vector.broadcast %145 : vector<1x128xf32> to vector<64x128xf32>
      %166 = arith.mulf %164, %165 : vector<64x128xf32>
      %167 = vector.broadcast %146 : vector<1x128xf32> to vector<64x128xf32>
      %168 = arith.addf %166, %167 : vector<64x128xf32>
      %169 = vector.shape_cast %168 : vector<64x128xf32> to vector<4x16x128xf32>
      %c0_72 = arith.constant 0 : index
      %c0_73 = arith.constant 0 : index
      %c0_74 = arith.constant 0 : index
      %170 = vector.load %arg17[%c0_72, %c0_73, %c0_74] : memref<4x16x128xf32, #tpu.memory_space<vmem>>, vector<4x16x128xf32>
      tpu.vector_store %arg17[%c0_72, %c0_73, %c0_74], %169 {strides = array<i32>} : memref<4x16x128xf32, #tpu.memory_space<vmem>>, vector<4x16x128xf32>,
    } else {
    }
    return
  }
  func.func @transform_0(%arg0: i32, %arg1: i32) -> (i32, i32, i32) {
    %c0_i32 = arith.constant 0 : i32
    %c0_i32_0 = arith.constant 0 : i32
    %c0_i32_1 = arith.constant 0 : i32
    return %arg0, %c0_i32, %c0_i32_0 : i32, i32, i32
  }
  func.func @transform_1(%arg0: i32, %arg1: i32) -> (i32, i32, i32) {
    %c0_i32 = arith.constant 0 : i32
    %c0_i32_0 = arith.constant 0 : i32
    %c0_i32_1 = arith.constant 0 : i32
    return %arg1, %c0_i32, %c0_i32_0 : i32, i32, i32
  }
  func.func @transform_2(%arg0: i32, %arg1: i32) -> (i32, i32, i32) {
    %c0_i32 = arith.constant 0 : i32
    %c0_i32_0 = arith.constant 0 : i32
    %c0_i32_1 = arith.constant 0 : i32
    return %arg1, %c0_i32, %c0_i32_0 : i32, i32, i32
  }
  func.func @transform_3(%arg0: i32, %arg1: i32) -> (i32, i32, i32) {
    %c0_i32 = arith.constant 0 : i32
    %c0_i32_0 = arith.constant 0 : i32
    %c0_i32_1 = arith.constant 0 : i32
    return %arg1, %c0_i32, %c0_i32_0 : i32, i32, i32
  }
  func.func @transform_4(%arg0: i32, %arg1: i32) -> (i32, i32, i32) {
    %c0_i32 = arith.constant 0 : i32
    %c0_i32_0 = arith.constant 0 : i32
    %c0_i32_1 = arith.constant 0 : i32
    return %arg1, %c0_i32, %c0_i32_0 : i32, i32, i32
  }
  func.func @transform_5(%arg0: i32, %arg1: i32) -> (i32, i32, i32) {
    %c0_i32 = arith.constant 0 : i32
    %c0_i32_0 = arith.constant 0 : i32
    %c0_i32_1 = arith.constant 0 : i32
    return %arg1, %c0_i32, %c0_i32_0 : i32, i32, i32
  }
  func.func @transform_6(%arg0: i32, %arg1: i32) -> (i32, i32, i32) {
    %c0_i32 = arith.constant 0 : i32
    %c0_i32_0 = arith.constant 0 : i32
    %c0_i32_1 = arith.constant 0 : i32
    return %arg1, %c0_i32, %c0_i32_0 : i32, i32, i32
  }
  func.func @transform_7(%arg0: i32, %arg1: i32) -> (i32, i32, i32) {
    %c0_i32 = arith.constant 0 : i32
    %c0_i32_0 = arith.constant 0 : i32
    %c0_i32_1 = arith.constant 0 : i32
    return %arg1, %c0_i32, %c0_i32_0 : i32, i32, i32
  }
  func.func @transform_8(%arg0: i32, %arg1: i32) -> (i32, i32, i32) {
    %c0_i32 = arith.constant 0 : i32
    %c0_i32_0 = arith.constant 0 : i32
    %c0_i32_1 = arith.constant 0 : i32
    return %arg1, %c0_i32, %c0_i32_0 : i32, i32, i32
  }
  func.func @transform_9(%arg0: i32, %arg1: i32) -> (i32, i32, i32) {
    %c0_i32 = arith.constant 0 : i32
    %c0_i32_0 = arith.constant 0 : i32
    %c0_i32_1 = arith.constant 0 : i32
    return %arg1, %c0_i32, %c0_i32_0 : i32, i32, i32
  }
  func.func @transform_10(%arg0: i32, %arg1: i32) -> (i32, i32, i32) {
    %c0_i32 = arith.constant 0 : i32
    %c0_i32_0 = arith.constant 0 : i32
    %c0_i32_1 = arith.constant 0 : i32
    return %arg1, %c0_i32, %c0_i32_0 : i32, i32, i32
  }
  func.func @transform_11(%arg0: i32, %arg1: i32) -> (i32, i32, i32) {
    %c0_i32 = arith.constant 0 : i32
    %c0_i32_0 = arith.constant 0 : i32
    %c0_i32_1 = arith.constant 0 : i32
    return %arg1, %c0_i32, %c0_i32_0 : i32, i32, i32
  }
  func.func @transform_12(%arg0: i32, %arg1: i32) -> (i32, i32, i32) {
    %c0_i32 = arith.constant 0 : i32
    %c0_i32_0 = arith.constant 0 : i32
    %c0_i32_1 = arith.constant 0 : i32
    return %arg1, %c0_i32, %c0_i32_0 : i32, i32, i32
  }
  func.func @transform_13(%arg0: i32, %arg1: i32) -> (i32, i32) {
    %c0_i32 = arith.constant 0 : i32
    %c0_i32_0 = arith.constant 0 : i32
    %c0_i32_1 = arith.constant 0 : i32
    return %c0_i32, %c0_i32_0 : i32, i32
  }
  func.func @transform_14(%arg0: i32, %arg1: i32) -> (i32, i32) {
    %c0_i32 = arith.constant 0 : i32
    %c0_i32_0 = arith.constant 0 : i32
    %c0_i32_1 = arith.constant 0 : i32
    return %c0_i32, %c0_i32_0 : i32, i32
  }
  func.func @transform_15(%arg0: i32, %arg1: i32) -> (i32, i32, i32) {
    %c0_i32 = arith.constant 0 : i32
    %c0_i32_0 = arith.constant 0 : i32
    %c0_i32_1 = arith.constant 0 : i32
    return %arg0, %c0_i32, %c0_i32_0 : i32, i32, i32
  }
}

</mosaic_0001>

<bundles_post_ra>
// kernel: clip_forward.1
= control target key start
LH: loop header
LB: loop body
LE: loop exit
PB: predicated region body
PF: predicated region fallthrough
CT: control target
= control target key end

     0   :  { %s14021_s0 = inlined_call_operand.vmem [shape: f32[4,16,128], index: 0, kind: input, shape index: {}]   ;;  %s14022_s1 = inlined_call_operand.vmem [shape: f32[2,1,128], index: 1, kind: input, shape index: {}]   ;;  %s14023_s2 = inlined_call_operand.vmem [shape: f32[2,1,128], index: 2, kind: input, shape index: {}]   ;;  %s14024_s3 = inlined_call_operand.hbm [shape: bf16[2,128,384], index: 3, kind: input, shape index: {}]   ;;  %s14025_s4 = inlined_call_operand.vmem [shape: f32[2,1,384], index: 4, kind: input, shape index: {}]   ;;  %s14026_s5 = inlined_call_operand.vmem [shape: bf16[2,128,128], index: 5, kind: input, shape index: {}]   ;;  %s14027_s6 = inlined_call_operand.vmem [shape: f32[2,1,128], index: 6, kind: input, shape index: {}]   ;;  %s14028_s7 = inlined_call_operand.vmem [shape: f32[2,1,128], index: 7, kind: input, shape index: {}]   ;;  %s14029_s8 = inlined_call_operand.vmem [shape: f32[2,1,128], index: 8, kind: input, shape index: {}]   ;;  %s14030_s9 = inlined_call_operand.vmem [shape: bf16[2,128,512], index: 9, kind: input, shape index: {}]   ;;  %s14031_s10 = inlined_call_operand.vmem [shape: f32[2,1,512], index: 10, kind: input, shape index: {}]   ;;  %s14032_s11 = inlined_call_operand.hbm [shape: bf16[2,512,128], index: 11, kind: input, shape index: {}]   ;;  %s14033_s12 = inlined_call_operand.vmem [shape: f32[2,1,128], index: 12, kind: input, shape index: {}]   ;;  %s14034_s13 = inlined_call_operand.vmem [shape: f32[1,128], index: 13, kind: input, shape index: {}]   ;;  %s14035_s14 = inlined_call_operand.vmem [shape: f32[1,128], index: 14, kind: input, shape index: {}]   ;;  %s14036_s15 = inlined_call_operand.hbm [shape: f32[4,16,128], index: 15, kind: output, shape index: {}]  }
   0x1   :  { %14074 = sst [smem:[#allocation29_spill]] %s14021_s0 }
   0x2   :  { %14075 = sst [smem:[#allocation30_spill]] %s14024_s3 }
   0x3   :  { %14076 = sst [smem:[#allocation31_spill]] %s14025_s4 }
   0x4   :  { %14077 = sst [smem:[#allocation32_spill]] %s14026_s5 }
   0x5   :  { %14078 = sst [smem:[#allocation33_spill]] %s14030_s9 }
   0x6   :  { %14079 = sst [smem:[#allocation34_spill]] %s14031_s10 }
   0x7   :  { %14080 = sst [smem:[#allocation35_spill]] %s14032_s11 }
   0x8   :  { %14081 = sst [smem:[#allocation36_spill]] %s14033_s12 }
   0x9   :  { %14082 = sst [smem:[#allocation37_spill]] %s14034_s13 }
   0xa   :  { %14083 = sst [smem:[#allocation38_spill]] %s14035_s14 }
   0xb   :  { %14084 = sst [smem:[#allocation39_spill]] %s14036_s15 }
   0xc   :  { %20 = vsyncpa [#allocation3], 0 }
   0xd   :  { %22 = vsyncpa [#allocation3 + $0x1], 0 }
   0xe   :  { %23 = vsyncpa [#allocation6], 0 }
   0xf   :  { %25 = vsyncpa [#allocation6 + $0x1], 0 }
  0x10   :  { %26 = vsyncpa [#allocation4], 0  ;;  %s11002_s18 = smov 0   ;;  %s11004_s19 = smov 0  }
  0x11   :  { %s11006_s20 = smov 0   ;;  %s11008_s21 = smov 0  }
  0x12   :  { %s11010_s22 = smov 0   ;;  %s11012_s23 = smov 0  }
  0x13 LB: > { %14085 = sst [smem:[#allocation11_spill]] %s10891_s20  ;;  %s14037_s24 = sadd.s32 4294967295, %s10903_s23   ;;  %s10903_s23 = sphi %s11012_s23, %s32_s23   ;;  %s10899_s22 = sphi %s11010_s22, %s14173_s22   ;;  %s10895_s21 = sphi %s11008_s21, %s14172_s21   ;;  %s10891_s20 = sphi %s11006_s20, %s14171_s20   ;;  %s10887_s19 = sphi %s11004_s19, %s14175_s19   ;;  %s10883_s18 = sphi %s11002_s18, %s14174_s18  }
  0x14   : > { %14086 = sst [smem:[#allocation12_spill]] %s10899_s22  ;;  %s41_s25 = sadd.s32 1, %s10899_s22 }
  0x15   : > { %p42_p0 = scmp.ge.s32.totalorder %s41_s25, 2  ;;  %s129_s26 = sadd.s32 1, %s10891_s20 }
  0x16   : > { %p136_p1 = scmp.ne.s32.totalorder %s10891_s20, %s10887_s19  ;;  %p137_p2 = scmp.eq.s32.totalorder %s10903_s23, 0 }
  0x17   : > { %s14177_s25 = smov (%p42_p0, %s41_s25), 0  ;;  %p142_p4 = scmp.ne.s32.totalorder %s10887_s19, %s10883_s18 }
  0x18   : > { %14087 = sst [smem:[#allocation13_spill]] %s14177_s25  ;;  %p138_p3 = por %p137_p2, %p136_p1 }
  0x19   : > { %s126_s27 = ssub.s32 %s10899_s22, %s14177_s25  ;;  %p143_p5 = scmp.eq.s32.totalorder %s14037_s24, 0 }
  0x1a   : > { %p127_p6 = scmp.eq.s32.totalorder %s126_s27, 0  ;;  %p10207_p8 = scmp.lt.s32.totalorder %s10903_s23, 2 }
  0x1b   : > { %p11043_p7 = por %p143_p5, %p142_p4  ;;  %s11052_s30 = sand.u32 1, %s10891_s20  }
  0x1c   : > { %s11049_s29 = scalar_select %p127_p6, %s10891_s20, %s129_s26  }
  0x1d   : > { %s10189_s16 = smul.u32 3072, %s10899_s22  ;;  %s14090_s3 = sld [smem:[#allocation30_spill]] }
  0x1e   : > { %14089 = sst [smem:[#allocation14_spill]] %s11049_s29  ;;  %s10188_s17 = smul.u32 192, %s11052_s30 }
  0x1f   : > { %p11059_p9 = pnand %p10207_p8, %p138_p3  ;;  %s497_s26 = scalar_lea.sflag [#allocation3], %s11052_s30 }
  0x20   : > { %s500_s27 = scalar_lea.vmem [#allocation2], %s10188_s17  ;;  %s10905_s14 = smov [#allocation2]  }
  0x21   : > { %s507_s25 = sshll.u32 %s500_s27, 4  ;;  %p10767_p10 = pneg %p11059_p9  ;;  %s508_s25 = int_to_ptr.vmem [resolvable:$true] %s507_s25 }
  0x22   : > { %s10778_s29 = scalar_lea.vmem %s508_s25, 3072  ;;  %s10783_s15 = sshll.u32 %s10905_s14, 4  ;;  %s10784_s15 = int_to_ptr.vmem [resolvable:$false] %s10783_s15 }
  0x23   : > { %s506_s18 = scalar_lea.hbm %s14090_s3, %s10189_s16  ;;  %p10779_p11 = scmp.ne.s32.totalorder %s508_s25, %s10778_s29 }
  0x24   : > { %s10785_s16 = scalar_lea.vmem %s10784_s15, 6144  ;;  %p10786_p0 = scmp.lt.s32.totalorder %s508_s25, %s10784_s15 }
  0x25   : > { %p10781_p12 = pnand %p10779_p11, %p10767_p10  ;;  %p10787_p1 = scmp.lt.s32.totalorder %s10785_s16, %s10778_s29 }
  0x27   : > { %p10782_p13 = pneg %p10781_p12  ;;  %p10788_p2 = por %p10787_p1, %p10786_p0 }
  0x29   : > { %p10789_p3 = pnand %p10788_p2, %p10782_p13 }
  0x2b   : > { %10792 = shalt.err (!%p10789_p3)
}
  0x2c   : > { %s10906_s17 = smov 192   ;;  %s10907_s27 = smov 12  }
  0x2d   : > { %10203 = dma.hbm_to_vmem [thread:$0]  (!%p11059_p9), %s506_s18, 3072, %s508_s25, %s497_s26, %s10906_s17, %s10906_s17, %s10907_s27  }
  0x2e   : > { %p9515_p4 = scmp.ge.s32.totalorder %s10903_s23, 1  ;;  %p590_p5 = scmp.lt.s32.totalorder %s10903_s23, 3 }
  0x2f   : > { %s9512_s14 = sshll.u32 %s11052_s30, 8  ;;  %s9761_s29 = sshll.u32 %s10899_s22, 12 }
  0x30   : > { %p11074_p6 = pnand %p9515_p4, %p590_p5  ;;  %s569_s16 = scalar_lea.vmem [#allocation5], %s9512_s14 }
  0x31   : > { %s576_s3 = sshll.u32 %s569_s16, 4  ;;  %s14093_s11 = sld [smem:[#allocation35_spill]]  ;;  %s577_s3 = int_to_ptr.vmem [resolvable:$true] %s576_s3 }
  0x32   : > { %s566_s12 = scalar_lea.sflag [#allocation6], %s11052_s30  ;;  %s10806_s10 = scalar_lea.vmem %s577_s3, 4096 }
  0x33   : > { %p10807_p8 = scmp.ne.s32.totalorder %s577_s3, %s10806_s10  ;;  %s10908_s25 = smov [#allocation5]  }
  0x34   : > { %s10811_s18 = sshll.u32 %s10908_s25, 4  ;;  %s10812_s18 = int_to_ptr.vmem [resolvable:$false] %s10811_s18 }
  0x35   : > { %p10809_p11 = pnand %p10807_p8, %p10767_p10  ;;  %s10813_s26 = scalar_lea.vmem %s10812_s18, 8192 }
  0x36   : > { %p10814_p13 = scmp.lt.s32.totalorder %s577_s3, %s10812_s18  ;;  %p10815_p0 = scmp.lt.s32.totalorder %s10813_s26, %s10806_s10 }
  0x37   : > { %s575_s0 = scalar_lea.hbm %s14093_s11, %s9761_s29  ;;  %p10810_p12 = pneg %p10809_p11 }
  0x38   : > { %p10816_p1 = por %p10815_p0, %p10814_p13 }
  0x3a   : > { %p10817_p2 = pnand %p10816_p1, %p10810_p12 }
  0x3c   : > { %10820 = shalt.err (!%p10817_p2)
}
  0x3d   : > { %s10909_s17 = smov 64   ;;  %s10910_s13 = smov 4  }
  0x3e   : > { %10206 = dma.hbm_to_vmem [thread:$0]  (!%p11059_p9), %s575_s0, 4096, %s577_s3, %s566_s12, %s10909_s17, %s10909_s17, %s10910_s13  }
  0x3f   : > { %594 = sbr.rel (%p11074_p6) target bundleno = 3159 (0xc57), region = 80 }
  0x44   : > { %s596_s20 = sand.u32 1, %s10887_s19  }
  0x45   : > { %s10190_s30 = smul.u32 192, %s596_s20  ;;  %s597_s27 = scalar_lea.sflag [#allocation3], %s596_s20 }
  0x47   : > { %s11091_s14 = scalar_lea.vmem [#allocation2], %s10190_s30 }
  0x48   : > { %10870 = dma.done.wait (%p11043_p7), %s597_s27, 3072  }
  0x49   : > { %10872 = vsyncadd (%p11043_p7), %s597_s27, 4294964224  ;;  %s9516_s10 = sshll.u32 %s596_s20, 8  ;;  %s606_s29 = scalar_lea.sflag [#allocation6], %s596_s20 }
  0x4a   : > { %s11097_s24 = scalar_lea.vmem [#allocation5], %s9516_s10 }
  0x4b   : > { %10874 = dma.done.wait (%p11043_p7), %s606_s29, 4096  }
  0x4c   : > { %10876 = vsyncadd (%p11043_p7), %s606_s29, 4294963200  ;;  %p705_p9 = scmp.lt.s32.totalorder %s10895_s21, 1  ;;  %s14094_s5 = sld [smem:[#allocation32_spill]] }
  0x4d   : > { %s14095_s4 = sld [smem:[#allocation31_spill]]  ;;  %p9522_p7 = scmp.ne.s32.totalorder %s10895_s21, 0 }
  0x4e   : > { %s11105_s0 = scalar_select %p705_p9, %s10895_s21, 1 }
  0x4f   : > { %s14096_s9 = sld [smem:[#allocation33_spill]] }
  0x50   : > { %s10191_s18 = smul.u32 3, %s11105_s0  ;;  %s9762_s26 = sshll.u32 %s11105_s0, 6 }
  0x51   : > { %s9763_s17 = sshll.u32 %s11105_s0, 8  ;;  %s9521_s30 = sshll.u32 %s11105_s0, 2 }
  0x52   : > { %s11120_s20 = scalar_lea.vmem %s14094_s5, %s9762_s26  ;;  %s14097_s29 = sld [smem:[#allocation34_spill]] }
  0x53   : > { %s11129_s12 = scalar_lea.vmem %s14095_s4, %s10191_s18  ;;  %s14098_s11 = sld [smem:[#allocation36_spill]] }
  0x54   : > { %s14099_s22 = sld [smem:[#allocation29_spill]] (!%p9522_p7) }
  0x55   : > { %s11143_s5 = scalar_lea.vmem %s14096_s9, %s9763_s17  ;;  %746 = sbr.rel (%p9522_p7) target bundleno = 96 (0x60), region = 92 }
  0x58   : > { %s11149_s18 = scalar_lea.vmem %s14097_s29, %s9521_s30 }
  0x59   : > { %s740_s28 = scalar_lea.vmem %s14098_s11, %s11105_s0 }
  0x5a   : > { %s14100_s15 = smov %s14099_s22  ;;  %v747_v0 = vld [vmem:[%s14099_s22] sm:$0xff] }
  0x5b   : > { %v748_v1 = vld [vmem:[%s14100_s15 + $0x8] sm:$0xff]  ;;  %v749_v2 = vld [vmem:[%s14100_s15 + $0x10] sm:$0xff]  ;;  %755 = vst [vmem:[#allocation7] sm:$0xff] %v747_v0  ;;  %v750_v3 = vld [vmem:[%s14100_s15 + $0x18] sm:$0xff] }
  0x5c   : > { %756 = vst [vmem:[#allocation7 + $0x8] sm:$0xff] %v748_v1  ;;  %757 = vst [vmem:[#allocation7 + $0x10] sm:$0xff] %v749_v2  ;;  %v751_v4 = vld [vmem:[%s14100_s15 + $0x20] sm:$0xff]  ;;  %v752_v5 = vld [vmem:[%s14100_s15 + $0x28] sm:$0xff] }
  0x5d   : > { %758 = vst [vmem:[#allocation7 + $0x18] sm:$0xff] %v750_v3  ;;  %759 = vst [vmem:[#allocation7 + $0x20] sm:$0xff] %v751_v4  ;;  %v753_v6 = vld [vmem:[%s14100_s15 + $0x30] sm:$0xff]  ;;  %v754_v7 = vld [vmem:[%s14100_s15 + $0x38] sm:$0xff] }
  0x5e   : > { %760 = vst [vmem:[#allocation7 + $0x28] sm:$0xff] %v752_v5  ;;  %761 = vst [vmem:[#allocation7 + $0x30] sm:$0xff] %v753_v6 }
  0x5f   : > { %762 = vst [vmem:[#allocation7 + $0x38] sm:$0xff] %v754_v7 }
  0x60 PF: > { %v10333_v16 = vld [vmem:[%s11091_s14 + $0xac] ss:$12 sps:$4 sm:$0xff]   ;;  %v10335_v17 = vld [vmem:[%s11091_s14 + $0xa8] ss:$12 sps:$4 sm:$0xff]   ;;  %v10338_v50 = vld [vmem:[%s11091_s14 + $0xb0] ss:$12 sps:$4 sm:$0xff]   ;;  %s14101_s26 = scalar_lea.vmem %s14022_s1, %s11105_s0  ;;  %s14102_s4 = scalar_lea.vmem %s14023_s2, %s11105_s0 }
  0x61   : > { %1071 = vmatprep.subr.bf16.mxu0 %v10333_v16  ;;  %v10336_v49 = vld [vmem:[%s11091_s14 + $0x94] ss:$12 sps:$4 sm:$0xff]   ;;  %v10339_v51 = vld [vmem:[%s11091_s14 + $0x90] ss:$12 sps:$4 sm:$0xff]   ;;  %9932 = vmatprep.subr.bf16.mxu1 %v10338_v50  ;;  %v10342_v54 = vld [vmem:[%s11091_s14 + $0x98] ss:$12 sps:$4 sm:$0xff]   ;;  %s14157_s22 = scalar_lea.vmem %s14027_s6, %s11105_s0  ;;  %s14158_s9 = scalar_lea.vmem %s14028_s7, %s11105_s0 }
  0x62   : > { %v763_v8 = vld [vmem:[#allocation7] sm:$0xff]  ;;  %1072 = vmatpush1.bf16.msra.mxu0 %v10335_v17  ;;  %9933 = vmatpush3.bf16.msra.mxu1 %v10338_v50  ;;  %v10340_v53 = vld [vmem:[%s11091_s14 + $0x7c] ss:$12 sps:$4 sm:$0xff]   ;;  %v10348_v59 = vld [vmem:[%s11091_s14 + $0x4c] ss:$12 sps:$4 sm:$0xff]   ;;  %v14045_v6 = vmov 0   ;;  %s14159_s25 = scalar_lea.vmem %s14029_s8, %s11105_s0 }
  0x63   : > { %v765_v9 = vld [vmem:[#allocation7 + $0x10] sm:$0xff]  ;;  %773 = vadd.xlane.f32.xlu0 %v763_v8  ;;  %v764_v10 = vld [vmem:[#allocation7 + $0x8] sm:$0xff]  ;;  %1073 = vmatprep.subr.bf16.mxu0 %v10336_v49  ;;  %v10343_v55 = vld [vmem:[%s11091_s14 + $0x78] ss:$12 sps:$4 sm:$0xff]   ;;  %s10913_s10 = smov 96   ;;  %s10914_s30 = smov 32  }
  0x64   : > { %777 = vadd.xlane.f32.xlu1 %v765_v9  ;;  %v766_v11 = vld [vmem:[#allocation7 + $0x18] sm:$0xff]  ;;  %v767_v12 = vld [vmem:[#allocation7 + $0x20] sm:$0xff]  ;;  %9934 = vmatprep.subr.bf16.mxu1 %v10342_v54  ;;  %v10350_v60 = vld [vmem:[%s11091_s14 + $0x68] ss:$12 sps:$4 sm:$0xff]   ;;  %vm10916_vm0 = vmmov 0   ;;  %vm4769_vm1 = vcmask 261120  }
  0x65   : > { %v768_v13 = vld [vmem:[#allocation7 + $0x28] sm:$0xff]  ;;  %v769_v14 = vld [vmem:[#allocation7 + $0x30] sm:$0xff]  ;;  %v10358_v2 = vld [vmem:[%s11091_s14 + $0x38] ss:$12 sps:$4 sm:$0xff]   ;;  %1103 = vmatprep.mubr.bf16.mxu0 %v14045_v6  ;;  %vm5565_vm3 = vcmask 130048   ;;  %vm7830_vm5 = vcmask 523264  }
  0x66   : > { %v770_v15 = vld [vmem:[#allocation7 + $0x38] sm:$0xff]  ;;  %1074 = vmatpush1.bf16.msra.mxu0 %v10339_v51  ;;  %9935 = vmatpush3.bf16.msra.mxu1 %v10342_v54  ;;  %v10344_v56 = vld [vmem:[%s11091_s14 + $0x64] ss:$12 sps:$4 sm:$0xff]   ;;  %v10346_v57 = vld [vmem:[%s11091_s14 + $0x80] ss:$12 sps:$4 sm:$0xff]   ;;  %vm7839_vm6 = vcmask 785408  }
  0x67   : > { %775 = vadd.xlane.f32.xlu0 %v764_v10  ;;  %1075 = vmatprep.subr.bf16.mxu0 %v10340_v53  ;;  %v10347_v58 = vld [vmem:[%s11091_s14 + $0x60] ss:$12 sps:$4 sm:$0xff]   ;;  %v10351_v61 = vld [vmem:[%s11091_s14 + $0x48] ss:$12 sps:$4 sm:$0xff]   ;;  %v10354_v63 = vld [vmem:[%s11091_s14 + $0x50] ss:$12 sps:$4 sm:$0xff]  }
  0x68   : > { %779 = vadd.xlane.f32.xlu1 %v766_v11  ;;  %9936 = vmatprep.subr.bf16.mxu1 %v10346_v57  ;;  %v10352_v62 = vld [vmem:[%s11091_s14 + $0x34] ss:$12 sps:$4 sm:$0xff]   ;;  %v10355_v0 = vld [vmem:[%s11091_s14 + $0x30] ss:$12 sps:$4 sm:$0xff]   ;;  %v10359_v3 = vld [vmem:[%s11091_s14 + $0x18] ss:$12 sps:$4 sm:$0xff]  }
  0x69   : > { %v10356_v1 = vld [vmem:[%s11091_s14 + $0x1c] ss:$12 sps:$4 sm:$0xff]   ;;  %v10360_v4 = vld [vmem:[%s11091_s14 + $0x4] ss:$12 sps:$4 sm:$0xff]   ;;  %v10362_v5 = vld [vmem:[%s11091_s14 + $0x20] ss:$12 sps:$4 sm:$0xff]  }
  0x6a   : > { %1076 = vmatpush1.bf16.msra.mxu0 %v10343_v55  ;;  %9937 = vmatpush3.bf16.msra.mxu1 %v10346_v57  ;;  %v10363_v7 = vld [vmem:[%s11091_s14] ss:$12 sps:$4 sm:$0xff]   ;;  %p9753_p10 = scmp.ge.s32.totalorder %s10895_s21, 1 }
  0x6b   : > { %781 = vadd.xlane.f32.xlu0 %v767_v12  ;;  %1077 = vmatprep.subr.bf16.mxu0 %v10344_v56 }
  0x6c   : > { %783 = vadd.xlane.f32.xlu1 %v768_v13  ;;  %9938 = vmatprep.subr.bf16.mxu1 %v10350_v60 }
  0x6e   : > { %1078 = vmatpush1.bf16.msra.mxu0 %v10347_v58  ;;  %9939 = vmatpush3.bf16.msra.mxu1 %v10350_v60 }
  0x6f   : > { %785 = vadd.xlane.f32.xlu0 %v769_v14  ;;  %1079 = vmatprep.subr.bf16.mxu0 %v10348_v59 }
  0x70   : > { %787 = vadd.xlane.f32.xlu1 %v770_v15  ;;  %9940 = vmatprep.subr.bf16.mxu1 %v10354_v63 }
  0x72   : > { %1080 = vmatpush1.bf16.msra.mxu0 %v10351_v61  ;;  %9941 = vmatpush3.bf16.msra.mxu1 %v10354_v63 }
  0x73   : > { %1081 = vmatprep.subr.bf16.mxu0 %v10352_v62  ;;  %9942 = vmatprep.subr.bf16.mxu1 %v10358_v2 }
  0x76   : > { %1082 = vmatpush1.bf16.msra.mxu0 %v10355_v0  ;;  %9943 = vmatpush3.bf16.msra.mxu1 %v10358_v2 }
  0x77   : > { %1083 = vmatprep.subr.bf16.mxu0 %v10356_v1  ;;  %9944 = vmatprep.subr.bf16.mxu1 %v10362_v5 }
  0x7a   : > { %1084 = vmatpush1.bf16.msra.mxu0 %v10359_v3  ;;  %9945 = vmatpush3.bf16.msra.mxu1 %v10362_v5 }
  0x7b   : > { %1085 = vmatprep.subr.bf16.mxu0 %v10360_v4 }
  0x7e   : > { %1086 = vmatpush1.bf16.msra.mxu0 %v10363_v7 }
  0xec   : > { %v774_v18 = vpop.xlane.xlu0 %773 }
  0xed   : > { %v778_v19 = vpop.xlane.xlu1 %777  ;;  %v790_v20 = vmul.f32 0.0078125, %v774_v18 }
  0xee   : > { %v792_v21 = vmul.f32 0.0078125, %v778_v19 }
  0xef   : > { %v11182_v22 = vsub.f32 %v763_v8, %v790_v20  ;;  %v10364_v8 = vld [vmem:[%s11091_s14 + $0x8] ss:$12 sps:$4 sm:$0xff]  }
  0xf0   : > { %v11184_v23 = vsub.f32 %v765_v9, %v792_v21  ;;  %v776_v24 = vpop.xlane.xlu0 %775  ;;  %9946 = vmatprep.subr.bf16.mxu1 %v10364_v8 }
  0xf1   : > { %v780_v25 = vpop.xlane.xlu1 %779  ;;  %v791_v26 = vmul.f32 0.0078125, %v776_v24  ;;  %v806_v27 = vmul.f32 %v11182_v22, %v11182_v22  ;;  %9947 = vmatpush3.bf16.msra.mxu1 %v10364_v8 }
  0xf2   : > { %v793_v28 = vmul.f32 0.0078125, %v780_v25  ;;  %v808_v29 = vmul.f32 %v11184_v23, %v11184_v23 }
  0xf3   : > { %814 = vadd.xlane.f32.xlu0 %v806_v27  ;;  %v11190_v30 = vsub.f32 %v764_v10, %v791_v26 }
  0xf4   : > { %v11192_v31 = vsub.f32 %v766_v11, %v793_v28  ;;  %v782_v32 = vpop.xlane.xlu0 %781 }
  0xf5   : > { %v784_v33 = vpop.xlane.xlu1 %783  ;;  %v794_v34 = vmul.f32 0.0078125, %v782_v32  ;;  %v807_v35 = vmul.f32 %v11190_v30, %v11190_v30 }
  0xf6   : > { %v795_v36 = vmul.f32 0.0078125, %v784_v33  ;;  %v809_v37 = vmul.f32 %v11192_v31, %v11192_v31 }
  0xf7   : > { %818 = vadd.xlane.f32.xlu0 %v808_v29  ;;  %816 = vadd.xlane.f32.xlu1 %v807_v35  ;;  %v11198_v38 = vsub.f32 %v767_v12, %v794_v34 }
  0xf8   : > { %v11200_v39 = vsub.f32 %v768_v13, %v795_v36  ;;  %v786_v40 = vpop.xlane.xlu0 %785 }
  0xf9   : > { %v788_v41 = vpop.xlane.xlu1 %787  ;;  %v796_v42 = vmul.f32 0.0078125, %v786_v40  ;;  %v810_v43 = vmul.f32 %v11198_v38, %v11198_v38 }
  0xfa   : > { %v797_v44 = vmul.f32 0.0078125, %v788_v41  ;;  %v811_v45 = vmul.f32 %v11200_v39, %v11200_v39  ;;  %v9523_v41 = vld [vmem:[%s14101_s26] ss:$0 sm:$0xff] }
  0xfb   : > { %820 = vadd.xlane.f32.xlu1 %v809_v37  ;;  %822 = vadd.xlane.f32.xlu0 %v810_v43  ;;  %v11206_v46 = vsub.f32 %v769_v14, %v796_v42 }
  0xfc   : > { %v11208_v47 = vsub.f32 %v770_v15, %v797_v44 }
  0xfd   : > { %v812_v48 = vmul.f32 %v11206_v46, %v11206_v46 }
  0xfe   : > { %v813_v52 = vmul.f32 %v11208_v47, %v11208_v47 }
  0xff   : > { %824 = vadd.xlane.f32.xlu1 %v811_v45  ;;  %826 = vadd.xlane.f32.xlu0 %v812_v48  ;;  %v9524_v48 = vld [vmem:[%s14102_s4] ss:$0 sm:$0xff] }
 0x103   : > { %828 = vadd.xlane.f32.xlu1 %v813_v52 }
 0x17c   : > { %v815_v9 = vpop.xlane.xlu0 %814 }
 0x17d   : > { %v830_v10 = vmul.f32 0.0078125, %v815_v9 }
 0x17f   : > { %v838_v11 = vadd.f32 1e-05, %v830_v10 }
 0x180   : > { %v817_v12 = vpop.xlane.xlu1 %816  ;;  %v819_v13 = vpop.xlane.xlu0 %818 }
 0x181   : > { %10453 = vrsqrt.f32 %v838_v11  ;;  %v831_v14 = vmul.f32 0.0078125, %v817_v12  ;;  %v832_v15 = vmul.f32 0.0078125, %v819_v13  ;;  %v11263_v11 = vld [vmem:[%s11129_s12] sm:$0x7]  ;;  %s10912_s12 = smov 64  }
 0x183   : > { %v839_v16 = vadd.f32 1e-05, %v831_v14  ;;  %v840_v17 = vadd.f32 1e-05, %v832_v15 }
 0x184   : > { %v821_v18 = vpop.xlane.xlu1 %820  ;;  %v823_v19 = vpop.xlane.xlu0 %822 }
 0x185   : > { %10455 = vrsqrt.f32 %v839_v16  ;;  %v833_v20 = vmul.f32 0.0078125, %v821_v18  ;;  %v834_v21 = vmul.f32 0.0078125, %v823_v19 }
 0x186   : > { %10457 = vrsqrt.f32 %v840_v17 }
 0x187   : > { %v841_v24 = vadd.f32 1e-05, %v833_v20  ;;  %v842_v25 = vadd.f32 1e-05, %v834_v21 }
 0x188   : > { %v825_v26 = vpop.xlane.xlu1 %824  ;;  %v827_v27 = vpop.xlane.xlu0 %826 }
 0x189   : > { %10459 = vrsqrt.f32 %v841_v24  ;;  %v835_v28 = vmul.f32 0.0078125, %v825_v26  ;;  %v836_v29 = vmul.f32 0.0078125, %v827_v27 }
 0x18a   : > { %10461 = vrsqrt.f32 %v842_v25 }
 0x18b   : > { %v843_v32 = vadd.f32 1e-05, %v835_v28  ;;  %v844_v33 = vadd.f32 1e-05, %v836_v29 }
 0x18c   : > { %v829_v34 = vpop.xlane.xlu1 %828 }
 0x18d   : > { %10463 = vrsqrt.f32 %v843_v32  ;;  %v837_v35 = vmul.f32 0.0078125, %v829_v34 }
 0x18e   : > { %v10454_v36 = vpop.eup %10453  ;;  %10465 = vrsqrt.f32 %v844_v33 }
 0x18f   : > { %v845_v37 = vadd.f32 1e-05, %v837_v35  ;;  %v854_v40 = vmul.f32 %v10454_v36, %v11182_v22  ;;  %v14048_v36 = vmov 0.0  }
 0x190   : > { %9956 = vmatprep.subr.bf16.mxu1 %v14048_v36  ;;  %9968 = vmatprep.subr.bf16.mxu0 %v14048_v36 }
 0x191   : > { %10467 = vrsqrt.f32 %v845_v37  ;;  %v868_v45 = vmul.f32 %v9523_v41, %v854_v40 }
 0x192   : > { %v10456_v42 = vpop.eup %10455 }
 0x193   : > { %v10458_v43 = vpop.eup %10457  ;;  %v855_v44 = vmul.f32 %v10456_v42, %v11190_v30  ;;  %v882_v53 = vadd.f32 %v9524_v48, %v868_v45 }
 0x194   : > { %v856_v49 = vmul.f32 %v10458_v43, %v11184_v23 }
 0x195   : > { %v869_v50 = vmul.f32 %v9523_v41, %v855_v44 }
 0x196   : > { %v10460_v22 = vpop.eup %10459  ;;  %v870_v51 = vmul.f32 %v9523_v41, %v856_v49 }
 0x197   : > { %v10462_v52 = vpop.eup %10461  ;;  %v883_v54 = vadd.f32 %v9524_v48, %v869_v50  ;;  %v857_v55 = vmul.f32 %v10460_v22, %v11192_v31 }
 0x198   : > { %v858_v56 = vmul.f32 %v10462_v52, %v11198_v38  ;;  %v884_v59 = vadd.f32 %v9524_v48, %v870_v51 }
 0x199   : > { %v890_v57 = vpack.c.bf16 %v883_v54, %v882_v53  ;;  %v871_v30 = vmul.f32 %v9523_v41, %v857_v55 }
 0x19a   : > { %v10464_v58 = vpop.eup %10463  ;;  %v872_v62 = vmul.f32 %v9523_v41, %v858_v56 }
 0x19b   : > { %v10466_v60 = vpop.eup %10465  ;;  %1104 = vmatmul.mubr.bf16.vlgmr.msra.gmra.mxu0 %v890_v57  ;;  %9948 = vmatprep.mubr.bf16.mxu1 %v890_v57  ;;  %v885_v61 = vadd.f32 %v9524_v48, %v871_v30  ;;  %v859_v23 = vmul.f32 %v10464_v58, %v11200_v39 }
 0x19c   : > { %1113 = vmatprep.mubr.bf16.mxu0 %v14045_v6  ;;  %v860_v63 = vmul.f32 %v10466_v60, %v11206_v46  ;;  %v886_v38 = vadd.f32 %v9524_v48, %v872_v62  ;;  %v14047_v46 = vlaneseq }
 0x19d   : > { %v891_v0 = vpack.c.bf16 %v885_v61, %v884_v59  ;;  %v873_v1 = vmul.f32 %v9523_v41, %v859_v23 }
 0x19e   : > { %v10468_v31 = vpop.eup %10467  ;;  %v874_v4 = vmul.f32 %v9523_v41, %v860_v63  ;;  %v11259_v10 = vshrl.u32 %v14047_v46, 7 }
 0x19f   : > { %9949 = vmatmul.mubr.bf16.vlgmr.msra.gmra.mxu1 %v891_v0  ;;  %v887_v2 = vadd.f32 %v9524_v48, %v873_v1  ;;  %v861_v3 = vmul.f32 %v10468_v31, %v11208_v47 }
 0x1a0   : > { %v888_v39 = vadd.f32 %v9524_v48, %v874_v4  ;;  %14103 = vst [vmem:[#allocation15_spill] sm:$0xff] %v11259_v10  ;;  %v14042_v47 = vsub.s32 1, %v11259_v10  ;;  %v14044_v12 = vsub.s32 0, %v11259_v10  ;;  %v14043_v23 = vsub.s32 2, %v11259_v10 }
 0x1a1   : > { %v892_v5 = vpack.c.bf16 %v887_v2, %v886_v38  ;;  %v875_v7 = vmul.f32 %v9523_v41, %v861_v3 }
 0x1a2   : > { %v11269_v13 = vrot.slane %v11263_v11, %v14042_v47  ;;  %v11274_v16 = vrot.slane %v11263_v11, %v14044_v12 }
 0x1a3   : > { %1114 = vmatmul.mubr.bf16.gmra.mxu0 %v891_v0  ;;  %9952 = vmatprep.mubr.bf16.mxu1 %v892_v5  ;;  %v889_v8 = vadd.f32 %v9524_v48, %v875_v7  ;;  %v11422_v0 = vrot.slane %v11263_v11, %v14043_v23 }
 0x1a4   : > { %1123 = vmatprep.mubr.bf16.mxu0 %v14045_v6 }
 0x1a5   : > { %v893_v9 = vpack.c.bf16 %v889_v8, %v888_v39  ;;  %v10917_v39 = vmov 1983009808  }
 0x1a6   : > { %v1300_v8 = vunpack.c.l.s4 %v10917_v39 }
 0x1a7   : > { %9953 = vmatmul.mubr.bf16.gmra.mxu1 %v893_v9 }
 0x1a8   : > { %9958 = vmatprep.mubr.msk.bf16.mxu1 %vm10916_vm0, %v14048_v36 }
 0x1ab   : > { %1124 = vmatmul.mubr.bf16.gmra.mxu0 %v892_v5 }
 0x1ac   : > { %1133 = vmatprep.mubr.bf16.mxu0 %v14045_v6 }
 0x1b3   : > { %1134 = vmatmul.mubr.bf16.gmra.mxu0 %v893_v9 }
 0x1b4   : > { %9970 = vmatprep.mubr.msk.bf16.mxu0 %vm10916_vm0, %v14048_v36 }
 0x25b   : > { %v1105_v14 = vpop.f32.mrf.mxu0 }
 0x25c   : > { %v1106_v20 = vadd.f32 %v1105_v14, %v11274_v16 }
 0x25d   : > { %v1107_v15 = vpop.f32.mrf.mxu0 }
 0x25e   : > { %v11277_v17 = vadd.f32 %v1107_v15, %v11269_v13  ;;  %v11291_v24 = vmul.f32 0.17677669, %v1106_v20  ;;  %v1301_v15 = vunpack.c.0.s8 %v1300_v8 }
 0x25f   : > { %v1109_v18 = vpop.f32.mrf.mxu0  ;;  %v9950_v61 = vpop.f32.mrf.mxu1 }
 0x260   : > { %2433 = vrot.lane.b32.xlu1 %v11277_v17, %s10912_s12  ;;  %2409 = vrot.lane.b32.xlu0 %v11277_v17, %s10913_s10  ;;  %v1110_v25 = vadd.f32 %v1109_v18, %v11274_v16  ;;  %v11440_v2 = vadd.f32 %v9950_v61, %v11422_v0 }
 0x261   : > { %v1111_v19 = vpop.f32.mrf.mxu0  ;;  %v1178_v63 = vpop.f32.mrf.mxu1 }
 0x262   : > { %v11285_v21 = vadd.f32 %v1111_v19, %v11269_v13  ;;  %v11302_v27 = vmul.f32 0.17677669, %v1110_v25  ;;  %v11429_v1 = vadd.f32 %v1178_v63, %v11422_v0  ;;  %14104 = vst [vmem:[#allocation16_spill] sm:$0xff] %v11440_v2 }
 0x263   : > { %v1115_v26 = vpop.f32.mrf.mxu0  ;;  %v9951_v31 = vpop.f32.mrf.mxu1 }
 0x264   : > { %2411 = vrot.lane.b32.xlu1 %v11285_v21, %s10913_s10  ;;  %2457 = vrot.lane.b32.xlu0 %v11277_v17, %s10914_s30  ;;  %v1116_v34 = vadd.f32 %v1115_v26, %v11274_v16  ;;  %v11465_v9 = vadd.f32 %v9951_v31, %v11422_v0  ;;  %v11477_v26 = vsub.s32 %v1301_v15, %v11259_v10 }
 0x265   : > { %v1117_v28 = vpop.f32.mrf.mxu0  ;;  %v1181_v38 = vpop.f32.mrf.mxu1 }
 0x266   : > { %v11309_v29 = vadd.f32 %v1117_v28, %v11269_v13  ;;  %v11329_v37 = vmul.f32 0.17677669, %v1116_v34  ;;  %v11443_v3 = vadd.f32 %v1181_v38, %v11422_v0  ;;  %14105 = vst [vmem:[#allocation17_spill] sm:$0xff] %v11465_v9 }
 0x267   : > { %v1119_v32 = vpop.f32.mrf.mxu0  ;;  %v9954_v4 = vpop.f32.mrf.mxu1 }
 0x268   : > { %2435 = vrot.lane.b32.xlu1 %v11285_v21, %s10912_s12  ;;  %1225 = vrot.lane.b32.xlu0 %v11291_v24, %s10913_s10  ;;  %v1120_v40 = vadd.f32 %v1119_v32, %v11274_v16  ;;  %v11468_v11 = vadd.f32 %v9954_v4, %v11422_v0 }
 0x269   : > { %v1121_v33 = vpop.f32.mrf.mxu0  ;;  %v1194_v5 = vpop.f32.mrf.mxu1 }
 0x26a   : > { %v11321_v35 = vadd.f32 %v1121_v33, %v11269_v13  ;;  %v11340_v42 = vmul.f32 0.17677669, %v1120_v40  ;;  %v11454_v7 = vadd.f32 %v1194_v5, %v11422_v0  ;;  %14106 = vst [vmem:[#allocation18_spill] sm:$0xff] %v11468_v11 }
 0x26b   : > { %v1125_v41 = vpop.f32.mrf.mxu0 }
 0x26c   : > { %2459 = vrot.lane.b32.xlu1 %v11285_v21, %s10914_s30  ;;  %1249 = vrot.lane.b32.xlu0 %v11291_v24, %s10912_s12  ;;  %v1126_v49 = vadd.f32 %v1125_v41, %v11274_v16 }
 0x26d   : > { %v1127_v43 = vpop.f32.mrf.mxu0 }
 0x26e   : > { %v11347_v44 = vadd.f32 %v1127_v43, %v11269_v13  ;;  %v11369_v22 = vmul.f32 0.17677669, %v1126_v49 }
 0x26f   : > { %v1129_v45 = vpop.f32.mrf.mxu0 }
 0x270   : > { %1227 = vrot.lane.b32.xlu1 %v11302_v27, %s10913_s10  ;;  %1273 = vrot.lane.b32.xlu0 %v11291_v24, %s10914_s30  ;;  %v1130_v51 = vadd.f32 %v1129_v45, %v11274_v16  ;;  %v11484_v45 = vpop.f32.mrf.mxu1 }
 0x271   : > { %v1131_v48 = vpop.f32.mrf.mxu0 }
 0x272   : > { %v11359_v50 = vadd.f32 %v1131_v48, %v11269_v13  ;;  %v11380_v53 = vmul.f32 0.17677669, %v1130_v51 }
 0x273   : > { %v1135_v52 = vpop.f32.mrf.mxu0 }
 0x274   : > { %1251 = vrot.lane.b32.xlu1 %v11302_v27, %s10912_s12  ;;  %2413 = vrot.lane.b32.xlu0 %v11309_v29, %s10913_s10  ;;  %v1136_v30 = vadd.f32 %v1135_v52, %v11274_v16 }
 0x275   : > { %v1137_v54 = vpop.f32.mrf.mxu0 }
 0x276   : > { %v11387_v55 = vadd.f32 %v1137_v54, %v11269_v13  ;;  %v11405_v59 = vmul.f32 0.17677669, %v1136_v30  ;;  %v1197_v30 = vpop.f32.mrf.mxu1 }
 0x277   : > { %v1139_v56 = vpop.f32.mrf.mxu0  ;;  %v11499_v38 = vadd.f32 %v1197_v30, %v11422_v0 }
 0x278   : > { %1275 = vrot.lane.b32.xlu1 %v11302_v27, %s10914_s30  ;;  %2437 = vrot.lane.b32.xlu0 %v11309_v29, %s10912_s12  ;;  %v1140_v60 = vadd.f32 %v1139_v56, %v11274_v16  ;;  %v10918_v16 = vmov 1934713408  }
 0x279   : > { %v1141_v57 = vpop.f32.mrf.mxu0  ;;  %v1332_v18 = vunpack.c.l.s4 %v10918_v16 }
 0x27a   : > { %v11399_v58 = vadd.f32 %v1141_v57, %v11269_v13  ;;  %v11417_v62 = vmul.f32 0.17677669, %v1140_v60 }
 0x27b   : > { %v1333_v33 = vunpack.c.0.s8 %v1332_v18 }
 0x27c   : > { %2415 = vrot.lane.b32.xlu1 %v11321_v35, %s10913_s10  ;;  %2461 = vrot.lane.b32.xlu0 %v11309_v29, %s10914_s30 }
 0x27d   : > { %v11491_v51 = vsub.s32 %v1333_v33, %v11259_v10 }
 0x280   : > { %2439 = vrot.lane.b32.xlu1 %v11321_v35, %s10912_s12  ;;  %1229 = vrot.lane.b32.xlu0 %v11329_v37, %s10913_s10 }
 0x284   : > { %2463 = vrot.lane.b32.xlu1 %v11321_v35, %s10914_s30  ;;  %1253 = vrot.lane.b32.xlu0 %v11329_v37, %s10912_s12 }
 0x288   : > { %1231 = vrot.lane.b32.xlu1 %v11340_v42, %s10913_s10  ;;  %1277 = vrot.lane.b32.xlu0 %v11329_v37, %s10914_s30 }
 0x28c   : > { %1255 = vrot.lane.b32.xlu1 %v11340_v42, %s10912_s12  ;;  %2417 = vrot.lane.b32.xlu0 %v11347_v44, %s10913_s10 }
 0x290   : > { %1279 = vrot.lane.b32.xlu1 %v11340_v42, %s10914_s30  ;;  %2441 = vrot.lane.b32.xlu0 %v11347_v44, %s10912_s12 }
 0x294   : > { %2419 = vrot.lane.b32.xlu1 %v11359_v50, %s10913_s10  ;;  %2465 = vrot.lane.b32.xlu0 %v11347_v44, %s10914_s30 }
 0x298   : > { %2443 = vrot.lane.b32.xlu1 %v11359_v50, %s10912_s12  ;;  %1233 = vrot.lane.b32.xlu0 %v11369_v22, %s10913_s10 }
 0x29c   : > { %2467 = vrot.lane.b32.xlu1 %v11359_v50, %s10914_s30  ;;  %1257 = vrot.lane.b32.xlu0 %v11369_v22, %s10912_s12 }
 0x2a0   : > { %1235 = vrot.lane.b32.xlu1 %v11380_v53, %s10913_s10  ;;  %1281 = vrot.lane.b32.xlu0 %v11369_v22, %s10914_s30 }
 0x2a4   : > { %1259 = vrot.lane.b32.xlu1 %v11380_v53, %s10912_s12  ;;  %2421 = vrot.lane.b32.xlu0 %v11387_v55, %s10913_s10 }
 0x2a8   : > { %1283 = vrot.lane.b32.xlu1 %v11380_v53, %s10914_s30  ;;  %2445 = vrot.lane.b32.xlu0 %v11387_v55, %s10912_s12 }
 0x2ac   : > { %2423 = vrot.lane.b32.xlu1 %v11399_v58, %s10913_s10  ;;  %2469 = vrot.lane.b32.xlu0 %v11387_v55, %s10914_s30 }
 0x2b0   : > { %2447 = vrot.lane.b32.xlu1 %v11399_v58, %s10912_s12  ;;  %1237 = vrot.lane.b32.xlu0 %v11405_v59, %s10913_s10 }
 0x2b4   : > { %2471 = vrot.lane.b32.xlu1 %v11399_v58, %s10914_s30  ;;  %1261 = vrot.lane.b32.xlu0 %v11405_v59, %s10912_s12 }
 0x2b8   : > { %1239 = vrot.lane.b32.xlu1 %v11417_v62, %s10913_s10  ;;  %1285 = vrot.lane.b32.xlu0 %v11405_v59, %s10914_s30 }
 0x2bc   : > { %1263 = vrot.lane.b32.xlu1 %v11417_v62, %s10912_s12  ;;  %3593 = vrot.lane.b32.xlu0 %v11429_v1, %s10913_s10 }
 0x2c0   : > { %1287 = vrot.lane.b32.xlu1 %v11417_v62, %s10914_s30  ;;  %3641 = vrot.lane.b32.xlu0 %v11429_v1, %s10914_s30 }
 0x2c4   : > { %3595 = vrot.lane.b32.xlu1 %v11443_v3, %s10913_s10  ;;  %3597 = vrot.lane.b32.xlu0 %v11440_v2, %s10913_s10 }
 0x2c8   : > { %3617 = vrot.lane.b32.xlu1 %v11429_v1, %s10912_s12  ;;  %3645 = vrot.lane.b32.xlu0 %v11440_v2, %s10914_s30 }
 0x2cc   : > { %3619 = vrot.lane.b32.xlu1 %v11443_v3, %s10912_s12  ;;  %3601 = vrot.lane.b32.xlu0 %v11454_v7, %s10913_s10 }
 0x2d0   : > { %3643 = vrot.lane.b32.xlu1 %v11443_v3, %s10914_s30  ;;  %3649 = vrot.lane.b32.xlu0 %v11454_v7, %s10914_s30 }
 0x2d2   : > { %v2434_v13 = vpop.permute.xlu1 %2433  ;;  %v2410_v14 = vpop.permute.xlu0 %2409 }
 0x2d3   : > { %v2481_v28 = vcombine.low %v11277_v17, %v2434_v13  ;;  %v2482_v34 = vcombine.high %v11277_v17, %v2434_v13 }
 0x2d4   : > { %3599 = vrot.lane.b32.xlu1 %v11465_v9, %s10913_s10  ;;  %3605 = vrot.lane.b32.xlu0 %v11468_v11, %s10913_s10 }
 0x2d5   : > { %v2489_v48 = vrot.slane %v2481_v28, %v11477_v26  ;;  %v2496_v52 = vrot.slane %v2482_v34, %v11477_v26 }
 0x2d6   : > { %v11474_v19 = vpop.permute.xlu1 %2411  ;;  %v2458_v20 = vpop.permute.xlu0 %2457 }
 0x2d7   : > { %v2497_v25 = vcombine.low %v2410_v14, %v2458_v20  ;;  %v2498_v32 = vcombine.high %v2410_v14, %v2458_v20 }
 0x2d8   : > { %3621 = vrot.lane.b32.xlu1 %v11440_v2, %s10912_s12 }
 0x2d9   : > { %v2505_v40 = vrot.slane %v2497_v25, %v11477_v26  ;;  %v2512_v49 = vrot.slane %v2498_v32, %v11477_v26 }
 0x2da   : > { %v2436_v41 = vpop.permute.xlu1 %2435  ;;  %v1226_v43 = vpop.permute.xlu0 %1225 }
 0x2db   : > { %v2513_v54 = vcombine.low %v2489_v48, %v2505_v40  ;;  %v2514_v17 = vcombine.high %v2489_v48, %v2505_v40  ;;  %v2529_v60 = vcombine.low %v2496_v52, %v2512_v49  ;;  %v2530_v61 = vcombine.high %v2496_v52, %v2512_v49 }
 0x2dc   : > { %3623 = vrot.lane.b32.xlu1 %v11465_v9, %s10912_s12  ;;  %v2549_v18 = vcombine.low %v11285_v21, %v2436_v41  ;;  %v2550_v40 = vcombine.high %v11285_v21, %v2436_v41 }
 0x2dd   : > { %v2521_v4 = vrot.slane %v2513_v54, %v11491_v51  ;;  %v2528_v5 = vrot.slane %v2514_v17, %v11491_v51  ;;  %v2537_v15 = vrot.slane %v2529_v60, %v11491_v51  ;;  %v2544_v16 = vrot.slane %v2530_v61, %v11491_v51 }
 0x2de   : > { %v2460_v56 = vpop.permute.xlu1 %2459  ;;  %v1250_v57 = vpop.permute.xlu0 %1249  ;;  %v2564_v41 = vrot.slane %v2550_v40, %v11477_v26 }
 0x2df   : > { %v1297_v63 = vcombine.low %v11291_v24, %v1250_v57  ;;  %v1298_v31 = vcombine.high %v11291_v24, %v1250_v57  ;;  %v2565_v20 = vcombine.low %v11474_v19, %v2460_v56  ;;  %v3025_v33 = vcombine.low %v2521_v4, %v2528_v5 }
 0x2e0   : > { %3647 = vrot.lane.b32.xlu1 %v11465_v9, %s10914_s30  ;;  %v9565_v34 = vcombine.high %v2521_v4, %v2528_v5  ;;  %v3041_v30 = vcombine.low %v2537_v15, %v2544_v16  ;;  %v9566_v60 = vcombine.high %v2537_v15, %v2544_v16 }
 0x2e1   : > { %v1305_v24 = vrot.slane %v1297_v63, %v11477_v26  ;;  %v1312_v25 = vrot.slane %v1298_v31, %v11477_v26  ;;  %v2573_v61 = vrot.slane %v2565_v20, %v11477_v26  ;;  %v11528_v5 = vrot.slane %v3025_v33, %v11477_v26 }
 0x2e2   : > { %v1228_v39 = vpop.permute.xlu1 %1227  ;;  %v1274_v8 = vpop.permute.xlu0 %1273  ;;  %v11534_v15 = vrot.slane %v9565_v34, %v11477_v26  ;;  %v11543_v33 = vrot.slane %v9566_v60, %v11477_v26 }
 0x2e3   : > { %v1313_v13 = vcombine.low %v1226_v43, %v1274_v8  ;;  %v1314_v14 = vcombine.high %v1226_v43, %v1274_v8  ;;  %v2566_v43 = vcombine.high %v11474_v19, %v2460_v56  ;;  %v2557_v19 = vrot.slane %v2549_v18, %v11477_v26 }
 0x2e4   : > { %3603 = vrot.lane.b32.xlu1 %v11499_v38, %s10913_s10 }
 0x2e5   : > { %v1321_v28 = vrot.slane %v1313_v13, %v11477_v26  ;;  %v1328_v32 = vrot.slane %v1314_v14, %v11477_v26  ;;  %v2580_v8 = vrot.slane %v2566_v43, %v11477_v26 }
 0x2e6   : > { %v1252_v48 = vpop.permute.xlu1 %1251  ;;  %v11515_v49 = vpop.permute.xlu0 %2413 }
 0x2e7   : > { %v1329_v52 = vcombine.low %v1305_v24, %v1321_v28  ;;  %v1330_v54 = vcombine.high %v1305_v24, %v1321_v28  ;;  %v1345_v17 = vcombine.low %v1312_v25, %v1328_v32  ;;  %v1346_v57 = vcombine.high %v1312_v25, %v1328_v32 }
 0x2e8   : > { %3625 = vrot.lane.b32.xlu1 %v11454_v7, %s10912_s12  ;;  %v1365_v56 = vcombine.low %v11302_v27, %v1252_v48  ;;  %v1366_v16 = vcombine.high %v11302_v27, %v1252_v48  ;;  %v11540_v24 = vrot.slane %v3041_v30, %v11477_v26  ;;  %v2581_v25 = vcombine.low %v2557_v19, %v2573_v61 }
 0x2e9   : > { %v1337_v63 = vrot.slane %v1329_v52, %v11491_v51  ;;  %v1344_v21 = vrot.slane %v1330_v54, %v11491_v51  ;;  %v1353_v13 = vrot.slane %v1345_v17, %v11491_v51  ;;  %v1360_v14 = vrot.slane %v1346_v57, %v11491_v51 }
 0x2ea   : > { %v1276_v31 = vpop.permute.xlu1 %1275  ;;  %v11525_v4 = vpop.permute.xlu0 %2437  ;;  %v2582_v28 = vcombine.high %v2557_v19, %v2573_v61  ;;  %v1373_v34 = vrot.slane %v1365_v56, %v11477_v26  ;;  %v11552_v48 = vadd.f32 %v11484_v45, %v11422_v0  ;;  %v2597_v52 = vcombine.low %v2564_v41, %v2580_v8 }
 0x2eb   : > { %v1381_v18 = vcombine.low %v1228_v39, %v1276_v31  ;;  %v1382_v20 = vcombine.high %v1228_v39, %v1276_v31  ;;  %v1841_v32 = vcombine.low %v1337_v63, %v1344_v21  ;;  %v9549_v40 = vcombine.high %v1337_v63, %v1344_v21 }
 0x2ec   : > { %3627 = vrot.lane.b32.xlu1 %v11499_v38, %s10912_s12  ;;  %14107 = vst [vmem:[#allocation19_spill] sm:$0xff] %v11552_v48  ;;  %v1857_v54 = vcombine.low %v1353_v13, %v1360_v14  ;;  %v9550_v17 = vcombine.high %v1353_v13, %v1360_v14  ;;  %v2598_v57 = vcombine.high %v2564_v41, %v2580_v8 }
 0x2ed   : > { %v1389_v43 = vrot.slane %v1381_v18, %v11477_v26  ;;  %v1396_v27 = vrot.slane %v1382_v20, %v11477_v26  ;;  %v1380_v30 = vrot.slane %v1366_v16, %v11477_v26  ;;  %v2589_v21 = vrot.slane %v2581_v25, %v11491_v51 }
 0x2ee   : > { %v11548_v39 = vpop.permute.xlu1 %2415  ;;  %v2462_v63 = vpop.permute.xlu0 %2461  ;;  %v2596_v19 = vrot.slane %v2582_v28, %v11491_v51  ;;  %v3057_v0 = vcombine.low %v11528_v5, %v11534_v15  ;;  %v3073_v45 = vcombine.low %v11540_v24, %v11543_v33  ;;  %v1848_v41 = vrot.slane %v1841_v32, %v11477_v26 }
 0x2ef   : > { %v1397_v60 = vcombine.low %v1373_v34, %v1389_v43  ;;  %v1398_v61 = vcombine.high %v1373_v34, %v1389_v43  ;;  %v1856_v56 = vrot.slane %v9549_v40, %v11477_v26  ;;  %v1413_v31 = vcombine.low %v1380_v30, %v1396_v27 }
 0x2f0   : > { %3651 = vrot.lane.b32.xlu1 %v11499_v38, %s10914_s30  ;;  %v1414_v8 = vcombine.high %v1380_v30, %v1396_v27  ;;  %v1864_v14 = vrot.slane %v1857_v54, %v11477_v26  ;;  %v1872_v16 = vrot.slane %v9550_v17, %v11477_v26  ;;  %v2605_v18 = vrot.slane %v2597_v52, %v11491_v51 }
 0x2f1   : > { %v2612_v20 = vrot.slane %v2598_v57, %v11491_v51  ;;  %v1405_v25 = vrot.slane %v1397_v60, %v11491_v51  ;;  %v1412_v28 = vrot.slane %v1398_v61, %v11491_v51  ;;  %v3093_v32 = vcombine.low %v2589_v21, %v2596_v19 }
 0x2f2   : > { %v11565_v13 = vpop.permute.xlu1 %2439  ;;  %v9567_v40 = vcombine.high %v2589_v21, %v2596_v19  ;;  %v11576_v34 = vrot.slane %v3057_v0, %v11491_v51  ;;  %v11579_v43 = vrot.slane %v3073_v45, %v11491_v51  ;;  %v1873_v27 = vcombine.low %v1848_v41, %v1856_v56  ;;  %v11583_v57 = vpop.permute.xlu0 %1229 }
 0x2f3   : > { %v1874_v54 = vcombine.high %v1848_v41, %v1856_v56  ;;  %v1421_v52 = vrot.slane %v1413_v31, %v11491_v51  ;;  %v1428_v17 = vrot.slane %v1414_v8, %v11491_v51  ;;  %v1889_v60 = vcombine.low %v1864_v14, %v1872_v16 }
 0x2f4   : > { %3607 = vrot.lane.b32.xlu1 %v11552_v48, %s10913_s10  ;;  %v1890_v61 = vcombine.high %v1864_v14, %v1872_v16  ;;  %v2617_v21 = vcombine.low %v11309_v29, %v11525_v4  ;;  %v2633_v19 = vcombine.low %v11515_v49, %v2462_v63  ;;  %v3109_v0 = vcombine.low %v2605_v18, %v2612_v20 }
 0x2f5   : > { %v9568_v45 = vcombine.high %v2605_v18, %v2612_v20  ;;  %v1909_v47 = vcombine.low %v1405_v25, %v1412_v28  ;;  %v9551_v23 = vcombine.high %v1405_v25, %v1412_v28  ;;  %v2618_v41 = vcombine.high %v11309_v29, %v11525_v4 }
 0x2f6   : > { %v11585_v30 = vpop.permute.xlu1 %2463  ;;  %v2634_v56 = vcombine.high %v11515_v49, %v2462_v63  ;;  %v3089_v31 = vcombine.low %v11576_v34, %v11579_v43  ;;  %v3100_v8 = vrot.slane %v3093_v32, %v11477_v26  ;;  %v11599_v14 = vrot.slane %v1873_v27, %v11491_v51 }
 0x2f7   : > { %v11602_v16 = vrot.slane %v1874_v54, %v11491_v51  ;;  %v1925_v18 = vcombine.low %v1421_v52, %v1428_v17  ;;  %v9552_v20 = vcombine.high %v1421_v52, %v1428_v17  ;;  %v11607_v28 = vrot.slane %v1889_v60, %v11491_v51  ;;  %v11620_v52 = vpop.permute.xlu0 %1253 }
 0x2f8   : > { %3629 = vrot.lane.b32.xlu1 %v11468_v11, %s10912_s12  ;;  %v11610_v29 = vrot.slane %v1890_v61, %v11491_v51  ;;  %v11613_v49 = vrot.slane %v2617_v21, %v11477_v26  ;;  %v2641_v4 = vrot.slane %v2633_v19, %v11477_v26  ;;  %v1916_v63 = vrot.slane %v1909_v47, %v11477_v26 }
 0x2f9   : > { %v1924_v32 = vrot.slane %v9551_v23, %v11477_v26  ;;  %v3108_v27 = vrot.slane %v9567_v40, %v11477_v26  ;;  %v3116_v54 = vrot.slane %v3109_v0, %v11477_v26  ;;  %v11625_v17 = vrot.slane %v2634_v56, %v11477_v26 }
 0x2fa   : > { %v11604_v25 = vpop.permute.xlu1 %1231  ;;  %v3124_v60 = vrot.slane %v9568_v45, %v11477_v26  ;;  %v3058_v47 = vcombine.high %v11528_v5, %v11534_v15  ;;  %v3074_v23 = vcombine.high %v11540_v24, %v11543_v33  ;;  %v1932_v40 = vrot.slane %v1925_v18, %v11477_v26 }
 0x2fb   : > { %v1940_v61 = vrot.slane %v9552_v20, %v11477_v26  ;;  %v3125_v21 = vcombine.low %v3100_v8, %v3108_v27  ;;  %v3126_v19 = vcombine.high %v3100_v8, %v3108_v27  ;;  %v1941_v6 = vcombine.low %v1916_v63, %v1924_v32 }
 0x2fc   : > { %3631 = vrot.lane.b32.xlu1 %v11552_v48, %s10912_s12  ;;  %v3141_v0 = vcombine.low %v3116_v54, %v3124_v60  ;;  %v11635_v12 = vrot.slane %v3058_v47, %v11491_v51  ;;  %v11638_v56 = vrot.slane %v3074_v23, %v11491_v51  ;;  %v3142_v45 = vcombine.high %v3116_v54, %v3124_v60  ;;  %v1278_v23 = vpop.permute.xlu0 %1277 }
 0x2fd   : > { %v11641_v5 = vrot.slane %v2618_v41, %v11477_v26  ;;  %v11644_v15 = vrot.slane %v3125_v21, %v11491_v51  ;;  %v11647_v24 = vrot.slane %v3126_v19, %v11491_v51  ;;  %v2685_v8 = vcombine.low %v11321_v35, %v11565_v13 }
 0x2fe   : > { %v11649_v33 = vpop.permute.xlu1 %1255  ;;  %v2686_v18 = vcombine.high %v11321_v35, %v11565_v13  ;;  %v3149_v20 = vrot.slane %v3141_v0, %v11491_v51  ;;  %v11657_v27 = vrot.slane %v3142_v45, %v11491_v51  ;;  %v1957_v41 = vcombine.low %v1932_v40, %v1940_v61 }
 0x2ff   : > { %v2649_v54 = vcombine.low %v11613_v49, %v2641_v4  ;;  %v2650_v60 = vcombine.high %v11613_v49, %v2641_v4  ;;  %v2665_v47 = vcombine.low %v11641_v5, %v11625_v17  ;;  %v3091_v19 = vcombine.low %v11635_v12, %v11638_v56 }
 0x300   : > { %v3157_v21 = vcombine.low %v11644_v15, %v3149_v20  ;;  %v3159_v35 = vcombine.low %v11647_v24, %v11657_v27  ;;  %v1433_v13 = vcombine.low %v11329_v37, %v11620_v52  ;;  %v1942_v0 = vcombine.high %v1916_v63, %v1924_v32 }
 0x301   : > { %v11671_v45 = vrot.slane %v1941_v6, %v11491_v51  ;;  %v1958_v49 = vcombine.high %v1932_v40, %v1940_v61  ;;  %v2666_v4 = vcombine.high %v11641_v5, %v11625_v17  ;;  %v1449_v9 = vcombine.low %v11583_v57, %v1278_v23 }
 0x302   : > { %v3569_v46 = vpack.c.bf16 %v3157_v21, %v3089_v31  ;;  %v3571_v36 = vpack.c.bf16 %v3159_v35, %v3091_v19  ;;  %v1450_v2 = vcombine.high %v11583_v57, %v1278_v23  ;;  %v11678_v48 = vrot.slane %v1957_v41, %v11491_v51  ;;  %v11686_v32 = vpop.permute.xlu1 %1279 }
 0x303   : > { %v2701_v11 = vcombine.low %v11548_v39, %v11585_v30  ;;  %v2702_v6 = vcombine.high %v11548_v39, %v11585_v30  ;;  %v1434_v63 = vcombine.high %v11329_v37, %v11620_v52  ;;  %v1441_v57 = vrot.slane %v1433_v13, %v11477_v26  ;;  %v11701_v37 = vpop.permute.xlu0 %2417 }
 0x304   : > { %v4774_v31 = vsel %vm4769_vm1, %v3569_v46, 0  ;;  %v4868_v17 = vsel %vm4769_vm1, %v3571_v36, 0  ;;  %v1457_v40 = vrot.slane %v1449_v9, %v11477_v26  ;;  %v11693_v61 = vrot.slane %v1942_v0, %v11491_v51 }
 0x305   : > { %v11696_v5 = vrot.slane %v1958_v49, %v11491_v51  ;;  %v11699_v39 = vrot.slane %v2649_v54, %v11491_v51  ;;  %9957 = vmatpush3.bf16.xpose.msra.mxu1 %v4774_v31  ;;  %9969 = vmatpush3.bf16.xpose.msra.mxu0 %v4868_v17  ;;  %v11704_v46 = vrot.slane %v2650_v60, %v11491_v51  ;;  %v14108_v52 = vmov 0.0  }
 0x306   : > { %v1464_v36 = vrot.slane %v1450_v2, %v11477_v26  ;;  %v1465_v30 = vcombine.low %v1441_v57, %v1457_v40  ;;  %v1466_v9 = vcombine.high %v1441_v57, %v1457_v40  ;;  %9962 = vmatprep.subr.bf16.mxu1 %v14108_v52  ;;  %v11709_v41 = vrot.slane %v2665_v47, %v11491_v51  ;;  %v11727_v49 = vpop.permute.xlu1 %2419 }
 0x307   : > { %v2693_v23 = vrot.slane %v2685_v8, %v11477_v26  ;;  %v1905_v54 = vcombine.low %v11599_v14, %v11607_v28  ;;  %v1973_v21 = vcombine.low %v11671_v45, %v11678_v48  ;;  %9980 = vmatprep.subr.bf16.mxu0 %v14108_v52  ;;  %v2709_v60 = vrot.slane %v2701_v11, %v11477_v26 }
 0x308   : > { %v2716_v2 = vrot.slane %v2702_v6, %v11477_v26  ;;  %v1448_v19 = vrot.slane %v1434_v63, %v11477_v26  ;;  %v3090_v47 = vcombine.high %v11576_v34, %v11579_v43  ;;  %v3158_v8 = vcombine.high %v11644_v15, %v3149_v20  ;;  %v2442_v20 = vpop.permute.xlu0 %2441 }
 0x309   : > { %v2385_v35 = vpack.c.bf16 %v1973_v21, %v1905_v54  ;;  %v1907_v13 = vcombine.low %v11602_v16, %v11610_v29  ;;  %v1975_v0 = vcombine.low %v11693_v61, %v11696_v5  ;;  %v1473_v11 = vrot.slane %v1465_v30, %v11491_v51 }
 0x30a   : > { %v1480_v6 = vrot.slane %v1466_v9, %v11491_v51  ;;  %v1481_v31 = vcombine.low %v1448_v19, %v1464_v36  ;;  %v1482_v63 = vcombine.high %v1448_v19, %v1464_v36  ;;  %v2700_v17 = vrot.slane %v2686_v18, %v11477_v26 }
 0x30b   : > { %v3570_v34 = vpack.c.bf16 %v3158_v8, %v3090_v47  ;;  %v2387_v43 = vpack.c.bf16 %v1975_v0, %v1907_v13  ;;  %v1517_v15 = vcombine.low %v11604_v25, %v11686_v32  ;;  %v11735_v57 = vrot.slane %v2666_v4, %v11491_v51  ;;  %v11754_v47 = vpop.permute.xlu1 %2443 }
 0x30c   : > { %v2717_v40 = vcombine.low %v2693_v23, %v2709_v60  ;;  %v2718_v54 = vcombine.high %v2693_v23, %v2709_v60  ;;  %9959 = vmatmul.mubr.msk.bf16.vlgmr.msra.gmra.mxu1 %vm4769_vm1, %v2385_v35  ;;  %v1518_v30 = vcombine.high %v11604_v25, %v11686_v32  ;;  %v2733_v9 = vcombine.low %v2700_v17, %v2716_v2 }
 0x30d   : > { %v2734_v36 = vcombine.high %v2700_v17, %v2716_v2  ;;  %v1501_v18 = vcombine.low %v11340_v42, %v11649_v33  ;;  %v4821_v21 = vsel %vm4769_vm1, %v3570_v34, 0  ;;  %9971 = vmatmul.mubr.msk.bf16.vlgmr.msra.gmra.mxu0 %vm4769_vm1, %v2387_v43  ;;  %9964 = vmatprep.mubr.msk.bf16.mxu1 %vm10916_vm0, %v14108_v52  ;;  %v1489_v4 = vrot.slane %v1481_v31, %v11491_v51  ;;  %v2466_v31 = vpop.permute.xlu0 %2465 }
 0x30e   : > { %v1496_v23 = vrot.slane %v1482_v63, %v11491_v51  ;;  %v1977_v60 = vcombine.low %v1473_v11, %v1480_v6  ;;  %v1502_v25 = vcombine.high %v11340_v42, %v11649_v33  ;;  %9963 = vmatpush3.bf16.xpose.msra.mxu1 %v4821_v21  ;;  %v3161_v32 = vcombine.low %v11699_v39, %v11704_v46 }
 0x30f   : > { %v9553_v2 = vcombine.high %v1473_v11, %v1480_v6  ;;  %v1525_v19 = vrot.slane %v1517_v15, %v11477_v26  ;;  %9974 = vmatprep.subr.bf16.mxu1 %v14108_v52  ;;  %v9569_v35 = vcombine.high %v11699_v39, %v11704_v46  ;;  %v3177_v8 = vcombine.low %v11709_v41, %v11735_v57 }
 0x310   : > { %v2725_v13 = vrot.slane %v2717_v40, %v11491_v51  ;;  %v1532_v42 = vrot.slane %v1518_v30, %v11477_v26  ;;  %9982 = vmatprep.mubr.msk.bf16.mxu0 %vm10916_vm0, %v14108_v52  ;;  %v2732_v33 = vrot.slane %v2718_v54, %v11491_v51  ;;  %v2741_v0 = vrot.slane %v2733_v9, %v11491_v51 }
 0x311   : > { %v2748_v11 = vrot.slane %v2734_v36, %v11491_v51  ;;  %v1509_v6 = vrot.slane %v1501_v18, %v11477_v26  ;;  %v11769_v39 = vrot.slane %v1977_v60, %v11477_v26  ;;  %v1993_v46 = vcombine.low %v1489_v4, %v1496_v23  ;;  %v11780_v60 = vpop.permute.xlu1 %2467 }
 0x312   : > { %v9554_v63 = vcombine.high %v1489_v4, %v1496_v23  ;;  %v1516_v17 = vrot.slane %v1502_v25, %v11477_v26  ;;  %v11773_v34 = vrot.slane %v9553_v2, %v11477_v26  ;;  %v2753_v40 = vcombine.low %v11347_v44, %v2442_v20 }
 0x313   : > { %v1533_v43 = vcombine.low %v1509_v6, %v1525_v19  ;;  %v1534_v15 = vcombine.high %v1509_v6, %v1525_v19  ;;  %v2754_v9 = vcombine.high %v11347_v44, %v2442_v20  ;;  %v2769_v36 = vcombine.low %v11701_v37, %v2466_v31  ;;  %v11798_v6 = vpop.permute.xlu0 %1233 }
 0x314   : > { %v1549_v54 = vcombine.low %v1516_v17, %v1532_v42  ;;  %v1550_v30 = vcombine.high %v1516_v17, %v1532_v42  ;;  %v9570_v18 = vcombine.high %v11709_v41, %v11735_v57  ;;  %v3229_v21 = vcombine.low %v2725_v13, %v2732_v33 }
 0x315   : > { %v9571_v4 = vcombine.high %v2725_v13, %v2732_v33  ;;  %v3245_v23 = vcombine.low %v2741_v0, %v2748_v11  ;;  %v9572_v25 = vcombine.high %v2741_v0, %v2748_v11  ;;  %v11783_v2 = vrot.slane %v1993_v46, %v11477_v26 }
 0x316   : > { %v11786_v19 = vrot.slane %v9554_v63, %v11477_v26  ;;  %v2770_v42 = vcombine.high %v11701_v37, %v2466_v31  ;;  %v2009_v44 = vcombine.low %v11769_v39, %v11773_v34  ;;  %v1541_v20 = vrot.slane %v1533_v43, %v11491_v51 }
 0x317   : > { %v1548_v41 = vrot.slane %v1534_v15, %v11491_v51  ;;  %v2761_v57 = vrot.slane %v2753_v40, %v11477_v26  ;;  %v1557_v13 = vrot.slane %v1549_v54, %v11491_v51  ;;  %v1564_v33 = vrot.slane %v1550_v30, %v11491_v51 }
 0x318   : > { %v2768_v0 = vrot.slane %v2754_v9, %v11477_v26  ;;  %v2777_v11 = vrot.slane %v2769_v36, %v11477_v26  ;;  %v1906_v37 = vcombine.high %v11599_v14, %v11607_v28  ;;  %v1974_v31 = vcombine.high %v11671_v45, %v11678_v48 }
 0x319   : > { %v3092_v46 = vcombine.high %v11635_v12, %v11638_v56  ;;  %v3160_v63 = vcombine.high %v11647_v24, %v11657_v27  ;;  %v2784_v17 = vrot.slane %v2770_v42, %v11477_v26  ;;  %v11810_v43 = vrot.slane %v3161_v32, %v11477_v26  ;;  %v11821_v12 = vpop.permute.xlu1 %1235 }
 0x31a   : > { %v11813_v15 = vrot.slane %v9569_v35, %v11477_v26  ;;  %v11816_v40 = vrot.slane %v3177_v8, %v11477_v26  ;;  %v2045_v14 = vcombine.low %v1541_v20, %v1548_v41  ;;  %v2386_v28 = vpack.c.bf16 %v1974_v31, %v1906_v37 }
 0x31b   : > { %v3572_v48 = vpack.c.bf16 %v3160_v63, %v3092_v46  ;;  %v11819_v45 = vrot.slane %v9570_v18, %v11477_v26  ;;  %v9555_v56 = vcombine.high %v1541_v20, %v1548_v41  ;;  %v11826_v27 = vrot.slane %v3229_v21, %v11477_v26 }
 0x31c   : > { %v3193_v24 = vcombine.low %v11810_v43, %v11813_v15  ;;  %v11829_v32 = vrot.slane %v9571_v4, %v11477_v26  ;;  %9965 = vmatmul.mubr.msk.bf16.vlgmr.msra.gmra.mxu1 %vm4769_vm1, %v2386_v28  ;;  %v11836_v54 = vrot.slane %v3245_v23, %v11477_v26  ;;  %v11839_v30 = vrot.slane %v9572_v25, %v11477_v26  ;;  %v11843_v4 = vpop.permute.xlu0 %1257 }
 0x31d   : > { %v4915_v35 = vsel %vm4769_vm1, %v3572_v48, 0  ;;  %v3209_v8 = vcombine.low %v11816_v40, %v11819_v45  ;;  %v2061_v9 = vcombine.low %v1557_v13, %v1564_v33  ;;  %v9556_v36 = vcombine.high %v1557_v13, %v1564_v33  ;;  %9976 = vmatprep.mubr.msk.bf16.mxu1 %vm10916_vm0, %v14108_v52  ;;  %v11860_v28 = vpop.permute.xlu1 %1259 }
 0x31e   : > { %v2785_v18 = vcombine.low %v2761_v57, %v2777_v11  ;;  %9975 = vmatpush3.bf16.xpose.msra.mxu1 %v4915_v35  ;;  %v3261_v21 = vcombine.low %v11826_v27, %v11829_v32  ;;  %v3201_v42 = vrot.slane %v3193_v24, %v11491_v51  ;;  %v3277_v23 = vcombine.low %v11836_v54, %v11839_v30 }
 0x31f   : > { %v3217_v20 = vrot.slane %v3209_v8, %v11491_v51  ;;  %9986 = vmatprep.subr.bf16.mxu1 %v14108_v52  ;;  %v2786_v25 = vcombine.high %v2761_v57, %v2777_v11  ;;  %v2801_v41 = vcombine.low %v2768_v0, %v2784_v17  ;;  %v2802_v13 = vcombine.high %v2768_v0, %v2784_v17 }
 0x320   : > { %v3269_v33 = vrot.slane %v3261_v21, %v11491_v51  ;;  %v2025_v31 = vcombine.low %v11783_v2, %v11786_v19  ;;  %v3285_v63 = vrot.slane %v3277_v23, %v11491_v51  ;;  %v11863_v48 = vrot.slane %v2045_v14, %v11477_v26  ;;  %v1282_v21 = vpop.permute.xlu0 %1281 }
 0x321   : > { %v11866_v57 = vrot.slane %v9555_v56, %v11477_v26  ;;  %v11869_v0 = vrot.slane %v2061_v9, %v11477_v26  ;;  %v11872_v11 = vrot.slane %v9556_v36, %v11477_v26  ;;  %v3225_v17 = vcombine.low %v3201_v42, %v3217_v20 }
 0x322   : > { %v3293_v24 = vcombine.low %v3269_v33, %v3285_v63  ;;  %v1908_v35 = vcombine.high %v11602_v16, %v11610_v29  ;;  %v1976_v8 = vcombine.high %v11693_v61, %v11696_v5  ;;  %v11879_v14 = vrot.slane %v2785_v18, %v11491_v51 }
 0x323   : > { %v11882_v56 = vrot.slane %v2786_v25, %v11491_v51  ;;  %v11885_v9 = vrot.slane %v2801_v41, %v11491_v51  ;;  %v11888_v36 = vrot.slane %v2802_v13, %v11491_v51  ;;  %v3226_v37 = vcombine.high %v3201_v42, %v3217_v20  ;;  %v11904_v13 = vpop.permute.xlu1 %1283 }
 0x324   : > { %v3573_v23 = vpack.c.bf16 %v3293_v24, %v3225_v17  ;;  %v2388_v46 = vpack.c.bf16 %v1976_v8, %v1908_v35  ;;  %v3294_v16 = vcombine.high %v3269_v33, %v3285_v63  ;;  %v2077_v29 = vcombine.low %v11863_v48, %v11866_v57  ;;  %v11927_v24 = vpop.permute.xlu0 %2421 }
 0x325   : > { %v2093_v5 = vcombine.low %v11869_v0, %v11872_v11  ;;  %v2837_v41 = vcombine.low %v11727_v49, %v11780_v60  ;;  %v2838_v42 = vcombine.high %v11727_v49, %v11780_v60  ;;  %v2821_v63 = vcombine.low %v11359_v50, %v11754_v47 }
 0x326   : > { %v4962_v25 = vsel %vm4769_vm1, %v3573_v23, 0  ;;  %9977 = vmatmul.mubr.msk.bf16.vlgmr.msra.gmra.mxu1 %vm4769_vm1, %v2388_v46  ;;  %v3574_v20 = vpack.c.bf16 %v3294_v16, %v3226_v37  ;;  %v2822_v17 = vcombine.high %v11359_v50, %v11754_v47  ;;  %v1569_v49 = vcombine.low %v11369_v22, %v11843_v4 }
 0x327   : > { %9981 = vmatpush3.bf16.xpose.msra.mxu0 %v4962_v25  ;;  %9988 = vmatprep.mubr.msk.bf16.mxu1 %vm10916_vm0, %v14108_v52  ;;  %v1585_v37 = vcombine.low %v11798_v6, %v1282_v21  ;;  %v2017_v46 = vrot.slane %v2009_v44, %v11491_v51  ;;  %v2033_v35 = vrot.slane %v2025_v31, %v11491_v51 }
 0x328   : > { %v5009_v60 = vsel %vm4769_vm1, %v3574_v20, 0  ;;  %9992 = vmatprep.subr.bf16.mxu0 %v14108_v52  ;;  %v2085_v8 = vrot.slane %v2077_v29, %v11491_v51  ;;  %v2845_v16 = vrot.slane %v2837_v41, %v11477_v26  ;;  %v2852_v44 = vrot.slane %v2838_v42, %v11477_v26 }
 0x329   : > { %9987 = vmatpush3.bf16.xpose.msra.mxu1 %v5009_v60  ;;  %v1586_v25 = vcombine.high %v11798_v6, %v1282_v21  ;;  %v2829_v20 = vrot.slane %v2821_v63, %v11477_v26  ;;  %v2836_v60 = vrot.slane %v2822_v17, %v11477_v26  ;;  %v1570_v31 = vcombine.high %v11369_v22, %v11843_v4  ;;  %v11946_v6 = vpop.permute.xlu1 %2423 }
 0x32a   : > { %9998 = vmatprep.subr.bf16.mxu1 %v14108_v52  ;;  %v2101_v29 = vrot.slane %v2093_v5, %v11491_v51  ;;  %v1577_v47 = vrot.slane %v1569_v49, %v11477_v26  ;;  %v1593_v23 = vrot.slane %v1585_v37, %v11477_v26  ;;  %v2041_v41 = vcombine.low %v2017_v46, %v2033_v35 }
 0x32b   : > { %v3194_v42 = vcombine.high %v11810_v43, %v11813_v15  ;;  %v2042_v50 = vcombine.high %v2017_v46, %v2033_v35  ;;  %v3210_v17 = vcombine.high %v11816_v40, %v11819_v45  ;;  %v2853_v33 = vcombine.low %v2829_v20, %v2845_v16  ;;  %v11953_v43 = vpop.permute.xlu0 %2445 }
 0x32c   : > { %v2109_v21 = vcombine.low %v2085_v8, %v2101_v29  ;;  %v2110_v63 = vcombine.high %v2085_v8, %v2101_v29  ;;  %v2854_v22 = vcombine.high %v2829_v20, %v2845_v16  ;;  %v2869_v4 = vcombine.low %v2836_v60, %v2852_v44 }
 0x32d   : > { %v1600_v5 = vrot.slane %v1586_v25, %v11477_v26  ;;  %v2870_v49 = vcombine.high %v2836_v60, %v2852_v44  ;;  %v3262_v61 = vcombine.high %v11826_v27, %v11829_v32  ;;  %v1584_v15 = vrot.slane %v1570_v31, %v11477_v26 }
 0x32e   : > { %v2389_v18 = vpack.c.bf16 %v2109_v21, %v2041_v41  ;;  %v2390_v37 = vpack.c.bf16 %v2110_v63, %v2042_v50  ;;  %v1601_v46 = vcombine.low %v1577_v47, %v1593_v23  ;;  %v1602_v35 = vcombine.high %v1577_v47, %v1593_v23 }
 0x32f   : > { %v3208_v8 = vrot.slane %v3194_v42, %v11491_v51  ;;  %v3224_v40 = vrot.slane %v3210_v17, %v11491_v51  ;;  %v3276_v45 = vrot.slane %v3262_v61, %v11491_v51  ;;  %v3278_v50 = vcombine.high %v11836_v54, %v11839_v30  ;;  %v2470_v42 = vpop.permute.xlu0 %2469 }
 0x330   : > { %9983 = vmatmul.mubr.msk.bf16.vlgmr.msra.gmra.mxu0 %vm4769_vm1, %v2389_v18  ;;  %9989 = vmatmul.mubr.msk.bf16.vlgmr.msra.gmra.mxu1 %vm4769_vm1, %v2390_v37  ;;  %v11964_v27 = vrot.slane %v2853_v33, %v11491_v51  ;;  %v11967_v32 = vrot.slane %v2854_v22, %v11491_v51  ;;  %v1617_v47 = vcombine.low %v1584_v15, %v1600_v5  ;;  %v11971_v18 = vpop.permute.xlu1 %2447 }
 0x331   : > { %v1618_v23 = vcombine.high %v1584_v15, %v1600_v5  ;;  %9994 = vmatprep.mubr.msk.bf16.mxu0 %vm10916_vm0, %v14108_v52  ;;  %v11974_v16 = vrot.slane %v2869_v4, %v11491_v51  ;;  %v1637_v61 = vcombine.low %v11380_v53, %v11860_v28  ;;  %v3292_v54 = vrot.slane %v3278_v50, %v11491_v51 }
 0x332   : > { %v1653_v30 = vcombine.low %v11821_v12, %v11904_v13  ;;  %10000 = vmatprep.mubr.msk.bf16.mxu1 %vm10916_vm0, %v14108_v52  ;;  %v1609_v33 = vrot.slane %v1601_v46, %v11491_v51  ;;  %v1616_v44 = vrot.slane %v1602_v35, %v11491_v51  ;;  %v1638_v25 = vcombine.high %v11380_v53, %v11860_v28 }
 0x333   : > { %v1654_v20 = vcombine.high %v11821_v12, %v11904_v13  ;;  %v3227_v60 = vcombine.low %v3208_v8, %v3224_v40  ;;  %v3295_v31 = vcombine.low %v3276_v45, %v3292_v54  ;;  %v3228_v29 = vcombine.high %v3208_v8, %v3224_v40 }
 0x334   : > { %v3296_v41 = vcombine.high %v3276_v45, %v3292_v54  ;;  %v11990_v21 = vrot.slane %v2870_v49, %v11491_v51  ;;  %v3365_v63 = vcombine.low %v11964_v27, %v11967_v32  ;;  %v1625_v17 = vrot.slane %v1617_v47, %v11491_v51  ;;  %v12003_v15 = vpop.permute.xlu1 %2471 }
 0x335   : > { %v1632_v22 = vrot.slane %v1618_v23, %v11491_v51  ;;  %v9575_v53 = vcombine.high %v11964_v27, %v11967_v32  ;;  %v3575_v28 = vpack.c.bf16 %v3295_v31, %v3227_v60  ;;  %v1661_v13 = vrot.slane %v1653_v30, %v11477_v26 }
 0x336   : > { %v3576_v12 = vpack.c.bf16 %v3296_v41, %v3228_v29  ;;  %v1645_v4 = vrot.slane %v1637_v61, %v11477_v26  ;;  %v1652_v5 = vrot.slane %v1638_v25, %v11477_v26  ;;  %v1668_v49 = vrot.slane %v1654_v20, %v11477_v26 }
 0x337   : > { %v2905_v37 = vcombine.low %v11927_v24, %v2470_v42  ;;  %v2113_v46 = vcombine.low %v1609_v33, %v1616_v44  ;;  %v9557_v35 = vcombine.high %v1609_v33, %v1616_v44  ;;  %v5056_v8 = vsel %vm4769_vm1, %v3575_v28, 0 }
 0x338   : > { %v5103_v40 = vsel %vm4769_vm1, %v3576_v12, 0  ;;  %v2129_v45 = vcombine.low %v1625_v17, %v1632_v22  ;;  %v9558_v50 = vcombine.high %v1625_v17, %v1632_v22  ;;  %9993 = vmatpush3.bf16.xpose.msra.mxu0 %v5056_v8  ;;  %v2889_v27 = vcombine.low %v11387_v55, %v11953_v43 }
 0x339   : > { %9999 = vmatpush3.bf16.xpose.msra.mxu1 %v5103_v40  ;;  %v1669_v32 = vcombine.low %v1645_v4, %v1661_v13  ;;  %v1670_v47 = vcombine.high %v1645_v4, %v1661_v13  ;;  %v2890_v23 = vcombine.high %v11387_v55, %v11953_v43  ;;  %v2906_v61 = vcombine.high %v11927_v24, %v2470_v42  ;;  %v12042_v42 = vpop.permute.xlu1 %1239 }
 0x33a   : > { %10004 = vmatprep.subr.bf16.mxu0 %v14108_v52  ;;  %v3381_v54 = vcombine.low %v11974_v16, %v11990_v21  ;;  %v9576_v30 = vcombine.high %v11974_v16, %v11990_v21  ;;  %v1685_v33 = vcombine.low %v1652_v5, %v1668_v49  ;;  %v12018_v44 = vrot.slane %v2905_v37, %v11477_v26  ;;  %v12059_v37 = vpop.permute.xlu0 %1237 }
 0x33b   : > { %10010 = vmatprep.subr.bf16.mxu1 %v14108_v52  ;;  %v12022_v25 = vrot.slane %v2113_v46, %v11477_v26  ;;  %v1686_v55 = vcombine.high %v1652_v5, %v1668_v49  ;;  %v14109_v24 = vcombine.high %v11769_v39, %v11773_v34  ;;  %v14110_v20 = vcombine.high %v11783_v2, %v11786_v19 }
 0x33c   : > { %v12033_v60 = vrot.slane %v9557_v35, %v11477_v26  ;;  %v12036_v31 = vrot.slane %v2129_v45, %v11477_v26  ;;  %v12039_v29 = vrot.slane %v9558_v50, %v11477_v26  ;;  %v2897_v41 = vrot.slane %v2889_v27, %v11477_v26 }
 0x33d   : > { %v2024_v43 = vrot.slane %v14109_v24, %v11491_v51  ;;  %v2040_v16 = vrot.slane %v14110_v20, %v11491_v51  ;;  %v1677_v39 = vrot.slane %v1669_v32, %v11491_v51  ;;  %v1684_v34 = vrot.slane %v1670_v47, %v11491_v51 }
 0x33e   : > { %v2904_v2 = vrot.slane %v2890_v23, %v11477_v26  ;;  %v2920_v19 = vrot.slane %v2906_v61, %v11477_v26  ;;  %v1693_v21 = vrot.slane %v1685_v33, %v11491_v51  ;;  %v2921_v17 = vcombine.low %v2897_v41, %v12018_v44  ;;  %v12093_v33 = vpop.permute.xlu1 %1263 }
 0x33f   : > { %v14111_v22 = vcombine.high %v11863_v48, %v11866_v57  ;;  %v14112_v12 = vcombine.high %v11869_v0, %v11872_v11  ;;  %v1700_v4 = vrot.slane %v1686_v55, %v11491_v51  ;;  %v2043_v5 = vcombine.low %v2024_v43, %v2040_v16 }
 0x340   : > { %v2044_v49 = vcombine.high %v2024_v43, %v2040_v16  ;;  %v14113_v46 = vcombine.low %v11879_v14, %v11882_v56  ;;  %v14114_v57 = vcombine.high %v11879_v14, %v11882_v56  ;;  %v14115_v11 = vcombine.low %v11885_v9, %v11888_v36  ;;  %v12114_v16 = vpop.permute.xlu0 %1261 }
 0x341   : > { %v2092_v28 = vrot.slane %v14111_v22, %v11491_v51  ;;  %v2108_v13 = vrot.slane %v14112_v12, %v11491_v51  ;;  %v2181_v45 = vcombine.low %v1677_v39, %v1684_v34  ;;  %v9559_v50 = vcombine.high %v1677_v39, %v1684_v34 }
 0x342   : > { %v12065_v35 = vrot.slane %v14113_v46, %v11477_v26  ;;  %v12071_v0 = vrot.slane %v14114_v57, %v11477_v26  ;;  %v12077_v40 = vrot.slane %v14115_v11, %v11477_v26  ;;  %v14116_v27 = vcombine.high %v11885_v9, %v11888_v36 }
 0x343   : > { %v2111_v8 = vcombine.low %v2092_v28, %v2108_v13  ;;  %v2112_v48 = vcombine.high %v2092_v28, %v2108_v13  ;;  %v12086_v47 = vrot.slane %v3365_v63, %v11477_v26  ;;  %v12091_v61 = vrot.slane %v9575_v53, %v11477_v26 }
 0x344   : > { %v12083_v32 = vrot.slane %v14116_v27, %v11477_v26  ;;  %v3329_v23 = vcombine.low %v12065_v35, %v12071_v0  ;;  %v2922_v55 = vcombine.high %v2897_v41, %v12018_v44  ;;  %v12099_v36 = vrot.slane %v3381_v54, %v11477_v26 }
 0x345   : > { %v2391_v14 = vpack.c.bf16 %v2111_v8, %v2043_v5  ;;  %v2392_v56 = vpack.c.bf16 %v2112_v48, %v2044_v49  ;;  %v12102_v63 = vrot.slane %v9576_v30, %v11477_v26  ;;  %v2197_v24 = vcombine.low %v1693_v21, %v1700_v4  ;;  %v12144_v8 = vpop.permute.xlu1 %1287 }
 0x346   : > { %v3345_v9 = vcombine.low %v12077_v40, %v12083_v32  ;;  %v9560_v43 = vcombine.high %v1693_v21, %v1700_v4  ;;  %v3397_v53 = vcombine.low %v12086_v47, %v12091_v61  ;;  %v2145_v44 = vcombine.low %v12022_v25, %v12033_v60 }
 0x347   : > { %9995 = vmatmul.mubr.msk.bf16.vlgmr.msra.gmra.mxu0 %vm4769_vm1, %v2391_v14  ;;  %10001 = vmatmul.mubr.msk.bf16.vlgmr.msra.gmra.mxu1 %vm4769_vm1, %v2392_v56  ;;  %v3337_v20 = vrot.slane %v3329_v23, %v11491_v51  ;;  %v3413_v30 = vcombine.low %v12099_v36, %v12102_v63  ;;  %v12119_v41 = vrot.slane %v2181_v45, %v11477_v26 }
 0x348   : > { %v3353_v54 = vrot.slane %v3345_v9, %v11491_v51  ;;  %10006 = vmatprep.mubr.msk.bf16.mxu0 %vm10916_vm0, %v14108_v52  ;;  %v12122_v39 = vrot.slane %v9559_v50, %v11477_v26  ;;  %v2937_v34 = vcombine.low %v2904_v2, %v2920_v19  ;;  %v3405_v21 = vrot.slane %v3397_v53, %v11491_v51 }
 0x349   : > { %10012 = vmatprep.mubr.msk.bf16.mxu1 %vm10916_vm0, %v14108_v52  ;;  %v2146_v22 = vcombine.high %v12022_v25, %v12033_v60  ;;  %v2161_v28 = vcombine.low %v12036_v31, %v12039_v29  ;;  %v2938_v12 = vcombine.high %v2904_v2, %v2920_v19  ;;  %v3421_v13 = vrot.slane %v3413_v30, %v11491_v51 }
 0x34a   : > { %v12133_v4 = vrot.slane %v2197_v24, %v11477_v26  ;;  %v12136_v5 = vrot.slane %v9560_v43, %v11477_v26  ;;  %v12139_v49 = vrot.slane %v2921_v17, %v11491_v51  ;;  %v12142_v46 = vrot.slane %v2922_v55, %v11491_v51  ;;  %v1286_v55 = vpop.permute.xlu0 %1285 }
 0x34b   : > { %v3361_v48 = vcombine.low %v3337_v20, %v3353_v54  ;;  %v3429_v57 = vcombine.low %v3405_v21, %v3421_v13  ;;  %v3362_v11 = vcombine.high %v3337_v20, %v3353_v54  ;;  %v3430_v2 = vcombine.high %v3405_v21, %v3421_v13 }
 0x34c   : > { %v2162_v19 = vcombine.high %v12036_v31, %v12039_v29  ;;  %v2213_v45 = vcombine.low %v12119_v41, %v12122_v39  ;;  %v12151_v50 = vrot.slane %v2937_v34, %v11491_v51  ;;  %v2973_v17 = vcombine.low %v11946_v6, %v12003_v15 }
 0x34d   : > { %v12156_v27 = vrot.slane %v2938_v12, %v11491_v51  ;;  %v2957_v14 = vcombine.low %v11399_v58, %v11971_v18  ;;  %v3577_v56 = vpack.c.bf16 %v3429_v57, %v3361_v48  ;;  %v3578_v23 = vpack.c.bf16 %v3430_v2, %v3362_v11 }
 0x34e   : > { %v2214_v9 = vcombine.high %v12119_v41, %v12122_v39  ;;  %v2229_v24 = vcombine.low %v12133_v4, %v12136_v5  ;;  %v2974_v53 = vcombine.high %v11946_v6, %v12003_v15  ;;  %v2230_v20 = vcombine.high %v12133_v4, %v12136_v5  ;;  %v12178_v6 = vpop.permute.xlu1 %3595 }
 0x34f   : > { %v2958_v54 = vcombine.high %v11399_v58, %v11971_v18  ;;  %v5150_v30 = vsel %vm4769_vm1, %v3577_v56, 0  ;;  %v5197_v34 = vsel %vm4769_vm1, %v3578_v23, 0  ;;  %v2981_v12 = vrot.slane %v2973_v17, %v11477_v26 }
 0x350   : > { %10005 = vmatpush3.bf16.xpose.msra.mxu0 %v5150_v30  ;;  %10011 = vmatpush3.bf16.xpose.msra.mxu1 %v5197_v34  ;;  %v1721_v13 = vcombine.low %v12059_v37, %v1286_v55  ;;  %v2965_v18 = vrot.slane %v2957_v14, %v11477_v26  ;;  %v2988_v48 = vrot.slane %v2974_v53, %v11477_v26 }
 0x351   : > { %10016 = vmatprep.subr.bf16.mxu0 %v14108_v52  ;;  %10022 = vmatprep.subr.bf16.mxu1 %v14108_v52  ;;  %v1705_v57 = vcombine.low %v11405_v59, %v12114_v16  ;;  %v2153_v11 = vrot.slane %v2145_v44, %v11491_v51  ;;  %v2169_v2 = vrot.slane %v2161_v28, %v11491_v51 }
 0x352   : > { %v2972_v17 = vrot.slane %v2958_v54, %v11477_v26  ;;  %v1722_v56 = vcombine.high %v12059_v37, %v1286_v55  ;;  %v2221_v23 = vrot.slane %v2213_v45, %v11491_v51  ;;  %v2237_v14 = vrot.slane %v2229_v24, %v11491_v51  ;;  %v12204_v55 = vpop.permute.xlu1 %3617 }
 0x353   : > { %v2989_v30 = vcombine.low %v2965_v18, %v2981_v12  ;;  %v2990_v34 = vcombine.high %v2965_v18, %v2981_v12  ;;  %v1706_v53 = vcombine.high %v11405_v59, %v12114_v16  ;;  %v1729_v58 = vrot.slane %v1721_v13, %v11477_v26 }
 0x354   : > { %v2177_v15 = vcombine.low %v2153_v11, %v2169_v2  ;;  %v2245_v21 = vcombine.low %v2221_v23, %v2237_v14  ;;  %v2178_v44 = vcombine.high %v2153_v11, %v2169_v2  ;;  %v2246_v43 = vcombine.high %v2221_v23, %v2237_v14 }
 0x355   : > { %v3005_v28 = vcombine.low %v2972_v17, %v2988_v48  ;;  %v1713_v54 = vrot.slane %v1705_v57, %v11477_v26  ;;  %v3330_v37 = vcombine.high %v12065_v35, %v12071_v0  ;;  %v3346_v45 = vcombine.high %v12077_v40, %v12083_v32 }
 0x356   : > { %v3006_v24 = vcombine.high %v2972_v17, %v2988_v48  ;;  %v1736_v59 = vrot.slane %v1722_v56, %v11477_v26  ;;  %v2393_v16 = vpack.c.bf16 %v2245_v21, %v2177_v15  ;;  %v2394_v12 = vpack.c.bf16 %v2246_v43, %v2178_v44 }
 0x357   : > { %v1720_v13 = vrot.slane %v1706_v53, %v11477_v26  ;;  %v1737_v18 = vcombine.low %v1713_v54, %v1729_v58  ;;  %v1738_v11 = vcombine.high %v1713_v54, %v1729_v58  ;;  %v1773_v57 = vcombine.low %v11417_v62, %v12093_v33 }
 0x358   : > { %10007 = vmatmul.mubr.msk.bf16.vlgmr.msra.gmra.mxu0 %vm4769_vm1, %v2393_v16  ;;  %10013 = vmatmul.mubr.msk.bf16.vlgmr.msra.gmra.mxu1 %vm4769_vm1, %v2394_v12  ;;  %v3344_v35 = vrot.slane %v3330_v37, %v11491_v51  ;;  %v3360_v0 = vrot.slane %v3346_v45, %v11491_v51  ;;  %v3398_v40 = vcombine.high %v12086_v47, %v12091_v61  ;;  %v12252_v37 = vpop.permute.xlu0 %3593 }
 0x359   : > { %v12217_v32 = vrot.slane %v2989_v30, %v11491_v51  ;;  %v1774_v43 = vcombine.high %v11417_v62, %v12093_v33  ;;  %v3414_v21 = vcombine.high %v12099_v36, %v12102_v63  ;;  %v1789_v15 = vcombine.low %v12042_v42, %v12144_v8  ;;  %10018 = vmatprep.mubr.msk.bf16.mxu0 %vm10916_vm0, %v14108_v52  ;;  %v12242_v63 = vpop.permute.xlu1 %3619 }
 0x35a   : > { %v1753_v58 = vcombine.low %v1720_v13, %v1736_v59  ;;  %v1754_v48 = vcombine.high %v1720_v13, %v1736_v59  ;;  %v3412_v2 = vrot.slane %v3398_v40, %v11491_v51  ;;  %v1790_v47 = vcombine.high %v12042_v42, %v12144_v8  ;;  %10024 = vmatprep.mubr.msk.bf16.mxu1 %vm10916_vm0, %v14108_v52 }
 0x35b   : > { %v12233_v62 = vrot.slane %v2990_v34, %v11491_v51  ;;  %v12236_v61 = vrot.slane %v3005_v28, %v11491_v51  ;;  %v12239_v33 = vrot.slane %v3006_v24, %v11491_v51  ;;  %v3428_v36 = vrot.slane %v3414_v21, %v11491_v51 }
 0x35c   : > { %v1745_v17 = vrot.slane %v1737_v18, %v11491_v51  ;;  %v1752_v42 = vrot.slane %v1738_v11, %v11491_v51  ;;  %v1781_v8 = vrot.slane %v1773_v57, %v11477_v26  ;;  %v3363_v56 = vcombine.low %v3344_v35, %v3360_v0 }
 0x35d   : > { %v3431_v23 = vcombine.low %v3412_v2, %v3428_v36  ;;  %v3364_v14 = vcombine.high %v3344_v35, %v3360_v0  ;;  %v3432_v30 = vcombine.high %v3412_v2, %v3428_v36  ;;  %v1797_v34 = vrot.slane %v1789_v15, %v11477_v26  ;;  %v12272_v4 = vpop.permute.xlu1 %3643  ;;  %v3642_v15 = vpop.permute.xlu0 %3641 }
 0x35e   : > { %v1761_v53 = vrot.slane %v1753_v58, %v11491_v51  ;;  %v1768_v44 = vrot.slane %v1754_v48, %v11491_v51  ;;  %v1788_v28 = vrot.slane %v1774_v43, %v11477_v26  ;;  %v1804_v54 = vrot.slane %v1790_v47, %v11477_v26 }
 0x35f   : > { %v3579_v45 = vpack.c.bf16 %v3431_v23, %v3363_v56  ;;  %v3580_v24 = vpack.c.bf16 %v3432_v30, %v3364_v14  ;;  %v2228_v59 = vrot.slane %v2214_v9, %v11491_v51  ;;  %v2244_v16 = vrot.slane %v2230_v20, %v11491_v51 }
 0x360   : > { %v2249_v12 = vcombine.low %v1745_v17, %v1752_v42  ;;  %v9561_v13 = vcombine.high %v1745_v17, %v1752_v42  ;;  %v2160_v18 = vrot.slane %v2146_v22, %v11491_v51  ;;  %v2176_v11 = vrot.slane %v2162_v19, %v11491_v51 }
 0x361   : > { %v5244_v41 = vsel %vm4769_vm1, %v3579_v45, 0  ;;  %v5291_v39 = vsel %vm4769_vm1, %v3580_v24, 0  ;;  %v1805_v9 = vcombine.low %v1781_v8, %v1797_v34  ;;  %v1806_v57 = vcombine.high %v1781_v8, %v1797_v34  ;;  %v12306_v23 = vpop.permute.xlu1 %3599 }
 0x362   : > { %v2265_v5 = vcombine.low %v1761_v53, %v1768_v44  ;;  %v9562_v20 = vcombine.high %v1761_v53, %v1768_v44  ;;  %10017 = vmatpush3.bf16.xpose.msra.mxu0 %v5244_v41  ;;  %10023 = vmatpush3.bf16.xpose.msra.mxu1 %v5291_v39  ;;  %v1821_v35 = vcombine.low %v1788_v28, %v1804_v54 }
 0x363   : > { %v3501_v25 = vcombine.low %v12217_v32, %v12233_v62  ;;  %v1822_v60 = vcombine.high %v1788_v28, %v1804_v54  ;;  %v2247_v22 = vcombine.low %v2228_v59, %v2244_v16  ;;  %v2248_v31 = vcombine.high %v2228_v59, %v2244_v16  ;;  %10028 = vmatprep.subr.bf16.mxu0 %v14108_v52 }
 0x364   : > { %v9579_v29 = vcombine.high %v12217_v32, %v12233_v62  ;;  %v3517_v19 = vcombine.low %v12236_v61, %v12239_v33  ;;  %v12282_v0 = vrot.slane %v2249_v12, %v11477_v26  ;;  %v12285_v40 = vrot.slane %v9561_v13, %v11477_v26  ;;  %10034 = vmatprep.subr.bf16.mxu1 %v14108_v52 }
 0x365   : > { %v1813_v43 = vrot.slane %v1805_v9, %v11491_v51  ;;  %v1820_v21 = vrot.slane %v1806_v57, %v11491_v51  ;;  %v2179_v58 = vcombine.low %v2160_v18, %v2176_v11  ;;  %v2180_v48 = vcombine.high %v2160_v18, %v2176_v11 }
 0x366   : > { %v9580_v32 = vcombine.high %v12236_v61, %v12239_v33  ;;  %v12293_v2 = vrot.slane %v2265_v5, %v11477_v26  ;;  %v12296_v47 = vrot.slane %v9562_v20, %v11477_v26  ;;  %v1829_v62 = vrot.slane %v1821_v35, %v11491_v51  ;;  %v12365_v5 = vpop.permute.xlu1 %3621 }
 0x367   : > { %v1836_v36 = vrot.slane %v1822_v60, %v11491_v51  ;;  %v2395_v17 = vpack.c.bf16 %v2247_v22, %v2179_v58  ;;  %v2396_v42 = vpack.c.bf16 %v2248_v31, %v2180_v48  ;;  %v14117_v8 = vcombine.low %v12139_v49, %v12142_v46 }
 0x368   : > { %v2281_v61 = vcombine.low %v12282_v0, %v12285_v40  ;;  %v2282_v33 = vcombine.high %v12282_v0, %v12285_v40  ;;  %v3681_v14 = vcombine.low %v12252_v37, %v3642_v15  ;;  %v14118_v30 = vcombine.high %v12139_v49, %v12142_v46 }
 0x369   : > { %v12304_v56 = vrot.slane %v14117_v8, %v11477_v26  ;;  %v2317_v53 = vcombine.low %v1813_v43, %v1820_v21  ;;  %10019 = vmatmul.mubr.msk.bf16.vlgmr.msra.gmra.mxu0 %vm4769_vm1, %v2395_v17  ;;  %10025 = vmatmul.mubr.msk.bf16.vlgmr.msra.gmra.mxu1 %vm4769_vm1, %v2396_v42  ;;  %v3665_v44 = vcombine.low %v11429_v1, %v12204_v55 }
 0x36a   : > { %v12317_v34 = vrot.slane %v14118_v30, %v11477_v26  ;;  %v14119_v28 = vcombine.low %v12151_v50, %v12156_v27  ;;  %v2297_v45 = vcombine.low %v12293_v2, %v12296_v47  ;;  %v9563_v49 = vcombine.high %v1813_v43, %v1820_v21  ;;  %10030 = vmatprep.mubr.msk.bf16.mxu0 %vm10916_vm0, %v14108_v52 }
 0x36b   : > { %v14120_v46 = vcombine.high %v12151_v50, %v12156_v27  ;;  %v2333_v16 = vcombine.low %v1829_v62, %v1836_v36  ;;  %v3682_v12 = vcombine.high %v12252_v37, %v3642_v15  ;;  %v12343_v13 = vrot.slane %v3501_v25, %v11477_v26  ;;  %10036 = vmatprep.mubr.msk.bf16.mxu1 %vm10916_vm0, %v14108_v52 }
 0x36c   : > { %v12327_v54 = vrot.slane %v14119_v28, %v11477_v26  ;;  %v3465_v59 = vcombine.low %v12304_v56, %v12317_v34  ;;  %v12346_v18 = vrot.slane %v9579_v29, %v11477_v26  ;;  %v9564_v50 = vcombine.high %v1829_v62, %v1836_v36 }
 0x36d   : > { %v12335_v24 = vrot.slane %v14120_v46, %v11477_v26  ;;  %v3689_v27 = vrot.slane %v3681_v14, %v11477_v26  ;;  %v3666_v11 = vcombine.high %v11429_v1, %v12204_v55  ;;  %v12356_v37 = vrot.slane %v2317_v53, %v11477_v26 }
 0x36e   : > { %v3673_v39 = vrot.slane %v3665_v44, %v11477_v26  ;;  %v12360_v9 = vrot.slane %v3517_v19, %v11477_v26  ;;  %v12363_v57 = vrot.slane %v9580_v32, %v11477_v26  ;;  %v12368_v20 = vrot.slane %v9563_v49, %v11477_v26 }
 0x36f   : > { %v3481_v41 = vcombine.low %v12327_v54, %v12335_v24  ;;  %v3473_v1 = vrot.slane %v3465_v59, %v11491_v51  ;;  %v3533_v35 = vcombine.low %v12343_v13, %v12346_v18  ;;  %v12375_v25 = vrot.slane %v2333_v16, %v11477_v26 }
 0x370   : > { %v3549_v60 = vcombine.low %v12360_v9, %v12363_v57  ;;  %v3733_v22 = vcombine.low %v11443_v3, %v12242_v63  ;;  %v3749_v31 = vcombine.low %v12178_v6, %v12272_v4  ;;  %v12384_v29 = vrot.slane %v9564_v50, %v11477_v26 }
 0x371   : > { %v3489_v55 = vrot.slane %v3481_v41, %v11491_v51  ;;  %v3680_v19 = vrot.slane %v3666_v11, %v11477_v26  ;;  %v3541_v43 = vrot.slane %v3533_v35, %v11491_v51  ;;  %v3750_v21 = vcombine.high %v12178_v6, %v12272_v4  ;;  %v12398_v4 = vpop.permute.xlu1 %3623 }
 0x372   : > { %v3696_v15 = vrot.slane %v3682_v12, %v11477_v26  ;;  %v3697_v58 = vcombine.low %v3673_v39, %v3689_v27  ;;  %v3557_v48 = vrot.slane %v3549_v60, %v11491_v51  ;;  %v3757_v32 = vrot.slane %v3749_v31, %v11477_v26 }
 0x373   : > { %v2349_v62 = vcombine.low %v12356_v37, %v12368_v20  ;;  %v3698_v36 = vcombine.high %v3673_v39, %v3689_v27  ;;  %v3497_v17 = vcombine.low %v3473_v1, %v3489_v55  ;;  %v3734_v42 = vcombine.high %v11443_v3, %v12242_v63 }
 0x374   : > { %v3565_v8 = vcombine.low %v3541_v43, %v3557_v48  ;;  %v3498_v14 = vcombine.high %v3473_v1, %v3489_v55  ;;  %v3566_v30 = vcombine.high %v3541_v43, %v3557_v48  ;;  %v3741_v6 = vrot.slane %v3733_v22, %v11477_v26 }
 0x375   : > { %v2365_v53 = vcombine.low %v12375_v25, %v12384_v29  ;;  %v3713_v44 = vcombine.low %v3680_v19, %v3696_v15  ;;  %v3714_v28 = vcombine.high %v3680_v19, %v3696_v15  ;;  %v3764_v49 = vrot.slane %v3750_v21, %v11477_v26  ;;  %v12422_v31 = vpop.permute.xlu1 %3647  ;;  %v12424_v19 = vpop.permute.xlu0 %3597 }
 0x376   : > { %v12404_v46 = vrot.slane %v3697_v58, %v11491_v51  ;;  %v3581_v59 = vpack.c.bf16 %v3565_v8, %v3497_v17  ;;  %v3582_v16 = vpack.c.bf16 %v3566_v30, %v3498_v14  ;;  %v3765_v3 = vcombine.low %v3741_v6, %v3757_v32 }
 0x377   : > { %v3748_v63 = vrot.slane %v3734_v42, %v11477_v26  ;;  %v3766_v12 = vcombine.high %v3741_v6, %v3757_v32  ;;  %v2289_v50 = vrot.slane %v2281_v61, %v11491_v51  ;;  %v2305_v27 = vrot.slane %v2297_v45, %v11491_v51 }
 0x378   : > { %v3712_v11 = vrot.slane %v3698_v36, %v11491_v51  ;;  %v5338_v41 = vsel %vm4769_vm1, %v3581_v59, 0  ;;  %v5385_v39 = vsel %vm4769_vm1, %v3582_v16, 0  ;;  %v2357_v1 = vrot.slane %v2349_v62, %v11491_v51 }
 0x379   : > { %v3721_v55 = vrot.slane %v3713_v44, %v11491_v51  ;;  %10029 = vmatpush3.bf16.xpose.msra.mxu0 %v5338_v41  ;;  %10035 = vmatpush3.bf16.xpose.msra.mxu1 %v5385_v39  ;;  %v3781_v35 = vcombine.low %v3748_v63, %v3764_v49  ;;  %v3782_v60 = vcombine.high %v3748_v63, %v3764_v49 }
 0x37a   : > { %v3728_v22 = vrot.slane %v3714_v28, %v11491_v51  ;;  %v3773_v61 = vrot.slane %v3765_v3, %v11491_v51  ;;  %10040 = vmatprep.subr.bf16.mxu0 %v14108_v52  ;;  %10046 = vmatprep.subr.bf16.mxu1 %v14108_v52  ;;  %v2373_v45 = vrot.slane %v2365_v53, %v11491_v51 }
 0x37b   : > { %v3780_v43 = vrot.slane %v3766_v12, %v11491_v51  ;;  %v2313_v21 = vcombine.low %v2289_v50, %v2305_v27  ;;  %v2314_v15 = vcombine.high %v2289_v50, %v2305_v27  ;;  %v3466_v58 = vcombine.high %v12304_v56, %v12317_v34 }
 0x37c   : > { %v2381_v48 = vcombine.low %v2357_v1, %v2373_v45  ;;  %v2382_v32 = vcombine.high %v2357_v1, %v2373_v45  ;;  %v3482_v62 = vcombine.high %v12327_v54, %v12335_v24  ;;  %v3534_v36 = vcombine.high %v12343_v13, %v12346_v18 }
 0x37d   : > { %v3789_v17 = vrot.slane %v3781_v35, %v11491_v51  ;;  %v3796_v42 = vrot.slane %v3782_v60, %v11491_v51  ;;  %v3480_v8 = vrot.slane %v3466_v58, %v11491_v51  ;;  %v3550_v14 = vcombine.high %v12360_v9, %v12363_v57  ;;  %v12447_v9 = vpop.permute.xlu1 %3603  ;;  %v12449_v57 = vpop.permute.xlu0 %3645 }
 0x37e   : > { %v2397_v30 = vpack.c.bf16 %v2381_v48, %v2313_v21  ;;  %v2398_v6 = vpack.c.bf16 %v2382_v32, %v2314_v15  ;;  %v3496_v56 = vrot.slane %v3482_v62, %v11491_v51  ;;  %v3548_v34 = vrot.slane %v3534_v36, %v11491_v51 }
 0x37f   : > { %v2298_v54 = vcombine.high %v12293_v2, %v12296_v47  ;;  %v4209_v24 = vcombine.low %v12404_v46, %v3712_v11  ;;  %v9581_v13 = vcombine.high %v12404_v46, %v3712_v11  ;;  %v3564_v18 = vrot.slane %v3550_v14, %v11491_v51 }
 0x380   : > { %v4225_v53 = vcombine.low %v3721_v55, %v3728_v22  ;;  %v9582_v44 = vcombine.high %v3721_v55, %v3728_v22  ;;  %v4277_v28 = vcombine.low %v3773_v61, %v3780_v43  ;;  %10031 = vmatmul.mubr.msk.bf16.vlgmr.msra.gmra.mxu0 %vm4769_vm1, %v2397_v30  ;;  %10037 = vmatmul.mubr.msk.bf16.vlgmr.msra.gmra.mxu1 %vm4769_vm1, %v2398_v6 }
 0x381   : > { %v3499_v49 = vcombine.low %v3480_v8, %v3496_v56  ;;  %v3567_v59 = vcombine.low %v3548_v34, %v3564_v18  ;;  %v3500_v2 = vcombine.high %v3480_v8, %v3496_v56  ;;  %v3568_v47 = vcombine.high %v3548_v34, %v3564_v18  ;;  %10042 = vmatprep.mubr.msk.bf16.mxu0 %vm10916_vm0, %v14108_v52  ;;  %v3626_v40 = vpop.permute.xlu1 %3625 }
 0x382   : > { %v2350_v46 = vcombine.high %v12356_v37, %v12368_v20  ;;  %v9583_v16 = vcombine.high %v3773_v61, %v3780_v43  ;;  %v4293_v3 = vcombine.low %v3789_v17, %v3796_v42  ;;  %v9584_v63 = vcombine.high %v3789_v17, %v3796_v42  ;;  %10048 = vmatprep.mubr.msk.bf16.mxu1 %vm10916_vm0, %v14108_v52 }
 0x383   : > { %v2366_v12 = vcombine.high %v12375_v25, %v12384_v29  ;;  %v12460_v50 = vrot.slane %v4209_v24, %v11477_v26  ;;  %v3583_v27 = vpack.c.bf16 %v3567_v59, %v3499_v49  ;;  %v3584_v11 = vpack.c.bf16 %v3568_v47, %v3500_v2 }
 0x384   : > { %v12463_v41 = vrot.slane %v9581_v13, %v11477_v26  ;;  %v12466_v39 = vrot.slane %v4225_v53, %v11477_v26  ;;  %v2296_v37 = vrot.slane %v2282_v33, %v11491_v51  ;;  %v2312_v20 = vrot.slane %v2298_v54, %v11491_v51  ;;  %v3602_v33 = vpop.permute.xlu0 %3601 }
 0x385   : > { %v12474_v25 = vrot.slane %v9582_v44, %v11477_v26  ;;  %v12477_v29 = vrot.slane %v4277_v28, %v11477_v26  ;;  %v5432_v1 = vsel %vm4769_vm1, %v3583_v27, 0  ;;  %v5479_v55 = vsel %vm4769_vm1, %v3584_v11, 0  ;;  %v3628_v30 = vpop.permute.xlu1 %3627 }
 0x386   : > { %v12482_v35 = vrot.slane %v9583_v16, %v11477_v26  ;;  %v12485_v60 = vrot.slane %v4293_v3, %v11477_v26  ;;  %v12488_v0 = vrot.slane %v9584_v63, %v11477_v26  ;;  %10041 = vmatpush3.bf16.xpose.msra.mxu0 %v5432_v1  ;;  %10047 = vmatpush3.bf16.xpose.msra.mxu1 %v5479_v55 }
 0x387   : > { %v2364_v22 = vrot.slane %v2350_v46, %v11491_v51  ;;  %v2380_v61 = vrot.slane %v2366_v12, %v11491_v51  ;;  %10052 = vmatprep.subr.bf16.mxu0 %v14108_v52  ;;  %v2315_v45 = vcombine.low %v2296_v37, %v2312_v20  ;;  %10058 = vmatprep.subr.bf16.mxu1 %v14108_v52 }
 0x388   : > { %v2316_v21 = vcombine.high %v2296_v37, %v2312_v20  ;;  %v4241_v58 = vcombine.low %v12460_v50, %v12463_v41  ;;  %v4257_v48 = vcombine.low %v12466_v39, %v12474_v25  ;;  %v4309_v32 = vcombine.low %v12477_v29, %v12482_v35  ;;  %v3650_v6 = vpop.permute.xlu0 %3649 }
 0x389   : > { %v2383_v43 = vcombine.low %v2364_v22, %v2380_v61  ;;  %v2384_v15 = vcombine.high %v2364_v22, %v2380_v61  ;;  %v4325_v62 = vcombine.low %v12485_v60, %v12488_v0  ;;  %v3953_v18 = vcombine.low %v3602_v33, %v3650_v6  ;;  %v3652_v46 = vpop.permute.xlu1 %3651 }
 0x38a   : > { %v4249_v42 = vrot.slane %v4241_v58, %v11491_v51  ;;  %v4265_v8 = vrot.slane %v4257_v48, %v11491_v51  ;;  %v4317_v14 = vrot.slane %v4309_v32, %v11491_v51  ;;  %v3954_v53 = vcombine.high %v3602_v33, %v3650_v6 }
 0x38b   : > { %v2399_v36 = vpack.c.bf16 %v2383_v43, %v2315_v45  ;;  %v2400_v17 = vpack.c.bf16 %v2384_v15, %v2316_v21  ;;  %v4333_v56 = vrot.slane %v4325_v62, %v11491_v51  ;;  %v3937_v44 = vcombine.low %v11454_v7, %v3626_v40 }
 0x38c   : > { %v4273_v34 = vcombine.low %v4249_v42, %v4265_v8  ;;  %v4274_v24 = vcombine.high %v4249_v42, %v4265_v8  ;;  %v3938_v28 = vcombine.high %v11454_v7, %v3626_v40  ;;  %v4005_v16 = vcombine.low %v11499_v38, %v3628_v30 }
 0x38d   : > { %10043 = vmatmul.mubr.msk.bf16.vlgmr.msra.gmra.mxu0 %vm4769_vm1, %v2399_v36  ;;  %10049 = vmatmul.mubr.msk.bf16.vlgmr.msra.gmra.mxu1 %vm4769_vm1, %v2400_v17  ;;  %v4341_v54 = vcombine.low %v4317_v14, %v4333_v56  ;;  %v4342_v13 = vcombine.high %v4317_v14, %v4333_v56  ;;  %v3945_v2 = vrot.slane %v3937_v44, %v11477_v26 }
 0x38e   : > { %10054 = vmatprep.mubr.msk.bf16.mxu0 %vm10916_vm0, %v14108_v52  ;;  %10060 = vmatprep.mubr.msk.bf16.mxu1 %vm10916_vm0, %v14108_v52  ;;  %v3952_v47 = vrot.slane %v3938_v28, %v11477_v26  ;;  %v3961_v3 = vrot.slane %v3953_v18, %v11477_v26  ;;  %v3968_v63 = vrot.slane %v3954_v53, %v11477_v26 }
 0x38f   : > { %v4753_v49 = vpack.c.bf16 %v4341_v54, %v4273_v34  ;;  %v4754_v59 = vpack.c.bf16 %v4342_v13, %v4274_v24  ;;  %v4006_v12 = vcombine.high %v11499_v38, %v3628_v30  ;;  %v4021_v7 = vcombine.low %v12447_v9, %v3652_v46 }
 0x390   : > { %v4022_v27 = vcombine.high %v12447_v9, %v3652_v46  ;;  %v3969_v11 = vcombine.low %v3945_v2, %v3961_v3  ;;  %v3970_v37 = vcombine.high %v3945_v2, %v3961_v3  ;;  %v3985_v20 = vcombine.low %v3952_v47, %v3968_v63 }
 0x391   : > { %10053 = vmatpush3.bf16.msra.mxu0 %v4753_v49  ;;  %10059 = vmatpush3.bf16.msra.mxu1 %v4754_v59  ;;  %v3986_v1 = vcombine.high %v3952_v47, %v3968_v63  ;;  %v4013_v55 = vrot.slane %v4005_v16, %v11477_v26  ;;  %v4020_v40 = vrot.slane %v4006_v12, %v11477_v26 }
 0x392   : > { %10064 = vmatprep.subr.bf16.mxu0 %v14108_v52  ;;  %10070 = vmatprep.subr.bf16.mxu1 %v14108_v52  ;;  %v4029_v33 = vrot.slane %v4021_v7, %v11477_v26  ;;  %v4036_v22 = vrot.slane %v4022_v27, %v11477_v26  ;;  %v3977_v9 = vrot.slane %v3969_v11, %v11491_v51 }
 0x393   : > { %v3984_v21 = vrot.slane %v3970_v37, %v11491_v51  ;;  %v3993_v15 = vrot.slane %v3985_v20, %v11491_v51  ;;  %v4000_v58 = vrot.slane %v3986_v1, %v11491_v51  ;;  %v4242_v54 = vcombine.high %v12460_v50, %v12463_v41 }
 0x394   : > { %v4037_v61 = vcombine.low %v4013_v55, %v4029_v33  ;;  %v4038_v38 = vcombine.high %v4013_v55, %v4029_v33  ;;  %v4053_v45 = vcombine.low %v4020_v40, %v4036_v22  ;;  %v4054_v43 = vcombine.high %v4020_v40, %v4036_v22 }
 0x395   : > { %v4481_v30 = vcombine.low %v3977_v9, %v3984_v21  ;;  %v9589_v6 = vcombine.high %v3977_v9, %v3984_v21  ;;  %v4497_v56 = vcombine.low %v3993_v15, %v4000_v58  ;;  %v9590_v34 = vcombine.high %v3993_v15, %v4000_v58 }
 0x396   : > { %v4045_v48 = vrot.slane %v4037_v61, %v11491_v51  ;;  %v4052_v32 = vrot.slane %v4038_v38, %v11491_v51  ;;  %v4061_v62 = vrot.slane %v4053_v45, %v11491_v51  ;;  %v4068_v36 = vrot.slane %v4054_v43, %v11491_v51 }
 0x397   : > { %v4258_v24 = vcombine.high %v12466_v39, %v12474_v25  ;;  %v4310_v13 = vcombine.high %v12477_v29, %v12482_v35  ;;  %v4326_v18 = vcombine.high %v12485_v60, %v12488_v0  ;;  %v4256_v53 = vrot.slane %v4242_v54, %v11491_v51 }
 0x398   : > { %v4549_v17 = vcombine.low %v4045_v48, %v4052_v32  ;;  %v9591_v42 = vcombine.high %v4045_v48, %v4052_v32  ;;  %v4565_v8 = vcombine.low %v4061_v62, %v4068_v36  ;;  %v9592_v14 = vcombine.high %v4061_v62, %v4068_v36 }
 0x399   : > { %v4272_v44 = vrot.slane %v4258_v24, %v11491_v51  ;;  %v4324_v28 = vrot.slane %v4310_v13, %v11491_v51  ;;  %v4488_v49 = vrot.slane %v4481_v30, %v11477_v26  ;;  %v4496_v59 = vrot.slane %v9589_v6, %v11477_v26 }
 0x39a   : > { %v4340_v50 = vrot.slane %v4326_v18, %v11491_v51  ;;  %v4504_v41 = vrot.slane %v4497_v56, %v11477_v26  ;;  %v4512_v39 = vrot.slane %v9590_v34, %v11477_v26  ;;  %v4556_v35 = vrot.slane %v4549_v17, %v11477_v26 }
 0x39b   : > { %v4275_v25 = vcombine.low %v4256_v53, %v4272_v44  ;;  %v4276_v29 = vcombine.high %v4256_v53, %v4272_v44  ;;  %v4564_v60 = vrot.slane %v9591_v42, %v11477_v26  ;;  %v4572_v47 = vrot.slane %v4565_v8, %v11477_v26 }
 0x39c   : > { %v4343_v0 = vcombine.low %v4324_v28, %v4340_v50  ;;  %v4344_v2 = vcombine.high %v4324_v28, %v4340_v50  ;;  %v4580_v46 = vrot.slane %v9592_v14, %v11477_v26  ;;  %v4513_v63 = vcombine.low %v4488_v49, %v4496_v59 }
 0x39d   : > { %v4529_v12 = vcombine.low %v4504_v41, %v4512_v39  ;;  %v4581_v7 = vcombine.low %v4556_v35, %v4564_v60  ;;  %v4514_v55 = vcombine.high %v4488_v49, %v4496_v59  ;;  %v4530_v40 = vcombine.high %v4504_v41, %v4512_v39 }
 0x39e   : > { %v12556_v16 = vpack.c.bf16 %v4343_v0, %v4275_v25  ;;  %v12558_v3 = vpack.c.bf16 %v4344_v2, %v4276_v29  ;;  %v4597_v27 = vcombine.low %v4572_v47, %v4580_v46  ;;  %v4521_v11 = vrot.slane %v4513_v63, %v11491_v51 }
 0x39f   : > { %v4537_v37 = vrot.slane %v4529_v12, %v11491_v51  ;;  %v4589_v20 = vrot.slane %v4581_v7, %v11491_v51  ;;  %v4582_v33 = vcombine.high %v4556_v35, %v4564_v60  ;;  %v4598_v22 = vcombine.high %v4572_v47, %v4580_v46 }
 0x3a0   : > { %v4605_v1 = vrot.slane %v4597_v27, %v11491_v51  ;;  %v4528_v45 = vrot.slane %v4514_v55, %v11491_v51  ;;  %v4544_v43 = vrot.slane %v4530_v40, %v11491_v51  ;;  %v14121_v30 = vlaneseq }
 0x3a1   : > { %v4545_v61 = vcombine.low %v4521_v11, %v4537_v37  ;;  %v4596_v9 = vrot.slane %v4582_v33, %v11491_v51  ;;  %v4612_v21 = vrot.slane %v4598_v22, %v11491_v51  ;;  %v4546_v15 = vcombine.high %v4521_v11, %v4537_v37 }
 0x3a2   : > { %v4613_v38 = vcombine.low %v4589_v20, %v4605_v1  ;;  %v4614_v58 = vcombine.high %v4589_v20, %v4605_v1  ;;  %v4547_v32 = vcombine.low %v4528_v45, %v4544_v43  ;;  %v4548_v17 = vcombine.high %v4528_v45, %v4544_v43 }
 0x3a3   : > { %v4615_v62 = vcombine.low %v4596_v9, %v4612_v21  ;;  %v4616_v42 = vcombine.high %v4596_v9, %v4612_v21  ;;  %v5526_v6 = vand.u32 127, %v14121_v30  ;;  %v5524_v34 = vadd.s32 8, %v11259_v10 }
 0x3a4   : > { %v12568_v48 = vpack.c.bf16 %v4613_v38, %v4545_v61  ;;  %v12570_v36 = vpack.c.bf16 %v4614_v58, %v4546_v15 }
 0x3a5   : > { %v12572_v8 = vpack.c.bf16 %v4615_v62, %v4547_v32  ;;  %v12574_v14 = vpack.c.bf16 %v4616_v42, %v4548_v17  ;;  %vm12578_vm2 = vcmp.le.s32.totalorder %v5526_v6, %v11259_v10  ;;  %vm12589_vm4 = vcmp.le.s32.totalorder %v5526_v6, %v5524_v34 }
 0x3cc   : > { %v4810_v54 = vpop.f32.mrf.mxu1 }
 0x3cd   : > { %v12585_v24 = vsel %vm12578_vm2, %v4810_v54, -1e+30  ;;  %v4904_v13 = vpop.f32.mrf.mxu0 }
 0x3ce   : > { %v9960_v18 = vpop.f32.mrf.mxu1  ;;  %v5566_v53 = vsel %vm5565_vm3, %v12585_v24, -inf  ;;  %v12595_v28 = vsel %vm12578_vm2, %v4904_v13, -1e+30 }
 0x3cf   : > { %v9972_v49 = vpop.f32.mrf.mxu0  ;;  %5567 = vmax.xlane.f32.xlu0 %v5566_v53  ;;  %v5578_v25 = vsel %vm5565_vm3, %v12595_v28, -inf }
 0x3d0   : > { %v4813_v59 = vpop.f32.mrf.mxu1 }
 0x3d1   : > { %v12599_v50 = vsel %vm12589_vm4, %v4813_v59, -1e+30  ;;  %v4907_v41 = vpop.f32.mrf.mxu0 }
 0x3d2   : > { %v9961_v39 = vpop.f32.mrf.mxu1  ;;  %v5569_v29 = vsel %vm5565_vm3, %v12599_v50, -inf  ;;  %v12607_v35 = vsel %vm12589_vm4, %v4907_v41, -1e+30 }
 0x3d3   : > { %v9973_v60 = vpop.f32.mrf.mxu0  ;;  %5579 = vmax.xlane.f32.xlu0 %v5578_v25  ;;  %5570 = vmax.xlane.f32.xlu1 %v5569_v29  ;;  %v5581_v0 = vsel %vm5565_vm3, %v12607_v35, -inf }
 0x3d7   : > { %5582 = vmax.xlane.f32.xlu1 %v5581_v0 }
 0x3dc   : > { %v4857_v2 = vpop.f32.mrf.mxu1 }
 0x3dd   : > { %v12613_v47 = vsel %vm12578_vm2, %v4857_v2, -1e+30 }
 0x3de   : > { %v9966_v46 = vpop.f32.mrf.mxu1  ;;  %v5572_v63 = vsel %vm5565_vm3, %v12613_v47, -inf }
 0x3df   : > { %5573 = vmax.xlane.f32.xlu0 %v5572_v63 }
 0x3e0   : > { %v4860_v12 = vpop.f32.mrf.mxu1 }
 0x3e1   : > { %v12625_v38 = vsel %vm12589_vm4, %v4860_v12, -1e+30 }
 0x3e2   : > { %v9967_v7 = vpop.f32.mrf.mxu1  ;;  %v5575_v32 = vsel %vm5565_vm3, %v12625_v38, -inf }
 0x3e6   : > { %v4951_v27 = vpop.f32.mrf.mxu1 }
 0x3e7   : > { %v12637_v62 = vsel %vm12578_vm2, %v4951_v27, -1e+30 }
 0x3e8   : > { %v9978_v11 = vpop.f32.mrf.mxu1  ;;  %v5584_v30 = vsel %vm5565_vm3, %v12637_v62, -inf }
 0x3ea   : > { %v4954_v37 = vpop.f32.mrf.mxu1 }
 0x3eb   : > { %v12641_v17 = vsel %vm12589_vm4, %v4954_v37, -1e+30 }
 0x3ec   : > { %v9979_v20 = vpop.f32.mrf.mxu1  ;;  %v5587_v42 = vsel %vm5565_vm3, %v12641_v17, -inf }
 0x3f0   : > { %v4998_v1 = vpop.f32.mrf.mxu0  ;;  %v5045_v55 = vpop.f32.mrf.mxu1 }
 0x3f1   : > { %v12619_v40 = vsel %vm12578_vm2, %v4998_v1, -1e+30  ;;  %v12655_v49 = vsel %vm12578_vm2, %v5045_v55, -1e+30 }
 0x3f2   : > { %v9984_v33 = vpop.f32.mrf.mxu0  ;;  %v9990_v22 = vpop.f32.mrf.mxu1  ;;  %v5590_v61 = vsel %vm5565_vm3, %v12619_v40, -inf  ;;  %v5596_v0 = vsel %vm5565_vm3, %v12655_v49, -inf }
 0x3f3   : > { %5591 = vmax.xlane.f32.xlu0 %v5590_v61 }
 0x3f4   : > { %v5001_v45 = vpop.f32.mrf.mxu0  ;;  %v5048_v43 = vpop.f32.mrf.mxu1 }
 0x3f5   : > { %v12629_v9 = vsel %vm12589_vm4, %v5001_v45, -1e+30  ;;  %v12667_v2 = vsel %vm12589_vm4, %v5048_v43, -1e+30 }
 0x3f6   : > { %v5593_v21 = vsel %vm5565_vm3, %v12629_v9, -inf  ;;  %v9985_v15 = vpop.f32.mrf.mxu0  ;;  %v9991_v58 = vpop.f32.mrf.mxu1  ;;  %v5599_v46 = vsel %vm5565_vm3, %v12667_v2, -inf }
 0x3f7   : > { %5576 = vmax.xlane.f32.xlu0 %v5575_v32  ;;  %5594 = vmax.xlane.f32.xlu1 %v5593_v21 }
 0x3fb   : > { %5585 = vmax.xlane.f32.xlu0 %v5584_v30  ;;  %5588 = vmax.xlane.f32.xlu1 %v5587_v42 }
 0x407   : > { %v5092_v6 = vpop.f32.mrf.mxu0  ;;  %v5139_v34 = vpop.f32.mrf.mxu1 }
 0x408   : > { %v12649_v54 = vsel %vm12578_vm2, %v5092_v6, -1e+30  ;;  %v12679_v20 = vsel %vm12578_vm2, %v5139_v34, -1e+30 }
 0x409   : > { %v9996_v13 = vpop.f32.mrf.mxu0  ;;  %v10002_v18 = vpop.f32.mrf.mxu1  ;;  %v5602_v53 = vsel %vm5565_vm3, %v12649_v54, -inf  ;;  %v5608_v43 = vsel %vm5565_vm3, %v12679_v20, -inf }
 0x40a   : > { %5603 = vmax.xlane.f32.xlu0 %v5602_v53 }
 0x40b   : > { %v5095_v59 = vpop.f32.mrf.mxu0  ;;  %v5142_v41 = vpop.f32.mrf.mxu1 }
 0x40c   : > { %v12659_v39 = vsel %vm12589_vm4, %v5095_v59, -1e+30  ;;  %v12691_v21 = vsel %vm12589_vm4, %v5142_v41, -1e+30 }
 0x40d   : > { %v5605_v25 = vsel %vm5565_vm3, %v12659_v39, -inf  ;;  %v9997_v29 = vpop.f32.mrf.mxu0  ;;  %v10003_v60 = vpop.f32.mrf.mxu1  ;;  %v5611_v15 = vsel %vm5565_vm3, %v12691_v21, -inf }
 0x40e   : > { %5606 = vmax.xlane.f32.xlu1 %v5605_v25  ;;  %5597 = vmax.xlane.f32.xlu0 %v5596_v0 }
 0x412   : > { %5600 = vmax.xlane.f32.xlu1 %v5599_v46 }
 0x418   : > { %v5186_v63 = vpop.f32.mrf.mxu0  ;;  %v5233_v12 = vpop.f32.mrf.mxu1 }
 0x419   : > { %v12673_v7 = vsel %vm12578_vm2, %v5186_v63, -1e+30  ;;  %v12703_v13 = vsel %vm12578_vm2, %v5233_v12, -1e+30 }
 0x41a   : > { %v10008_v27 = vpop.f32.mrf.mxu0  ;;  %v10014_v11 = vpop.f32.mrf.mxu1  ;;  %v5614_v37 = vsel %vm5565_vm3, %v12673_v7, -inf  ;;  %v5620_v41 = vsel %vm5565_vm3, %v12703_v13, -inf }
 0x41b   : > { %5615 = vmax.xlane.f32.xlu0 %v5614_v37 }
 0x41c   : > { %v5189_v1 = vpop.f32.mrf.mxu0  ;;  %v5236_v55 = vpop.f32.mrf.mxu1 }
 0x41d   : > { %v12683_v33 = vsel %vm12589_vm4, %v5189_v1, -1e+30  ;;  %v12715_v0 = vsel %vm12589_vm4, %v5236_v55, -1e+30 }
 0x41e   : > { %v5617_v22 = vsel %vm5565_vm3, %v12683_v33, -inf  ;;  %v10009_v61 = vpop.f32.mrf.mxu0  ;;  %v10015_v45 = vpop.f32.mrf.mxu1  ;;  %v5623_v46 = vsel %vm5565_vm3, %v12715_v0, -inf }
 0x41f   : > { %5609 = vmax.xlane.f32.xlu0 %v5608_v43  ;;  %5618 = vmax.xlane.f32.xlu1 %v5617_v22 }
 0x423   : > { %5612 = vmax.xlane.f32.xlu1 %v5611_v15 }
 0x429   : > { %v5280_v58 = vpop.f32.mrf.mxu0  ;;  %v5327_v32 = vpop.f32.mrf.mxu1 }
 0x42a   : > { %v12697_v42 = vsel %vm12578_vm2, %v5280_v58, -1e+30  ;;  %v12727_v55 = vsel %vm12578_vm2, %v5327_v32, -1e+30  ;;  %v12741_v32 = vpop.permute.xlu1 %3607 }
 0x42b   : > { %v10020_v30 = vpop.f32.mrf.mxu0  ;;  %v10026_v6 = vpop.f32.mrf.mxu1  ;;  %v5626_v34 = vsel %vm5565_vm3, %v12697_v42, -inf  ;;  %v5632_v43 = vsel %vm5565_vm3, %v12727_v55, -inf  ;;  %14126 = vst [vmem:[#allocation20_spill] sm:$0xff] %v12741_v32 }
 0x42c   : > { %5627 = vmax.xlane.f32.xlu0 %v5626_v34 }
 0x42d   : > { %v5283_v18 = vpop.f32.mrf.mxu0  ;;  %v5330_v53 = vpop.f32.mrf.mxu1 }
 0x42e   : > { %v12707_v59 = vsel %vm12589_vm4, %v5283_v18, -1e+30  ;;  %v12739_v6 = vsel %vm12589_vm4, %v5330_v53, -1e+30 }
 0x42f   : > { %v5629_v25 = vsel %vm5565_vm3, %v12707_v59, -inf  ;;  %v10021_v29 = vpop.f32.mrf.mxu0  ;;  %v10027_v60 = vpop.f32.mrf.mxu1  ;;  %v5635_v34 = vsel %vm5565_vm3, %v12739_v6, -inf }
 0x430   : > { %5621 = vmax.xlane.f32.xlu0 %v5620_v41  ;;  %5630 = vmax.xlane.f32.xlu1 %v5629_v25 }
 0x434   : > { %5624 = vmax.xlane.f32.xlu1 %v5623_v46  ;;  %v12751_v46 = vpop.permute.xlu1 %3629 }
 0x440   : > { %v5374_v63 = vpop.f32.mrf.mxu0  ;;  %v5421_v12 = vpop.f32.mrf.mxu1 }
 0x441   : > { %v12721_v27 = vsel %vm12578_vm2, %v5374_v63, -1e+30  ;;  %v12755_v63 = vsel %vm12578_vm2, %v5421_v12, -1e+30 }
 0x442   : > { %v5638_v11 = vsel %vm5565_vm3, %v12721_v27, -inf  ;;  %v10032_v37 = vpop.f32.mrf.mxu0  ;;  %v10038_v1 = vpop.f32.mrf.mxu1 }
 0x443   : > { %5639 = vmax.xlane.f32.xlu0 %v5638_v11 }
 0x444   : > { %v5377_v22 = vpop.f32.mrf.mxu0  ;;  %v5424_v61 = vpop.f32.mrf.mxu1 }
 0x445   : > { %v12731_v45 = vsel %vm12589_vm4, %v5377_v22, -1e+30  ;;  %v5644_v22 = vsel %vm5565_vm3, %v12755_v63, -inf }
 0x446   : > { %v5641_v15 = vsel %vm5565_vm3, %v12731_v45, -inf  ;;  %v10033_v58 = vpop.f32.mrf.mxu0  ;;  %v10039_v30 = vpop.f32.mrf.mxu1 }
 0x447   : > { %5633 = vmax.xlane.f32.xlu0 %v5632_v43  ;;  %5642 = vmax.xlane.f32.xlu1 %v5641_v15  ;;  %v12767_v30 = vsel %vm12589_vm4, %v5424_v61, -1e+30 }
 0x44b   : > { %5636 = vmax.xlane.f32.xlu1 %v5635_v34  ;;  %v12773_v34 = vpop.permute.xlu1 %3631 }
 0x44c   : > { %14127 = vst [vmem:[#allocation21_spill] sm:$0xff] %v12773_v34 }
 0x44d   : > { %v5468_v18 = vpop.f32.mrf.mxu0  ;;  %v5515_v41 = vpop.f32.mrf.mxu1 }
 0x44e   : > { %v12747_v25 = vsel %vm12578_vm2, %v5468_v18, -1e+30  ;;  %v12771_v12 = vsel %vm12578_vm2, %v5515_v41, -1e+30  ;;  %v5647_v18 = vsel %vm5565_vm3, %v12767_v30, -inf }
 0x44f   : > { %v5650_v29 = vsel %vm5565_vm3, %v12747_v25, -inf  ;;  %v10044_v60 = vpop.f32.mrf.mxu0  ;;  %v10050_v53 = vpop.f32.mrf.mxu1 }
 0x450   : > { %5651 = vmax.xlane.f32.xlu0 %v5650_v29  ;;  %v5656_v29 = vsel %vm5565_vm3, %v12771_v12, -inf }
 0x451   : > { %v5471_v11 = vpop.f32.mrf.mxu0  ;;  %v5518_v37 = vpop.f32.mrf.mxu1 }
 0x452   : > { %v12759_v1 = vsel %vm12589_vm4, %v5471_v11, -1e+30  ;;  %v12781_v60 = vsel %vm12589_vm4, %v5518_v37, -1e+30 }
 0x453   : > { %v5653_v43 = vsel %vm5565_vm3, %v12759_v1, -inf  ;;  %v10045_v15 = vpop.f32.mrf.mxu0  ;;  %v10051_v58 = vpop.f32.mrf.mxu1  ;;  %v5659_v56 = vsel %vm5565_vm3, %v12781_v60, -inf }
 0x454   : > { %5645 = vmax.xlane.f32.xlu0 %v5644_v22  ;;  %5654 = vmax.xlane.f32.xlu1 %v5653_v43  ;;  %v12787_v15 = vpop.permute.xlu0 %3605  ;;  %v14128_v58 = vld [vmem:[#allocation18_spill] sm:$0xff] }
 0x458   : > { %5657 = vmax.xlane.f32.xlu0 %v5656_v29  ;;  %5648 = vmax.xlane.f32.xlu1 %v5647_v18  ;;  %v5568_v44 = vpop.xlane.xlu0 %5567 }
 0x45c   : > { %v5571_v61 = vpop.xlane.xlu1 %5570  ;;  %5660 = vmax.xlane.f32.xlu1 %v5659_v56  ;;  %v5580_v29 = vpop.xlane.xlu0 %5579  ;;  %v5662_v56 = vsub.f32 %v12585_v24, %v5568_v44 }
 0x45d   : > { %v5663_v41 = vsub.f32 %v12599_v50, %v5571_v61 }
 0x45e   : > { %v5694_v61 = vmul.f32 1.442695, %v5662_v56 }
 0x45f   : > { %v5696_v53 = vmul.f32 1.442695, %v5663_v41  ;;  %v5666_v41 = vsub.f32 %v12595_v28, %v5580_v29 }
 0x460   : > { %v5583_v11 = vpop.xlane.xlu1 %5582 }
 0x461   : > { %10469 = vpow2.f32 %v5696_v53  ;;  %v5667_v22 = vsub.f32 %v12607_v35, %v5583_v11  ;;  %v5702_v11 = vmul.f32 1.442695, %v5666_v41 }
 0x463   : > { %v5704_v43 = vmul.f32 1.442695, %v5667_v22 }
 0x465   : > { %10471 = vpow2.f32 %v5704_v43 }
 0x466   : > { %10473 = vpow2.f32 %v5694_v61 }
 0x467   : > { %10475 = vpow2.f32 %v5702_v11 }
 0x468   : > { %v5574_v53 = vpop.xlane.xlu0 %5573 }
 0x469   : > { %v5664_v22 = vsub.f32 %v12613_v47, %v5574_v53 }
 0x46e   : > { %v12789_v37 = vpop.eup %10469  ;;  %3653 = vrot.lane.b32.xlu0 %v14128_v58, %s10914_s30 }
 0x46f   : > { %v5761_v18 = vsel %vm5565_vm3, %v12789_v37, 0.0 }
 0x470   : > { %5762 = vadd.xlane.f32.xlu1 %v5761_v18  ;;  %v5698_v18 = vmul.f32 1.442695, %v5664_v22 }
 0x472   : > { %v12795_v50 = vpop.eup %10471  ;;  %10477 = vpow2.f32 %v5698_v18 }
 0x473   : > { %v5773_v35 = vsel %vm5565_vm3, %v12795_v50, 0.0  ;;  %v12806_v47 = vpop.eup %10473 }
 0x474   : > { %5774 = vadd.xlane.f32.xlu1 %v5773_v35  ;;  %v12810_v53 = vpop.eup %10475 }
 0x47c   : > { %v5592_v43 = vpop.xlane.xlu0 %5591 }
 0x47d   : > { %v5670_v10 = vsub.f32 %v12619_v40, %v5592_v43  ;;  %v5758_v40 = vsel %vm5565_vm3, %v12806_v47, 0.0 }
 0x47f   : > { %v5710_v24 = vmul.f32 1.442695, %v5670_v10  ;;  %v5770_v10 = vsel %vm5565_vm3, %v12810_v53, 0.0 }
 0x480   : > { %v5595_v32 = vpop.xlane.xlu1 %5594  ;;  %v5577_v34 = vpop.xlane.xlu0 %5576 }
 0x481   : > { %v5671_v44 = vsub.f32 %v12629_v9, %v5595_v32  ;;  %v5665_v56 = vsub.f32 %v12625_v38, %v5577_v34  ;;  %10479 = vpow2.f32 %v5710_v24  ;;  %v12814_v9 = vpop.eup %10477 }
 0x482   : > { %v5764_v32 = vsel %vm5565_vm3, %v12814_v9, 0.0 }
 0x483   : > { %v5700_v35 = vmul.f32 1.442695, %v5665_v56  ;;  %v5712_v28 = vmul.f32 1.442695, %v5671_v44 }
 0x484   : > { %v5586_v29 = vpop.xlane.xlu0 %5585  ;;  %v5589_v38 = vpop.xlane.xlu1 %5588 }
 0x485   : > { %v5668_v61 = vsub.f32 %v12637_v62, %v5586_v29  ;;  %10481 = vpow2.f32 %v5700_v35  ;;  %v5669_v62 = vsub.f32 %v12641_v17, %v5589_v38 }
 0x486   : > { %10483 = vpow2.f32 %v5712_v28 }
 0x487   : > { %v5706_v41 = vmul.f32 1.442695, %v5668_v61  ;;  %v5708_v18 = vmul.f32 1.442695, %v5669_v62 }
 0x489   : > { %10485 = vpow2.f32 %v5706_v41 }
 0x48d   : > { %5759 = vadd.xlane.f32.xlu0 %v5758_v40 }
 0x48e   : > { %v12819_v11 = vpop.eup %10479 }
 0x48f   : > { %v5782_v28 = vsel %vm5565_vm3, %v12819_v11, 0.0 }
 0x491   : > { %5771 = vadd.xlane.f32.xlu0 %v5770_v10 }
 0x492   : > { %v12822_v43 = vpop.eup %10481 }
 0x493   : > { %v5604_v34 = vpop.xlane.xlu0 %5603  ;;  %v5767_v44 = vsel %vm5565_vm3, %v12822_v43, 0.0  ;;  %v12826_v56 = vpop.eup %10483 }
 0x494   : > { %v5674_v22 = vsub.f32 %v12649_v54, %v5604_v34  ;;  %5768 = vadd.xlane.f32.xlu1 %v5767_v44  ;;  %v5785_v10 = vsel %vm5565_vm3, %v12826_v56, 0.0 }
 0x495   : > { %5765 = vadd.xlane.f32.xlu0 %v5764_v32 }
 0x496   : > { %v5718_v24 = vmul.f32 1.442695, %v5674_v22  ;;  %v12832_v61 = vpop.eup %10485 }
 0x497   : > { %v5607_v35 = vpop.xlane.xlu1 %5606  ;;  %v5598_v17 = vpop.xlane.xlu0 %5597  ;;  %v5776_v62 = vsel %vm5565_vm3, %v12832_v61, 0.0 }
 0x498   : > { %v5675_v29 = vsub.f32 %v12659_v39, %v5607_v35  ;;  %10487 = vpow2.f32 %v5718_v24  ;;  %v5672_v54 = vsub.f32 %v12655_v49, %v5598_v17  ;;  %5786 = vadd.xlane.f32.xlu1 %v5785_v10 }
 0x499   : > { %10489 = vpow2.f32 %v5708_v18  ;;  %5783 = vadd.xlane.f32.xlu0 %v5782_v28 }
 0x49a   : > { %v5720_v41 = vmul.f32 1.442695, %v5675_v29  ;;  %v5714_v40 = vmul.f32 1.442695, %v5672_v54 }
 0x49b   : > { %v5601_v38 = vpop.xlane.xlu1 %5600 }
 0x49c   : > { %10491 = vpow2.f32 %v5720_v41  ;;  %v5673_v39 = vsub.f32 %v12667_v2, %v5601_v38 }
 0x49d   : > { %10493 = vpow2.f32 %v5714_v40  ;;  %5777 = vadd.xlane.f32.xlu0 %v5776_v62 }
 0x49e   : > { %v5716_v32 = vmul.f32 1.442695, %v5673_v39 }
 0x4a0   : > { %10495 = vpow2.f32 %v5716_v32 }
 0x4a4   : > { %v5616_v34 = vpop.xlane.xlu0 %5615 }
 0x4a5   : > { %v12839_v49 = vpop.eup %10487  ;;  %v5678_v24 = vsub.f32 %v12673_v7, %v5616_v34 }
 0x4a6   : > { %v5794_v22 = vsel %vm5565_vm3, %v12839_v49, 0.0  ;;  %v12843_v18 = vpop.eup %10489 }
 0x4a7   : > { %5795 = vadd.xlane.f32.xlu0 %v5794_v22  ;;  %v5726_v35 = vmul.f32 1.442695, %v5678_v24  ;;  %v5779_v29 = vsel %vm5565_vm3, %v12843_v18, 0.0 }
 0x4a8   : > { %v5619_v17 = vpop.xlane.xlu1 %5618  ;;  %v5610_v2 = vpop.xlane.xlu0 %5609 }
 0x4a9   : > { %v12846_v44 = vpop.eup %10491  ;;  %10497 = vpow2.f32 %v5726_v35  ;;  %v5679_v41 = vsub.f32 %v12683_v33, %v5619_v17  ;;  %v5676_v40 = vsub.f32 %v12679_v20, %v5610_v2 }
 0x4aa   : > { %v5797_v28 = vsel %vm5565_vm3, %v12846_v44, 0.0  ;;  %v12852_v54 = vpop.eup %10493 }
 0x4ab   : > { %5798 = vadd.xlane.f32.xlu1 %v5797_v28  ;;  %5780 = vadd.xlane.f32.xlu0 %v5779_v29  ;;  %v5728_v10 = vmul.f32 1.442695, %v5679_v41  ;;  %v5722_v38 = vmul.f32 1.442695, %v5676_v40  ;;  %v5788_v39 = vsel %vm5565_vm3, %v12852_v54, 0.0 }
 0x4ac   : > { %v5613_v32 = vpop.xlane.xlu1 %5612 }
 0x4ad   : > { %v12856_v7 = vpop.eup %10495  ;;  %10499 = vpow2.f32 %v5728_v10  ;;  %v5677_v33 = vsub.f32 %v12691_v21, %v5613_v32 }
 0x4ae   : > { %v5791_v62 = vsel %vm5565_vm3, %v12856_v7, 0.0  ;;  %10501 = vpow2.f32 %v5722_v38 }
 0x4af   : > { %5792 = vadd.xlane.f32.xlu1 %v5791_v62  ;;  %5789 = vadd.xlane.f32.xlu0 %v5788_v39  ;;  %v5724_v35 = vmul.f32 1.442695, %v5677_v33 }
 0x4b5   : > { %v5628_v20 = vpop.xlane.xlu0 %5627 }
 0x4b6   : > { %v12863_v34 = vpop.eup %10497  ;;  %v5682_v22 = vsub.f32 %v12697_v42, %v5628_v20 }
 0x4b7   : > { %v5806_v24 = vsel %vm5565_vm3, %v12863_v34, 0.0 }
 0x4b8   : > { %v5734_v17 = vmul.f32 1.442695, %v5682_v22  ;;  %5807 = vadd.xlane.f32.xlu0 %v5806_v24 }
 0x4b9   : > { %v5631_v2 = vpop.xlane.xlu1 %5630  ;;  %v5622_v28 = vpop.xlane.xlu0 %5621 }
 0x4ba   : > { %v12868_v29 = vpop.eup %10499  ;;  %10503 = vpow2.f32 %v5734_v17  ;;  %v5683_v41 = vsub.f32 %v12707_v59, %v5631_v2  ;;  %v5680_v21 = vsub.f32 %v12703_v13, %v5622_v28 }
 0x4bb   : > { %v12872_v40 = vpop.eup %10501  ;;  %v5809_v42 = vsel %vm5565_vm3, %v12868_v29, 0.0  ;;  %10505 = vpow2.f32 %v5724_v35 }
 0x4bc   : > { %v5736_v10 = vmul.f32 1.442695, %v5683_v41  ;;  %v5730_v38 = vmul.f32 1.442695, %v5680_v21  ;;  %5810 = vadd.xlane.f32.xlu1 %v5809_v42  ;;  %v5800_v62 = vsel %vm5565_vm3, %v12872_v40, 0.0 }
 0x4bd   : > { %v5625_v39 = vpop.xlane.xlu1 %5624  ;;  %5801 = vadd.xlane.f32.xlu0 %v5800_v62 }
 0x4be   : > { %10507 = vpow2.f32 %v5736_v10  ;;  %v5681_v32 = vsub.f32 %v12715_v0, %v5625_v39 }
 0x4bf   : > { %10509 = vpow2.f32 %v5730_v38 }
 0x4c0   : > { %v5732_v59 = vmul.f32 1.442695, %v5681_v32 }
 0x4c2   : > { %10511 = vpow2.f32 %v5732_v59 }
 0x4c7   : > { %v12879_v13 = vpop.eup %10503 }
 0x4c8   : > { %v5818_v33 = vsel %vm5565_vm3, %v12879_v13, 0.0  ;;  %v12883_v20 = vpop.eup %10505 }
 0x4c9   : > { %5819 = vadd.xlane.f32.xlu0 %v5818_v33  ;;  %v5803_v2 = vsel %vm5565_vm3, %v12883_v20, 0.0 }
 0x4cb   : > { %v12885_v22 = vpop.eup %10507 }
 0x4cc   : > { %v5640_v24 = vpop.xlane.xlu0 %5639  ;;  %v12887_v35 = vpop.eup %10509  ;;  %v5821_v0 = vsel %vm5565_vm3, %v12885_v22, 0.0 }
 0x4cd   : > { %v5686_v17 = vsub.f32 %v12721_v27, %v5640_v24  ;;  %5822 = vadd.xlane.f32.xlu1 %v5821_v0  ;;  %5804 = vadd.xlane.f32.xlu0 %v5803_v2  ;;  %v5812_v10 = vsel %vm5565_vm3, %v12887_v35, 0.0 }
 0x4cf   : > { %v5742_v28 = vmul.f32 1.442695, %v5686_v17  ;;  %v12894_v41 = vpop.eup %10511 }
 0x4d0   : > { %v5643_v21 = vpop.xlane.xlu1 %5642  ;;  %v5634_v42 = vpop.xlane.xlu0 %5633  ;;  %v5815_v62 = vsel %vm5565_vm3, %v12894_v41, 0.0 }
 0x4d1   : > { %10513 = vpow2.f32 %v5742_v28  ;;  %v5687_v38 = vsub.f32 %v12731_v45, %v5643_v21  ;;  %v5684_v27 = vsub.f32 %v12727_v55, %v5634_v42  ;;  %5816 = vadd.xlane.f32.xlu1 %v5815_v62  ;;  %5813 = vadd.xlane.f32.xlu0 %v5812_v10 }
 0x4d3   : > { %v5744_v39 = vmul.f32 1.442695, %v5687_v38  ;;  %v5738_v32 = vmul.f32 1.442695, %v5684_v27 }
 0x4d4   : > { %v5637_v59 = vpop.xlane.xlu1 %5636 }
 0x4d5   : > { %10515 = vpow2.f32 %v5744_v39  ;;  %v5685_v33 = vsub.f32 %v12739_v6, %v5637_v59  ;;  %v4074_v59 = vcombine.high %v14128_v58, %v12751_v46 }
 0x4d6   : > { %10517 = vpow2.f32 %v5738_v32  ;;  %v4073_v32 = vcombine.low %v14128_v58, %v12751_v46 }
 0x4d7   : > { %v5740_v24 = vmul.f32 1.442695, %v5685_v33 }
 0x4d8   : > { %v4081_v58 = vrot.slane %v4073_v32, %v11477_v26 }
 0x4d9   : > { %10519 = vpow2.f32 %v5740_v24  ;;  %v5652_v17 = vpop.xlane.xlu0 %5651 }
 0x4da   : > { %v5690_v0 = vsub.f32 %v12747_v25, %v5652_v17 }
 0x4dc   : > { %v5750_v10 = vmul.f32 1.442695, %v5690_v0 }
 0x4dd   : > { %v12904_v45 = vpop.xlane.xlu1 %5654  ;;  %v5646_v55 = vpop.xlane.xlu0 %5645 }
 0x4de   : > { %v12906_v2 = vpop.eup %10513  ;;  %v5688_v28 = vsub.f32 %v12755_v63, %v5646_v55 }
 0x4df   : > { %14129 = vst [vmem:[#allocation18_spill] sm:$0xff] %v12906_v2  ;;  %v5830_v21 = vsel %vm5565_vm3, %v12906_v2, 0.0 }
 0x4e0   : > { %v5746_v42 = vmul.f32 1.442695, %v5688_v28  ;;  %5831 = vadd.xlane.f32.xlu0 %v5830_v21 }
 0x4e1   : > { %v5649_v6 = vpop.xlane.xlu1 %5648  ;;  %v5658_v38 = vpop.xlane.xlu0 %5657 }
 0x4e2   : > { %v12911_v27 = vpop.eup %10515  ;;  %v5689_v62 = vsub.f32 %v12767_v30, %v5649_v6  ;;  %v5692_v25 = vsub.f32 %v12771_v12, %v5658_v38  ;;  %10521 = vpow2.f32 %v5746_v42  ;;  %v4088_v42 = vrot.slane %v4074_v59, %v11477_v26 }
 0x4e3   : > { %v12915_v39 = vpop.eup %10517  ;;  %v5833_v63 = vsel %vm5565_vm3, %v12911_v27, 0.0  ;;  %10523 = vpow2.f32 %v5750_v10 }
 0x4e4   : > { %v5748_v33 = vmul.f32 1.442695, %v5689_v62  ;;  %5834 = vadd.xlane.f32.xlu1 %v5833_v63  ;;  %v5824_v24 = vsel %vm5565_vm3, %v12915_v39, 0.0  ;;  %v5754_v30 = vmul.f32 1.442695, %v5692_v25 }
 0x4e5   : > { %v5661_v12 = vpop.xlane.xlu1 %5660  ;;  %v3654_v17 = vpop.permute.xlu0 %3653  ;;  %5825 = vadd.xlane.f32.xlu0 %v5824_v24 }
 0x4e6   : > { %v12925_v0 = vpop.eup %10519  ;;  %10525 = vpow2.f32 %v5748_v33  ;;  %v5693_v55 = vsub.f32 %v12781_v60, %v5661_v12  ;;  %v4089_v28 = vcombine.low %v12787_v15, %v3654_v17  ;;  %v4090_v21 = vcombine.high %v12787_v15, %v3654_v17 }
 0x4e7   : > { %v5827_v46 = vsel %vm5565_vm3, %v12925_v0, 0.0  ;;  %10527 = vpow2.f32 %v5754_v30 }
 0x4e8   : > { %v4097_v10 = vrot.slane %v4089_v28, %v11477_v26  ;;  %v4104_v6 = vrot.slane %v4090_v21, %v11477_v26  ;;  %v5756_v38 = vmul.f32 1.442695, %v5693_v55 }
 0x4e9   : > { %5828 = vadd.xlane.f32.xlu0 %v5827_v46 }
 0x4ea   : > { %v4105_v62 = vcombine.low %v4081_v58, %v4097_v10  ;;  %v4106_v60 = vcombine.high %v4081_v58, %v4097_v10  ;;  %v4121_v25 = vcombine.low %v4088_v42, %v4104_v6  ;;  %v4122_v63 = vcombine.high %v4088_v42, %v4104_v6 }
 0x4eb   : > { %10529 = vpow2.f32 %v5756_v38 }
 0x4ec   : > { %v4113_v15 = vrot.slane %v4105_v62, %v11491_v51  ;;  %v4120_v33 = vrot.slane %v4106_v60, %v11491_v51  ;;  %v4129_v24 = vrot.slane %v4121_v25, %v11491_v51  ;;  %v4136_v32 = vrot.slane %v4122_v63, %v11491_v51 }
 0x4ee   : > { %v4617_v59 = vcombine.low %v4113_v15, %v4120_v33  ;;  %v9593_v12 = vcombine.high %v4113_v15, %v4120_v33  ;;  %v4633_v17 = vcombine.low %v4129_v24, %v4136_v32  ;;  %v9594_v28 = vcombine.high %v4129_v24, %v4136_v32 }
 0x4ef   : > { %v12940_v30 = vpop.eup %10521 }
 0x4f0   : > { %14130 = vst [vmem:[#allocation22_spill] sm:$0xff] %v12940_v30  ;;  %v4624_v55 = vrot.slane %v4617_v59, %v11477_v26  ;;  %v4632_v21 = vrot.slane %v9593_v12, %v11477_v26  ;;  %v4640_v46 = vrot.slane %v4633_v17, %v11477_v26  ;;  %v4648_v58 = vrot.slane %v9594_v28, %v11477_v26  ;;  %v12948_v10 = vpop.eup %10523 }
 0x4f1   : > { %v5836_v42 = vsel %vm5565_vm3, %v12940_v30, 0.0  ;;  %14131 = vst [vmem:[#allocation23_spill] sm:$0xff] %v12948_v10  ;;  %v5842_v24 = vsel %vm5565_vm3, %v12948_v10, 0.0 }
 0x4f2   : > { %5837 = vadd.xlane.f32.xlu0 %v5836_v42  ;;  %v4649_v6 = vcombine.low %v4624_v55, %v4632_v21  ;;  %v4650_v38 = vcombine.high %v4624_v55, %v4632_v21  ;;  %v4665_v60 = vcombine.low %v4640_v46, %v4648_v58  ;;  %v4666_v25 = vcombine.high %v4640_v46, %v4648_v58 }
 0x4f3   : > { %v12950_v62 = vpop.eup %10525  ;;  %v3817_v55 = vcombine.low %v12424_v19, %v12449_v57 }
 0x4f4   : > { %v5839_v63 = vsel %vm5565_vm3, %v12950_v62, 0.0  ;;  %v12955_v15 = vrot.slane %v4649_v6, %v11491_v51  ;;  %v12958_v33 = vrot.slane %v4650_v38, %v11491_v51  ;;  %v12963_v32 = vrot.slane %v4665_v60, %v11491_v51  ;;  %v12968_v12 = vpop.eup %10527  ;;  %v14137_v6 = vld [vmem:[#allocation19_spill] sm:$0xff] }
 0x4f5   : > { %5840 = vadd.xlane.f32.xlu1 %v5839_v63  ;;  %v12966_v59 = vrot.slane %v4666_v25, %v11491_v51  ;;  %14135 = vst [vmem:[#allocation27_spill] sm:$0xff] %v12968_v12  ;;  %v5848_v46 = vsel %vm5565_vm3, %v12968_v12, 0.0  ;;  %v3885_v38 = vcombine.low %v12306_v23, %v12422_v31  ;;  %v3886_v60 = vcombine.high %v12306_v23, %v12422_v31  ;;  %v14138_v25 = vld [vmem:[#allocation16_spill] sm:$0xff] }
 0x4f6   : > { %14132 = vst [vmem:[#allocation24_spill] sm:$0xff] %v12958_v33  ;;  %14133 = vst [vmem:[#allocation25_spill] sm:$0xff] %v12963_v32  ;;  %5843 = vadd.xlane.f32.xlu0 %v5842_v24  ;;  %v3801_v63 = vcombine.low %v14138_v25, %v12365_v5  ;;  %v14139_v24 = vld [vmem:[#allocation17_spill] sm:$0xff]  ;;  %v3818_v23 = vcombine.high %v12424_v19, %v12449_v57 }
 0x4f7   : > { %14134 = vst [vmem:[#allocation26_spill] sm:$0xff] %v12966_v59  ;;  %v3869_v21 = vcombine.low %v14139_v24, %v12398_v4  ;;  %v3893_v28 = vrot.slane %v3885_v38, %v11477_v26  ;;  %v3900_v31 = vrot.slane %v3886_v60, %v11477_v26 }
 0x4f8   : > { %v12980_v58 = vpop.eup %10529  ;;  %v3809_v17 = vrot.slane %v3801_v63, %v11477_v26  ;;  %v3832_v19 = vrot.slane %v3818_v23, %v11477_v26 }
 0x4f9   : > { %14136 = vst [vmem:[#allocation28_spill] sm:$0xff] %v12980_v58  ;;  %v5851_v42 = vsel %vm5565_vm3, %v12980_v58, 0.0  ;;  %v3877_v10 = vrot.slane %v3869_v21, %v11477_v26  ;;  %v5763_v12 = vpop.xlane.xlu1 %5762 }
 0x4fa   : > { %5849 = vadd.xlane.f32.xlu0 %v5848_v46  ;;  %v3802_v46 = vcombine.high %v14138_v25, %v12365_v5  ;;  %10531 = vrcp.f32 %v5763_v12 }
 0x4fb   : > { %v3901_v38 = vcombine.low %v3877_v10, %v3893_v28  ;;  %v3902_v58 = vcombine.high %v3877_v10, %v3893_v28 }
 0x4fc   : > { %v3816_v5 = vrot.slane %v3802_v46, %v11477_v26 }
 0x4fd   : > { %v3909_v46 = vrot.slane %v3901_v38, %v11491_v51  ;;  %v5775_v12 = vpop.xlane.xlu1 %5774 }
 0x4fe   : > { %5852 = vadd.xlane.f32.xlu0 %v5851_v42  ;;  %v3870_v42 = vcombine.high %v14139_v24, %v12398_v4  ;;  %v5691_v4 = vsub.f32 %v12759_v1, %v12904_v45  ;;  %v3825_v24 = vrot.slane %v3817_v55, %v11477_v26  ;;  %v3849_v21 = vcombine.low %v3816_v5, %v3832_v19 }
 0x4ff   : > { %v3850_v33 = vcombine.high %v3816_v5, %v3832_v19 }
 0x500   : > { %v3884_v25 = vrot.slane %v3870_v42, %v11477_v26  ;;  %v3833_v63 = vcombine.low %v3809_v17, %v3825_v24  ;;  %v3834_v59 = vcombine.high %v3809_v17, %v3825_v24  ;;  %v5752_v30 = vmul.f32 1.442695, %v5691_v4 }
 0x501   : > { %v3916_v42 = vrot.slane %v3902_v58, %v11491_v51  ;;  %v3857_v17 = vrot.slane %v3849_v21, %v11491_v51  ;;  %v3864_v55 = vrot.slane %v3850_v33, %v11491_v51 }
 0x502   : > { %v3917_v57 = vcombine.low %v3884_v25, %v3900_v31  ;;  %v3918_v60 = vcombine.high %v3884_v25, %v3900_v31  ;;  %v3841_v10 = vrot.slane %v3833_v63, %v11491_v51  ;;  %v3848_v28 = vrot.slane %v3834_v59, %v11491_v51 }
 0x503   : > { %v4413_v23 = vcombine.low %v3909_v46, %v3916_v42  ;;  %v9587_v5 = vcombine.high %v3909_v46, %v3916_v42  ;;  %v4361_v38 = vcombine.low %v3857_v17, %v3864_v55 }
 0x504   : > { %v3925_v1 = vrot.slane %v3917_v57, %v11491_v51  ;;  %v3932_v45 = vrot.slane %v3918_v60, %v11491_v51  ;;  %v4345_v4 = vcombine.low %v3841_v10, %v3848_v28  ;;  %v9585_v24 = vcombine.high %v3841_v10, %v3848_v28 }
 0x505   : > { %v4420_v19 = vrot.slane %v4413_v23, %v11477_v26  ;;  %v4428_v57 = vrot.slane %v9587_v5, %v11477_v26  ;;  %v4368_v42 = vrot.slane %v4361_v38, %v11477_v26 }
 0x506   : > { %3655 = vrot.lane.b32.xlu1 %v14137_v6, %s10914_s30  ;;  %v4429_v58 = vcombine.low %v3925_v1, %v3932_v45  ;;  %v9588_v25 = vcombine.high %v3925_v1, %v3932_v45  ;;  %v4352_v21 = vrot.slane %v4345_v4, %v11477_v26  ;;  %v4360_v46 = vrot.slane %v9585_v24, %v11477_v26 }
 0x507   : > { %v10532_v63 = vpop.eup %10531  ;;  %v4445_v28 = vcombine.low %v4420_v19, %v4428_v57 }
 0x508   : > { %v4436_v60 = vrot.slane %v4429_v58, %v11477_v26  ;;  %v5857_v10 = vmul.f32 %v10532_v63, %v12789_v37 }
 0x509   : > { %v13033_v4 = vrot.slane %v4445_v28, %v11491_v51  ;;  %v4446_v28 = vcombine.high %v4420_v19, %v4428_v57 }
 0x50b   : > { %v13060_v19 = vrot.slane %v4446_v28, %v11491_v51 }
 0x516   : > { %v5760_v2 = vpop.xlane.xlu0 %5759 }
 0x517   : > { %10533 = vrcp.f32 %v5760_v2  ;;  %v9586_v2 = vcombine.high %v3857_v17, %v3864_v55 }
 0x518   : > { %10535 = vpow2.f32 %v5752_v30  ;;  %v4444_v30 = vrot.slane %v9588_v25, %v11477_v26 }
 0x519   : > { %10537 = vrcp.f32 %v5775_v12  ;;  %v4376_v1 = vrot.slane %v9586_v2, %v11477_v26 }
 0x51a   : > { %v5772_v31 = vpop.xlane.xlu0 %5771  ;;  %v4461_v12 = vcombine.low %v4436_v60, %v4444_v30 }
 0x51b   : > { %10539 = vrcp.f32 %v5772_v31  ;;  %v4377_v31 = vcombine.low %v4352_v21, %v4360_v46  ;;  %v4393_v5 = vcombine.low %v4368_v42, %v4376_v1 }
 0x51c   : > { %v13036_v24 = vrot.slane %v4461_v12, %v11491_v51  ;;  %v4462_v12 = vcombine.high %v4436_v60, %v4444_v30 }
 0x51d   : > { %v5769_v33 = vpop.xlane.xlu1 %5768  ;;  %v13042_v2 = vrot.slane %v4377_v31, %v11491_v51 }
 0x51e   : > { %v5766_v59 = vpop.xlane.xlu0 %5765  ;;  %v4478_v28 = vcombine.high %v13033_v4, %v13036_v24 }
 0x51f   : > { %10541 = vrcp.f32 %v5766_v59 }
 0x520   : > { %10543 = vrcp.f32 %v5769_v33 }
 0x521   : > { %v5787_v17 = vpop.xlane.xlu1 %5786 }
 0x522   : > { %v5784_v45 = vpop.xlane.xlu0 %5783 }
 0x523   : > { %10545 = vrcp.f32 %v5784_v45  ;;  %v4477_v45 = vcombine.low %v13033_v4, %v13036_v24 }
 0x524   : > { %v10534_v55 = vpop.eup %10533  ;;  %10547 = vrcp.f32 %v5787_v17 }
 0x525   : > { %v5855_v23 = vmul.f32 %v10534_v55, %v12806_v47  ;;  %v13030_v58 = vpop.eup %10535  ;;  %v13045_v47 = vrot.slane %v4393_v5, %v11491_v51  ;;  %v4378_v5 = vcombine.high %v4352_v21, %v4360_v46 }
 0x526   : > { %14140 = vst [vmem:[#allocation19_spill] sm:$0xff] %v13030_v58  ;;  %v10538_v37 = vpop.eup %10537  ;;  %v5845_v38 = vsel %vm5565_vm3, %v13030_v58, 0.0  ;;  %v5778_v59 = vpop.xlane.xlu0 %5777 }
 0x527   : > { %v5918_v25 = vpack.c.bf16 %v5857_v10, %v5855_v23  ;;  %v5865_v63 = vmul.f32 %v10538_v37, %v12795_v50  ;;  %v4409_v23 = vcombine.low %v13042_v2, %v13045_v47 }
 0x528   : > { %v10540_v33 = vpop.eup %10539 }
 0x529   : > { %10055 = vmatmul.mubr.msk.bf16.vlgmr.msra.gmra.mxu0 %vm5565_vm3, %v5918_v25  ;;  %v5863_v55 = vmul.f32 %v10540_v33, %v12810_v53  ;;  %v4394_v25 = vcombine.high %v4368_v42, %v4376_v1  ;;  %v4757_v50 = vpack.c.bf16 %v4477_v45, %v4409_v23  ;;  %v13063_v53 = vrot.slane %v4462_v12, %v11491_v51 }
 0x52a   : > { %5846 = vadd.xlane.f32.xlu1 %v5845_v38  ;;  %10065 = vmatpush3.bf16.msra.mxu0 %v12556_v16  ;;  %v4410_v23 = vcombine.high %v13042_v2, %v13045_v47 }
 0x52b   : > { %10066 = vmatprep.mubr.msk.bf16.mxu0 %vm10916_vm0, %v14108_v52  ;;  %10076 = vmatprep.subr.bf16.mxu0 %v14108_v52  ;;  %v5920_v38 = vpack.c.bf16 %v5865_v63, %v5863_v55  ;;  %v4408_v60 = vrot.slane %v4394_v25, %v11491_v51 }
 0x52c   : > { %v10542_v10 = vpop.eup %10541  ;;  %v4758_v25 = vpack.c.bf16 %v4478_v28, %v4410_v23 }
 0x52d   : > { %v10544_v17 = vpop.eup %10543  ;;  %v5859_v16 = vmul.f32 %v10542_v10, %v12814_v9 }
 0x52e   : > { %v5861_v31 = vmul.f32 %v10544_v17, %v12822_v43  ;;  %v4392_v43 = vrot.slane %v4378_v5, %v11491_v51 }
 0x530   : > { %v5796_v37 = vpop.xlane.xlu0 %5795  ;;  %v10546_v58 = vpop.eup %10545  ;;  %v5919_v32 = vpack.c.bf16 %v5861_v31, %v5859_v16  ;;  %v4411_v42 = vcombine.low %v4392_v43, %v4408_v60 }
 0x531   : > { %10549 = vrcp.f32 %v5796_v37  ;;  %v10548_v57 = vpop.eup %10547  ;;  %10067 = vmatmul.mubr.msk.bf16.vlgmr.msra.gmra.mxu0 %vm5565_vm3, %v5920_v38  ;;  %v5871_v46 = vmul.f32 %v10546_v58, %v12819_v11 }
 0x532   : > { %10077 = vmatpush3.bf16.msra.mxu0 %v4757_v50  ;;  %10061 = vmatmul.mubr.msk.bf16.vlgmr.msra.gmra.mxu1 %vm5565_vm3, %v5919_v32  ;;  %v5873_v9 = vmul.f32 %v10548_v57, %v12826_v56  ;;  %10551 = vrcp.f32 %v5778_v59  ;;  %v4479_v56 = vcombine.low %v13060_v19, %v13063_v53 }
 0x533   : > { %10071 = vmatpush3.bf16.msra.mxu1 %v12558_v3  ;;  %10078 = vmatprep.mubr.msk.bf16.mxu0 %vm10916_vm0, %v14108_v52 }
 0x534   : > { %v5799_v30 = vpop.xlane.xlu1 %5798  ;;  %v5781_v21 = vpop.xlane.xlu0 %5780  ;;  %10088 = vmatprep.subr.bf16.mxu0 %v14108_v52  ;;  %10072 = vmatprep.mubr.msk.bf16.mxu1 %vm10916_vm0, %v14108_v52  ;;  %v5922_v32 = vpack.c.bf16 %v5873_v9, %v5871_v46  ;;  %v4759_v59 = vpack.c.bf16 %v4479_v56, %v4411_v42 }
 0x535   : > { %10553 = vrcp.f32 %v5799_v30  ;;  %10082 = vmatprep.subr.bf16.mxu1 %v14108_v52 }
 0x536   : > { %10555 = vrcp.f32 %v5781_v21 }
 0x538   : > { %v5790_v3 = vpop.xlane.xlu0 %5789  ;;  %v5793_v1 = vpop.xlane.xlu1 %5792 }
 0x539   : > { %10557 = vrcp.f32 %v5790_v3  ;;  %10079 = vmatmul.mubr.msk.bf16.vlgmr.msra.gmra.mxu0 %vm5565_vm3, %v5922_v32 }
 0x53a   : > { %10089 = vmatpush3.bf16.msra.mxu0 %v4759_v59  ;;  %10090 = vmatprep.mubr.msk.bf16.mxu0 %vm10916_vm0, %v14108_v52  ;;  %10559 = vrcp.f32 %v5793_v1 }
 0x53b   : > { %10100 = vmatprep.subr.bf16.mxu0 %v14108_v52 }
 0x53e   : > { %v10550_v11 = vpop.eup %10549 }
 0x53f   : > { %v10552_v58 = vpop.eup %10551  ;;  %v5879_v33 = vmul.f32 %v10550_v11, %v12839_v49 }
 0x540   : > { %v5867_v17 = vmul.f32 %v10552_v58, %v12832_v61 }
 0x541   : > { %v5808_v10 = vpop.xlane.xlu0 %5807 }
 0x542   : > { %v10554_v63 = vpop.eup %10553  ;;  %10561 = vrcp.f32 %v5808_v10 }
 0x543   : > { %v10556_v45 = vpop.eup %10555  ;;  %v5881_v12 = vmul.f32 %v10554_v63, %v12846_v44 }
 0x544   : > { %v5869_v55 = vmul.f32 %v10556_v45, %v12843_v18  ;;  %v4480_v18 = vcombine.high %v13060_v19, %v13063_v53  ;;  %v14141_v45 = vld [vmem:[#allocation21_spill] sm:$0xff] }
 0x545   : > { %v5924_v16 = vpack.c.bf16 %v5881_v12, %v5879_v33  ;;  %v5811_v49 = vpop.xlane.xlu1 %5810  ;;  %v4141_v10 = vcombine.low %v14137_v6, %v14141_v45  ;;  %v4142_v28 = vcombine.high %v14137_v6, %v14141_v45  ;;  %v14147_v45 = vld [vmem:[#allocation22_spill] sm:$0xff] }
 0x546   : > { %v5921_v31 = vpack.c.bf16 %v5869_v55, %v5867_v17  ;;  %v10558_v5 = vpop.eup %10557  ;;  %10563 = vrcp.f32 %v5811_v49  ;;  %v5802_v24 = vpop.xlane.xlu0 %5801  ;;  %v14142_v55 = vld [vmem:[#allocation20_spill] sm:$0xff] }
 0x547   : > { %10091 = vmatmul.mubr.msk.bf16.vlgmr.msra.gmra.mxu0 %vm5565_vm3, %v5924_v16  ;;  %v10560_v44 = vpop.eup %10559  ;;  %v5875_v61 = vmul.f32 %v10558_v5, %v12852_v54  ;;  %v4149_v49 = vrot.slane %v4141_v10, %v11477_v26 }
 0x548   : > { %10073 = vmatmul.mubr.msk.bf16.vlgmr.msra.gmra.mxu1 %vm5565_vm3, %v5921_v31  ;;  %10101 = vmatpush3.bf16.msra.mxu0 %v12568_v48  ;;  %v5877_v4 = vmul.f32 %v10560_v44, %v12856_v7  ;;  %v4412_v48 = vcombine.high %v4392_v43, %v4408_v60 }
 0x549   : > { %10083 = vmatpush3.bf16.msra.mxu1 %v4758_v25  ;;  %10084 = vmatprep.mubr.msk.bf16.mxu1 %vm10916_vm0, %v14108_v52  ;;  %v4156_v25 = vrot.slane %v4142_v28, %v11477_v26 }
 0x54a   : > { %10094 = vmatprep.subr.bf16.mxu1 %v14108_v52  ;;  %10102 = vmatprep.mubr.msk.bf16.mxu0 %vm10916_vm0, %v14108_v52  ;;  %v5923_v2 = vpack.c.bf16 %v5877_v4, %v5875_v61  ;;  %v4760_v47 = vpack.c.bf16 %v4480_v18, %v4412_v48 }
 0x54b   : > { %10112 = vmatprep.subr.bf16.mxu0 %v14108_v52 }
 0x54f   : > { %v10562_v54 = vpop.eup %10561 }
 0x550   : > { %10085 = vmatmul.mubr.msk.bf16.vlgmr.msra.gmra.mxu1 %vm5565_vm3, %v5923_v2  ;;  %v5887_v37 = vmul.f32 %v10562_v54, %v12863_v34 }
 0x551   : > { %10095 = vmatpush3.bf16.msra.mxu1 %v4760_v47  ;;  %10096 = vmatprep.mubr.msk.bf16.mxu1 %vm10916_vm0, %v14108_v52 }
 0x552   : > { %10106 = vmatprep.subr.bf16.mxu1 %v14108_v52  ;;  %v5820_v38 = vpop.xlane.xlu0 %5819 }
 0x553   : > { %v10564_v50 = vpop.eup %10563  ;;  %10565 = vrcp.f32 %v5820_v38 }
 0x554   : > { %v5889_v19 = vmul.f32 %v10564_v50, %v12868_v29  ;;  %10567 = vrcp.f32 %v5802_v24 }
 0x556   : > { %v5823_v7 = vpop.xlane.xlu1 %5822  ;;  %v5805_v53 = vpop.xlane.xlu0 %5804  ;;  %v5926_v57 = vpack.c.bf16 %v5889_v19, %v5887_v37 }
 0x557   : > { %10569 = vrcp.f32 %v5823_v7 }
 0x558   : > { %10571 = vrcp.f32 %v5805_v53  ;;  %10103 = vmatmul.mubr.msk.bf16.vlgmr.msra.gmra.mxu0 %vm5565_vm3, %v5926_v57 }
 0x559   : > { %10113 = vmatpush3.bf16.msra.mxu0 %v12572_v8  ;;  %10114 = vmatprep.mubr.msk.bf16.mxu0 %vm10916_vm0, %v14108_v52 }
 0x55a   : > { %v5817_v9 = vpop.xlane.xlu1 %5816  ;;  %v5814_v43 = vpop.xlane.xlu0 %5813  ;;  %10124 = vmatprep.subr.bf16.mxu0 %v14108_v52 }
 0x55b   : > { %10573 = vrcp.f32 %v5817_v9 }
 0x55c   : > { %10575 = vrcp.f32 %v5814_v43 }
 0x560   : > { %v10566_v34 = vpop.eup %10565 }
 0x561   : > { %v10568_v29 = vpop.eup %10567  ;;  %v5895_v21 = vmul.f32 %v10566_v34, %v12879_v13 }
 0x562   : > { %v5883_v56 = vmul.f32 %v10568_v29, %v12872_v40 }
 0x564   : > { %v10570_v60 = vpop.eup %10569 }
 0x565   : > { %v10572_v30 = vpop.eup %10571  ;;  %v5897_v46 = vmul.f32 %v10570_v60, %v12885_v22 }
 0x566   : > { %v5885_v8 = vmul.f32 %v10572_v30, %v12883_v20 }
 0x567   : > { %v5928_v32 = vpack.c.bf16 %v5897_v46, %v5895_v21 }
 0x568   : > { %v10574_v42 = vpop.eup %10573  ;;  %v5925_v1 = vpack.c.bf16 %v5885_v8, %v5883_v56 }
 0x569   : > { %v5832_v3 = vpop.xlane.xlu0 %5831  ;;  %v10576_v59 = vpop.eup %10575  ;;  %10115 = vmatmul.mubr.msk.bf16.vlgmr.msra.gmra.mxu0 %vm5565_vm3, %v5928_v32  ;;  %v5893_v13 = vmul.f32 %v10574_v42, %v12894_v41 }
 0x56a   : > { %10097 = vmatmul.mubr.msk.bf16.vlgmr.msra.gmra.mxu1 %vm5565_vm3, %v5925_v1  ;;  %10126 = vmatprep.mubr.msk.bf16.mxu0 %vm10916_vm0, %v14108_v52  ;;  %v5891_v40 = vmul.f32 %v10576_v59, %v12887_v35 }
 0x56b   : > { %10107 = vmatpush3.bf16.msra.mxu1 %v12570_v36  ;;  %10108 = vmatprep.mubr.msk.bf16.mxu1 %vm10916_vm0, %v14108_v52 }
 0x56c   : > { %10118 = vmatprep.subr.bf16.mxu1 %v14108_v52  ;;  %v5927_v22 = vpack.c.bf16 %v5893_v13, %v5891_v40  ;;  %v14143_v13 = vld [vmem:[#allocation25_spill] sm:$0xff] }
 0x56d   : > { %v5835_v36 = vpop.xlane.xlu1 %5834 }
 0x56e   : > { %v5826_v20 = vpop.xlane.xlu0 %5825 }
 0x56f   : > { %10577 = vrcp.f32 %v5826_v20  ;;  %v14144_v20 = vcombine.low %v12955_v15, %v14143_v13 }
 0x572   : > { %v5829_v11 = vpop.xlane.xlu0 %5828  ;;  %10109 = vmatmul.mubr.msk.bf16.vlgmr.msra.gmra.mxu1 %vm5565_vm3, %v5927_v22 }
 0x573   : > { %10579 = vrcp.f32 %v5829_v11  ;;  %10119 = vmatpush3.bf16.msra.mxu1 %v12574_v14  ;;  %10120 = vmatprep.mubr.msk.bf16.mxu1 %vm10916_vm0, %v14108_v52  ;;  %v14145_v11 = vcombine.high %v12955_v15, %v14143_v13 }
 0x574   : > { %10130 = vmatprep.subr.bf16.mxu1 %v14108_v52  ;;  %10581 = vrcp.f32 %v5835_v36 }
 0x57b   : > { %v5838_v58 = vpop.xlane.xlu0 %5837 }
 0x57c   : > { %v10578_v33 = vpop.eup %10577 }
 0x57d   : > { %v5899_v14 = vmul.f32 %v10578_v33, %v12915_v39 }
 0x57e   : > { %v5841_v35 = vpop.xlane.xlu1 %5840 }
 0x57f   : > { %v13135_v63 = vpop.xlane.xlu0 %5843  ;;  %10583 = vrcp.f32 %v5841_v35  ;;  %v14146_v35 = vld [vmem:[#allocation18_spill] sm:$0xff] }
 0x580   : > { %v10580_v41 = vpop.eup %10579  ;;  %10585 = vrcp.f32 %v5832_v3 }
 0x581   : > { %v5901_v12 = vmul.f32 %v10580_v41, %v12925_v0  ;;  %10587 = vrcp.f32 %v5838_v58  ;;  %v10582_v60 = vpop.eup %10581 }
 0x582   : > { %v3656_v17 = vpop.permute.xlu1 %3655  ;;  %v5905_v59 = vmul.f32 %v10582_v60, %v12911_v27 }
 0x583   : > { %v4157_v23 = vcombine.low %v14142_v55, %v3656_v17  ;;  %v4158_v16 = vcombine.high %v14142_v55, %v3656_v17  ;;  %v5850_v31 = vpop.xlane.xlu0 %5849  ;;  %v5929_v5 = vpack.c.bf16 %v5901_v12, %v5899_v14  ;;  %v14148_v14 = vld [vmem:[#allocation24_spill] sm:$0xff]  ;;  %v14149_v12 = vld [vmem:[#allocation26_spill] sm:$0xff] }
 0x584   : > { %v14150_v17 = vcombine.low %v14148_v14, %v14149_v12  ;;  %v14151_v55 = vcombine.high %v14148_v14, %v14149_v12 }
 0x585   : > { %v4165_v6 = vrot.slane %v4157_v23, %v11477_v26  ;;  %v4172_v39 = vrot.slane %v4158_v16, %v11477_v26  ;;  %10121 = vmatmul.mubr.msk.bf16.vlgmr.msra.gmra.mxu1 %vm5565_vm3, %v5929_v5 }
 0x586   : > { %10132 = vmatprep.mubr.msk.bf16.mxu1 %vm10916_vm0, %v14108_v52 }
 0x587   : > { %v4173_v0 = vcombine.low %v4149_v49, %v4165_v6  ;;  %v4174_v44 = vcombine.high %v4149_v49, %v4165_v6  ;;  %v4189_v61 = vcombine.low %v4156_v25, %v4172_v39  ;;  %v4190_v18 = vcombine.high %v4156_v25, %v4172_v39  ;;  %v5853_v47 = vpop.xlane.xlu0 %5852  ;;  %v14153_v49 = vld [vmem:[#allocation27_spill] sm:$0xff] }
 0x588   : > { %10589 = vrcp.f32 %v5853_v47  ;;  %v14154_v39 = vmov 0  }
 0x589   : > { %v4181_v4 = vrot.slane %v4173_v0, %v11491_v51  ;;  %v4188_v48 = vrot.slane %v4174_v44, %v11491_v51  ;;  %v4197_v24 = vrot.slane %v4189_v61, %v11491_v51  ;;  %v4204_v2 = vrot.slane %v4190_v18, %v11491_v51  ;;  %v14155_v18 = vld [vmem:[#allocation23_spill] sm:$0xff] }
 0x58a   : > { %10591 = vrcp.f32 %v5850_v31  ;;  %v14152_v31 = vld [vmem:[#allocation28_spill] sm:$0xff] }
 0x58b   : > { %v4685_v54 = vcombine.low %v4181_v4, %v4188_v48  ;;  %v9595_v38 = vcombine.high %v4181_v4, %v4188_v48  ;;  %v4701_v50 = vcombine.low %v4197_v24, %v4204_v2  ;;  %v9596_v37 = vcombine.high %v4197_v24, %v4204_v2  ;;  %v14156_v48 = vld [vmem:[#allocation19_spill] sm:$0xff] }
 0x58c   : > { %v10584_v30 = vpop.eup %10583  ;;  %10593 = vrcp.f32 %v13135_v63 }
 0x58d   : > { %v4692_v19 = vrot.slane %v4685_v54, %v11477_v26  ;;  %v4700_v7 = vrot.slane %v9595_v38, %v11477_v26  ;;  %v4708_v53 = vrot.slane %v4701_v50, %v11477_v26  ;;  %v4716_v57 = vrot.slane %v9596_v37, %v11477_v26  ;;  %v10586_v32 = vpop.eup %10585 }
 0x58e   : > { %v10588_v42 = vpop.eup %10587  ;;  %v5909_v40 = vmul.f32 %v10584_v30, %v12950_v62  ;;  %v5903_v41 = vmul.f32 %v10586_v32, %v14146_v35 }
 0x58f   : > { %v4717_v9 = vcombine.low %v4692_v19, %v4700_v7  ;;  %v4733_v43 = vcombine.low %v4708_v53, %v4716_v57  ;;  %v4718_v34 = vcombine.high %v4692_v19, %v4700_v7  ;;  %v4734_v29 = vcombine.high %v4708_v53, %v4716_v57 }
 0x590   : > { %v5907_v10 = vmul.f32 %v10588_v42, %v14147_v45  ;;  %v5930_v28 = vpack.c.bf16 %v5905_v59, %v5903_v41 }
 0x591   : > { %v4725_v21 = vrot.slane %v4717_v9, %v11491_v51  ;;  %v4741_v46 = vrot.slane %v4733_v43, %v11491_v51  ;;  %v4732_v56 = vrot.slane %v4718_v34, %v11491_v51  ;;  %v4748_v8 = vrot.slane %v4734_v29, %v11491_v51 }
 0x592   : > { %v5931_v27 = vpack.c.bf16 %v5909_v40, %v5907_v10 }
 0x593   : > { %v4749_v3 = vcombine.low %v4725_v21, %v4741_v46  ;;  %v4750_v1 = vcombine.high %v4725_v21, %v4741_v46  ;;  %v4751_v58 = vcombine.low %v4732_v56, %v4748_v8  ;;  %v4752_v33 = vcombine.high %v4732_v56, %v4748_v8 }
 0x595   : > { %v4765_v22 = vpack.c.bf16 %v4749_v3, %v14144_v20  ;;  %v4766_v36 = vpack.c.bf16 %v4750_v1, %v14145_v11  ;;  %v10590_v62 = vpop.eup %10589  ;;  %v4767_v15 = vpack.c.bf16 %v4751_v58, %v14150_v17  ;;  %v4768_v23 = vpack.c.bf16 %v4752_v33, %v14151_v55 }
 0x596   : > { %v5917_v5 = vmul.f32 %v10590_v62, %v14152_v31 }
 0x597   : > { %10125 = vmatpush3.bf16.msra.mxu0 %v4765_v22  ;;  %10131 = vmatpush3.bf16.msra.mxu1 %v4766_v36  ;;  %v10592_v16 = vpop.eup %10591 }
 0x598   : > { %10136 = vmatprep.subr.bf16.mxu0 %v14108_v52  ;;  %10142 = vmatprep.subr.bf16.mxu1 %v14108_v52  ;;  %v5915_v25 = vmul.f32 %v10592_v16, %v14153_v49 }
 0x599   : > { %v10594_v44 = vpop.eup %10593 }
 0x59a   : > { %10127 = vmatmul.mubr.msk.bf16.vlgmr.msra.gmra.mxu0 %vm5565_vm3, %v5930_v28  ;;  %10133 = vmatmul.mubr.msk.bf16.vlgmr.msra.gmra.mxu1 %vm5565_vm3, %v5931_v27  ;;  %v5933_v6 = vpack.c.bf16 %v5917_v5, %v5915_v25  ;;  %v5911_v4 = vmul.f32 %v10594_v44, %v14155_v18 }
 0x59b   : > { %10137 = vmatpush3.bf16.msra.mxu0 %v4767_v15  ;;  %10143 = vmatpush3.bf16.msra.mxu1 %v4768_v23 }
 0x59c   : > { %10144 = vmatprep.mubr.msk.bf16.mxu1 %vm10916_vm0, %v14108_v52  ;;  %10138 = vmatprep.mubr.msk.bf16.mxu0 %vm10916_vm0, %v14108_v52 }
 0x5a2   : > { %10145 = vmatmul.mubr.msk.bf16.vlgmr.msra.gmra.mxu1 %vm5565_vm3, %v5933_v6 }
 0x5a3   : > { %8364 = vmatprep.mubr.bf16.mxu1 %v14154_v39 }
 0x5b3   : > { %v5847_v0 = vpop.xlane.xlu1 %5846 }
 0x5b4   : > { %10595 = vrcp.f32 %v5847_v0 }
 0x5c1   : > { %v10596_v61 = vpop.eup %10595 }
 0x5c2   : > { %v5913_v24 = vmul.f32 %v10596_v61, %v14156_v48 }
 0x5c4   : > { %v5932_v2 = vpack.c.bf16 %v5913_v24, %v5911_v4 }
 0x5c6   : > { %10139 = vmatmul.mubr.msk.bf16.vlgmr.msra.gmra.mxu0 %vm5565_vm3, %v5932_v2 }
 0x5e9   : > { %v5971_v52 = vpop.f32.mrf.mxu0 }
 0x5eb   : > { %v10056_v47 = vpop.f32.mrf.mxu0 }
 0x5ed   : > { %v5974_v54 = vpop.f32.mrf.mxu0 }
 0x5ef   : > { %v10057_v38 = vpop.f32.mrf.mxu0 }
 0x5f1   : > { %v6059_v50 = vpop.f32.mrf.mxu0 }
 0x5f2   : > { %v6015_v37 = vpop.f32.mrf.mxu1  ;;  %v6638_v30 = vcombine.low %v5971_v52, %v6059_v50  ;;  %v6639_v21 = vcombine.high %v5971_v52, %v6059_v50 }
 0x5f3   : > { %v10068_v19 = vpop.f32.mrf.mxu0 }
 0x5f4   : > { %v10062_v7 = vpop.f32.mrf.mxu1  ;;  %v6646_v1 = vrot.slane %v6638_v30, %v11477_v26  ;;  %v6653_v59 = vrot.slane %v6639_v21, %v11477_v26 }
 0x5f5   : > { %v6062_v63 = vpop.f32.mrf.mxu0 }
 0x5f6   : > { %v6018_v53 = vpop.f32.mrf.mxu1  ;;  %v6706_v22 = vcombine.low %v5974_v54, %v6062_v63  ;;  %v6707_v11 = vcombine.high %v5974_v54, %v6062_v63 }
 0x5f7   : > { %v10069_v57 = vpop.f32.mrf.mxu0 }
 0x5f8   : > { %v10063_v9 = vpop.f32.mrf.mxu1  ;;  %v6714_v15 = vrot.slane %v6706_v22, %v11477_v26  ;;  %v6721_v55 = vrot.slane %v6707_v11, %v11477_v26 }
 0x5f9   : > { %v13196_v43 = vpop.f32.mrf.mxu0 }
 0x5fb   : > { %v10080_v34 = vpop.f32.mrf.mxu0 }
 0x5fd   : > { %v13198_v29 = vpop.f32.mrf.mxu0 }
 0x5ff   : > { %v10081_v60 = vpop.f32.mrf.mxu0 }
 0x607   : > { %v13200_v46 = vpop.f32.mrf.mxu0 }
 0x608   : > { %v6103_v56 = vpop.f32.mrf.mxu1 }
 0x609   : > { %v6654_v8 = vcombine.low %v6015_v37, %v6103_v56  ;;  %v6655_v32 = vcombine.high %v6015_v37, %v6103_v56  ;;  %v10092_v42 = vpop.f32.mrf.mxu0 }
 0x60a   : > { %v10074_v3 = vpop.f32.mrf.mxu1 }
 0x60b   : > { %v6662_v40 = vrot.slane %v6654_v8, %v11477_v26  ;;  %v6669_v13 = vrot.slane %v6655_v32, %v11477_v26  ;;  %v13206_v20 = vpop.f32.mrf.mxu0 }
 0x60c   : > { %v6106_v36 = vpop.f32.mrf.mxu1 }
 0x60d   : > { %v6670_v58 = vcombine.low %v6646_v1, %v6662_v40  ;;  %v6671_v33 = vcombine.high %v6646_v1, %v6662_v40  ;;  %v6686_v35 = vcombine.low %v6653_v59, %v6669_v13  ;;  %v6687_v41 = vcombine.high %v6653_v59, %v6669_v13  ;;  %v10093_v45 = vpop.f32.mrf.mxu0 }
 0x60e   : > { %v6722_v10 = vcombine.low %v6018_v53, %v6106_v36  ;;  %v6723_v28 = vcombine.high %v6018_v53, %v6106_v36  ;;  %v10075_v27 = vpop.f32.mrf.mxu1 }
 0x60f   : > { %v6678_v62 = vrot.slane %v6670_v58, %v11491_v51  ;;  %v6685_v14 = vrot.slane %v6671_v33, %v11491_v51  ;;  %v6694_v12 = vrot.slane %v6686_v35, %v11491_v51  ;;  %v6701_v17 = vrot.slane %v6687_v41, %v11491_v51 }
 0x610   : > { %v6730_v23 = vrot.slane %v6722_v10, %v11477_v26  ;;  %v6737_v16 = vrot.slane %v6723_v28, %v11477_v26  ;;  %v13216_v31 = vpop.f32.mrf.mxu1 }
 0x611   : > { %v7182_v5 = vcombine.low %v6678_v62, %v6685_v14  ;;  %v9629_v49 = vcombine.high %v6678_v62, %v6685_v14  ;;  %v7198_v25 = vcombine.low %v6694_v12, %v6701_v17  ;;  %v9630_v6 = vcombine.high %v6694_v12, %v6701_v17 }
 0x612   : > { %v6738_v0 = vcombine.low %v6714_v15, %v6730_v23  ;;  %v6739_v44 = vcombine.high %v6714_v15, %v6730_v23  ;;  %v6754_v61 = vcombine.low %v6721_v55, %v6737_v16  ;;  %v6755_v18 = vcombine.high %v6721_v55, %v6737_v16  ;;  %v10086_v4 = vpop.f32.mrf.mxu1 }
 0x613   : > { %v7189_v48 = vrot.slane %v7182_v5, %v11477_v26  ;;  %v7197_v24 = vrot.slane %v9629_v49, %v11477_v26  ;;  %v7205_v2 = vrot.slane %v7198_v25, %v11477_v26  ;;  %v7213_v52 = vrot.slane %v9630_v6, %v11477_v26  ;;  %v10365_v25 = vld [vmem:[%s11120_s20 + $0x38] sm:$0xff]   ;;  %v10366_v6 = vld [vmem:[%s11120_s20 + $0x30] sm:$0xff]  }
 0x614   : > { %v6746_v47 = vrot.slane %v6738_v0, %v11491_v51  ;;  %v6753_v54 = vrot.slane %v6739_v44, %v11491_v51  ;;  %v6762_v38 = vrot.slane %v6754_v61, %v11491_v51  ;;  %v6769_v50 = vrot.slane %v6755_v18, %v11491_v51  ;;  %v13226_v37 = vpop.f32.mrf.mxu1  ;;  %10148 = vmatprep.subr.bf16.mxu0 %v10365_v25 }
 0x615   : > { %v7215_v19 = vcombine.high %v7189_v48, %v7197_v24  ;;  %v7231_v7 = vcombine.high %v7205_v2, %v7213_v52  ;;  %v7214_v63 = vcombine.low %v7189_v48, %v7197_v24  ;;  %v7230_v53 = vcombine.low %v7205_v2, %v7213_v52  ;;  %10149 = vmatpush3.bf16.msra.mxu0 %v10365_v25  ;;  %v10367_v2 = vld [vmem:[%s11120_s20 + $0x28] sm:$0xff]  }
 0x616   : > { %v7250_v57 = vcombine.low %v6746_v47, %v6753_v54  ;;  %v9631_v9 = vcombine.high %v6746_v47, %v6753_v54  ;;  %v7266_v34 = vcombine.low %v6762_v38, %v6769_v50  ;;  %v9632_v60 = vcombine.high %v6762_v38, %v6769_v50  ;;  %v10087_v30 = vpop.f32.mrf.mxu1  ;;  %10150 = vmatprep.subr.bf16.mxu0 %v10366_v6 }
 0x617   : > { %v13229_v21 = vrot.slane %v7214_v63, %v11491_v51  ;;  %v13232_v56 = vrot.slane %v7230_v53, %v11491_v51  ;;  %v7229_v1 = vrot.slane %v7215_v19, %v11491_v51  ;;  %v7245_v59 = vrot.slane %v7231_v7, %v11491_v51 }
 0x618   : > { %v7257_v8 = vrot.slane %v7250_v57, %v11477_v26  ;;  %v7265_v32 = vrot.slane %v9631_v9, %v11477_v26  ;;  %v7273_v42 = vrot.slane %v7266_v34, %v11477_v26  ;;  %v7281_v3 = vrot.slane %v9632_v60, %v11477_v26  ;;  %v13242_v13 = vpop.f32.mrf.mxu0  ;;  %v10368_v34 = vld [vmem:[%s11120_s20 + $0x20] sm:$0xff]  }
 0x619   : > { %v7246_v40 = vcombine.low %v13229_v21, %v13232_v56  ;;  %v7248_v28 = vcombine.low %v7229_v1, %v7245_v59  ;;  %v7247_v14 = vcombine.high %v13229_v21, %v13232_v56  ;;  %v7249_v5 = vcombine.high %v7229_v1, %v7245_v59  ;;  %10151 = vmatpush3.bf16.msra.mxu0 %v10366_v6 }
 0x61a   : > { %v7283_v22 = vcombine.high %v7257_v8, %v7265_v32  ;;  %v7299_v11 = vcombine.high %v7273_v42, %v7281_v3  ;;  %v7282_v36 = vcombine.low %v7257_v8, %v7265_v32  ;;  %v7298_v58 = vcombine.low %v7273_v42, %v7281_v3  ;;  %v10104_v33 = vpop.f32.mrf.mxu0  ;;  %10152 = vmatprep.subr.bf16.mxu0 %v10367_v2 }
 0x61b   : > { %v6774_v0 = vcombine.low %v13196_v43, %v13200_v46  ;;  %v6775_v44 = vcombine.high %v13196_v43, %v13200_v46  ;;  %v6842_v50 = vcombine.low %v13198_v29, %v13206_v20 }
 0x61c   : > { %v7297_v35 = vrot.slane %v7283_v22, %v11491_v51  ;;  %v7313_v41 = vrot.slane %v7299_v11, %v11491_v51  ;;  %v13247_v45 = vrot.slane %v7282_v36, %v11491_v51  ;;  %v13250_v10 = vrot.slane %v7298_v58, %v11491_v51  ;;  %v13252_v27 = vpop.f32.mrf.mxu0 }
 0x61d   : > { %v6782_v47 = vrot.slane %v6774_v0, %v11477_v26  ;;  %v6789_v54 = vrot.slane %v6775_v44, %v11477_v26  ;;  %v6850_v3 = vrot.slane %v6842_v50, %v11477_v26  ;;  %10153 = vmatpush3.bf16.msra.mxu0 %v10367_v2 }
 0x61e   : > { %v7316_v62 = vcombine.low %v7297_v35, %v7313_v41  ;;  %v7315_v12 = vcombine.high %v13247_v45, %v13250_v10  ;;  %v7314_v17 = vcombine.low %v13247_v45, %v13250_v10  ;;  %v10105_v15 = vpop.f32.mrf.mxu0  ;;  %v7317_v16 = vcombine.high %v7297_v35, %v7313_v41  ;;  %10154 = vmatprep.subr.bf16.mxu0 %v10368_v34  ;;  %v10369_v35 = vld [vmem:[%s11120_s20 + $0x18] sm:$0xff]  }
 0x620   : > { %v10278_v55 = vpack.i.bf16 %v7316_v62, %v7248_v28  ;;  %v10273_v23 = vpack.i.bf16 %v7315_v12, %v7247_v14  ;;  %v10283_v49 = vpack.i.bf16 %v7317_v16, %v7249_v5 }
 0x621   : > { %10155 = vmatpush3.bf16.msra.mxu0 %v10368_v34 }
 0x622   : > { %10279 = vrot.lane.b32.xlu1 %v10278_v55, %s10912_s12  ;;  %10274 = vrot.lane.b32.xlu0 %v10273_v23, %s10914_s30 }
 0x623   : > { %10156 = vmatprep.subr.bf16.mxu0 %v10369_v35 }
 0x625   : > { %10157 = vmatpush3.bf16.msra.mxu0 %v10369_v35 }
 0x626   : > { %10284 = vrot.lane.b32.xlu0 %v10283_v49, %s10913_s10 }
 0x629   : > { %v13269_v61 = vpop.f32.mrf.mxu0 }
 0x62a   : > { %v6279_v18 = vpop.f32.mrf.mxu1  ;;  %v6911_v35 = vcombine.high %v13242_v13, %v13269_v61 }
 0x62b   : > { %v6790_v4 = vcombine.low %v13216_v31, %v6279_v18  ;;  %v6791_v48 = vcombine.high %v13216_v31, %v6279_v18  ;;  %v10116_v24 = vpop.f32.mrf.mxu0  ;;  %v6843_v31 = vcombine.high %v13198_v29, %v13206_v20 }
 0x62c   : > { %v10098_v52 = vpop.f32.mrf.mxu1 }
 0x62d   : > { %v6798_v43 = vrot.slane %v6790_v4, %v11477_v26  ;;  %v6805_v46 = vrot.slane %v6791_v48, %v11477_v26  ;;  %v13278_v38 = vpop.f32.mrf.mxu0  ;;  %v6857_v1 = vrot.slane %v6843_v31, %v11477_v26 }
 0x62e   : > { %v6282_v19 = vpop.f32.mrf.mxu1 }
 0x62f   : > { %v6806_v7 = vcombine.low %v6782_v47, %v6798_v43  ;;  %v6807_v63 = vcombine.high %v6782_v47, %v6798_v43  ;;  %v6822_v53 = vcombine.low %v6789_v54, %v6805_v46  ;;  %v6823_v57 = vcombine.high %v6789_v54, %v6805_v46  ;;  %v10117_v9 = vpop.f32.mrf.mxu0  ;;  %v10370_v43 = vld [vmem:[%s11120_s20 + $0x10] sm:$0xff]  }
 0x630   : > { %v6858_v60 = vcombine.low %v13226_v37, %v6282_v19  ;;  %v6859_v30 = vcombine.high %v13226_v37, %v6282_v19  ;;  %v10099_v8 = vpop.f32.mrf.mxu1  ;;  %10158 = vmatprep.subr.bf16.mxu0 %v10370_v43 }
 0x631   : > { %v6814_v32 = vrot.slane %v6806_v7, %v11491_v51  ;;  %v6821_v42 = vrot.slane %v6807_v63, %v11491_v51  ;;  %v6830_v29 = vrot.slane %v6822_v53, %v11491_v51  ;;  %v6837_v20 = vrot.slane %v6823_v57, %v11491_v51  ;;  %10159 = vmatpush3.bf16.msra.mxu0 %v10370_v43 }
 0x632   : > { %v6866_v59 = vrot.slane %v6858_v60, %v11477_v26  ;;  %v6873_v22 = vrot.slane %v6859_v30, %v11477_v26  ;;  %v13295_v11 = vpop.f32.mrf.mxu1  ;;  %v10371_v30 = vld [vmem:[%s11120_s20 + $0x8] sm:$0xff]  }
 0x633   : > { %v7318_v37 = vcombine.low %v6814_v32, %v6821_v42  ;;  %v9633_v36 = vcombine.high %v6814_v32, %v6821_v42  ;;  %v7334_v58 = vcombine.low %v6830_v29, %v6837_v20  ;;  %v9634_v33 = vcombine.high %v6830_v29, %v6837_v20  ;;  %10160 = vmatprep.subr.bf16.mxu0 %v10371_v30 }
 0x634   : > { %v6874_v41 = vcombine.low %v6850_v3, %v6866_v59  ;;  %v6875_v28 = vcombine.high %v6850_v3, %v6866_v59  ;;  %v6890_v62 = vcombine.low %v6857_v1, %v6873_v22  ;;  %v6891_v14 = vcombine.high %v6857_v1, %v6873_v22  ;;  %v10110_v12 = vpop.f32.mrf.mxu1 }
 0x635   : > { %v7325_v15 = vrot.slane %v7318_v37, %v11477_v26  ;;  %v7333_v55 = vrot.slane %v9633_v36, %v11477_v26  ;;  %v7341_v23 = vrot.slane %v7334_v58, %v11477_v26  ;;  %v7349_v16 = vrot.slane %v9634_v33, %v11477_v26  ;;  %10161 = vmatpush3.bf16.msra.mxu0 %v10371_v30  ;;  %v10372_v58 = vld [vmem:[%s11120_s20] sm:$0xff]  }
 0x636   : > { %v6882_v5 = vrot.slane %v6874_v41, %v11491_v51  ;;  %v6889_v49 = vrot.slane %v6875_v28, %v11491_v51  ;;  %v6898_v25 = vrot.slane %v6890_v62, %v11491_v51  ;;  %v6905_v6 = vrot.slane %v6891_v14, %v11491_v51  ;;  %v13306_v0 = vpop.f32.mrf.mxu1  ;;  %10162 = vmatprep.subr.bf16.mxu0 %v10372_v58 }
 0x637   : > { %v7350_v44 = vcombine.low %v7325_v15, %v7333_v55  ;;  %v7366_v18 = vcombine.low %v7341_v23, %v7349_v16  ;;  %v7351_v7 = vcombine.high %v7325_v15, %v7333_v55  ;;  %v7367_v63 = vcombine.high %v7341_v23, %v7349_v16 }
 0x638   : > { %v7386_v4 = vcombine.low %v6882_v5, %v6889_v49  ;;  %v9635_v48 = vcombine.high %v6882_v5, %v6889_v49  ;;  %v7402_v24 = vcombine.low %v6898_v25, %v6905_v6  ;;  %v9636_v2 = vcombine.high %v6898_v25, %v6905_v6  ;;  %v10111_v52 = vpop.f32.mrf.mxu1 }
 0x639   : > { %v13309_v47 = vrot.slane %v7350_v44, %v11491_v51  ;;  %v13312_v54 = vrot.slane %v7366_v18, %v11491_v51  ;;  %v7365_v20 = vrot.slane %v7351_v7, %v11491_v51  ;;  %v7381_v59 = vrot.slane %v7367_v63, %v11491_v51  ;;  %10163 = vmatpush3.bf16.msra.mxu0 %v10372_v58 }
 0x63a   : > { %v7393_v46 = vrot.slane %v7386_v4, %v11477_v26  ;;  %v7401_v50 = vrot.slane %v9635_v48, %v11477_v26  ;;  %v7409_v31 = vrot.slane %v7402_v24, %v11477_v26  ;;  %v7417_v19 = vrot.slane %v9636_v2, %v11477_v26 }
 0x63b   : > { %v7382_v53 = vcombine.low %v13309_v47, %v13312_v54  ;;  %v7383_v3 = vcombine.high %v13309_v47, %v13312_v54  ;;  %v6910_v33 = vcombine.low %v13242_v13, %v13269_v61  ;;  %v7384_v28 = vcombine.low %v7365_v20, %v7381_v59 }
 0x63c   : > { %v7418_v57 = vcombine.low %v7393_v46, %v7401_v50  ;;  %v7434_v9 = vcombine.low %v7409_v31, %v7417_v19  ;;  %v7419_v34 = vcombine.high %v7393_v46, %v7401_v50  ;;  %v7435_v60 = vcombine.high %v7409_v31, %v7417_v19 }
 0x63d   : > { %v6918_v23 = vrot.slane %v6910_v33, %v11477_v26  ;;  %v6925_v16 = vrot.slane %v6911_v35, %v11477_v26  ;;  %v6978_v61 = vcombine.low %v13252_v27, %v13278_v38  ;;  %v6979_v49 = vcombine.high %v13252_v27, %v13278_v38 }
 0x63e   : > { %v13323_v8 = vrot.slane %v7418_v57, %v11491_v51  ;;  %v13326_v32 = vrot.slane %v7434_v9, %v11491_v51  ;;  %v7433_v42 = vrot.slane %v7419_v34, %v11491_v51  ;;  %v7449_v29 = vrot.slane %v7435_v60, %v11491_v51 }
 0x63f   : > { %v6986_v50 = vrot.slane %v6978_v61, %v11477_v26  ;;  %v6993_v31 = vrot.slane %v6979_v49, %v11477_v26 }
 0x640   : > { %v7451_v1 = vcombine.high %v13323_v8, %v13326_v32  ;;  %v7450_v22 = vcombine.low %v13323_v8, %v13326_v32  ;;  %v7452_v36 = vcombine.low %v7433_v42, %v7449_v29  ;;  %v7453_v55 = vcombine.high %v7433_v42, %v7449_v29 }
 0x642   : > { %v10288_v37 = vpack.i.bf16 %v7451_v1, %v7383_v3  ;;  %v10293_v15 = vpack.i.bf16 %v7452_v36, %v7384_v28 }
 0x644   : > { %10289 = vrot.lane.b32.xlu1 %v10288_v37, %s10914_s30 }
 0x645   : > { %v6455_v41 = vpop.f32.mrf.mxu1 }
 0x646   : > { %v6926_v62 = vcombine.low %v13295_v11, %v6455_v41  ;;  %v6927_v14 = vcombine.high %v13295_v11, %v6455_v41  ;;  %v7385_v11 = vcombine.high %v7365_v20, %v7381_v59 }
 0x647   : > { %v10122_v12 = vpop.f32.mrf.mxu1 }
 0x648   : > { %v6934_v5 = vrot.slane %v6926_v62, %v11477_v26  ;;  %v6941_v13 = vrot.slane %v6927_v14, %v11477_v26  ;;  %10294 = vrot.lane.b32.xlu1 %v10293_v15, %s10912_s12  ;;  %v10298_v52 = vpack.i.bf16 %v7453_v55, %v7385_v11 }
 0x649   : > { %v6458_v25 = vpop.f32.mrf.mxu1 }
 0x64a   : > { %v6942_v6 = vcombine.low %v6918_v23, %v6934_v5  ;;  %v6943_v44 = vcombine.high %v6918_v23, %v6934_v5  ;;  %v6958_v18 = vcombine.low %v6925_v16, %v6941_v13  ;;  %v6959_v4 = vcombine.high %v6925_v16, %v6941_v13 }
 0x64b   : > { %v6994_v48 = vcombine.low %v13306_v0, %v6458_v25  ;;  %v6995_v24 = vcombine.high %v13306_v0, %v6458_v25  ;;  %v10123_v2 = vpop.f32.mrf.mxu1 }
 0x64c   : > { %v6950_v43 = vrot.slane %v6942_v6, %v11491_v51  ;;  %v6957_v46 = vrot.slane %v6943_v44, %v11491_v51  ;;  %v6966_v27 = vrot.slane %v6958_v18, %v11491_v51  ;;  %v6973_v38 = vrot.slane %v6959_v4, %v11491_v51  ;;  %10299 = vrot.lane.b32.xlu1 %v10298_v52, %s10913_s10 }
 0x64d   : > { %v7002_v19 = vrot.slane %v6994_v48, %v11477_v26  ;;  %v7009_v7 = vrot.slane %v6995_v24, %v11477_v26 }
 0x64e   : > { %v7454_v0 = vcombine.low %v6950_v43, %v6957_v46  ;;  %v9637_v63 = vcombine.high %v6950_v43, %v6957_v46  ;;  %v7470_v57 = vcombine.low %v6966_v27, %v6973_v38  ;;  %v9638_v9 = vcombine.high %v6966_v27, %v6973_v38 }
 0x64f   : > { %v7010_v34 = vcombine.low %v6986_v50, %v7002_v19  ;;  %v7011_v60 = vcombine.high %v6986_v50, %v7002_v19  ;;  %v7026_v30 = vcombine.low %v6993_v31, %v7009_v7  ;;  %v7027_v42 = vcombine.high %v6993_v31, %v7009_v7 }
 0x650   : > { %v7461_v29 = vrot.slane %v7454_v0, %v11477_v26  ;;  %v7469_v20 = vrot.slane %v9637_v63, %v11477_v26  ;;  %v7477_v3 = vrot.slane %v7470_v57, %v11477_v26  ;;  %v7485_v1 = vrot.slane %v9638_v9, %v11477_v26 }
 0x651   : > { %v7018_v59 = vrot.slane %v7010_v34, %v11491_v51  ;;  %v7025_v37 = vrot.slane %v7011_v60, %v11491_v51  ;;  %v7034_v36 = vrot.slane %v7026_v30, %v11491_v51  ;;  %v7041_v58 = vrot.slane %v7027_v42, %v11491_v51 }
 0x652   : > { %v7486_v33 = vcombine.low %v7461_v29, %v7469_v20  ;;  %v7502_v35 = vcombine.low %v7477_v3, %v7485_v1  ;;  %v7487_v13 = vcombine.high %v7461_v29, %v7469_v20  ;;  %v7503_v61 = vcombine.high %v7477_v3, %v7485_v1 }
 0x653   : > { %v7522_v41 = vcombine.low %v7018_v59, %v7025_v37  ;;  %v9639_v28 = vcombine.high %v7018_v59, %v7025_v37  ;;  %v7538_v62 = vcombine.low %v7034_v36, %v7041_v58  ;;  %v9640_v14 = vcombine.high %v7034_v36, %v7041_v58 }
 0x654   : > { %v13375_v12 = vrot.slane %v7486_v33, %v11491_v51  ;;  %v13378_v15 = vrot.slane %v7502_v35, %v11491_v51  ;;  %v7501_v43 = vrot.slane %v7487_v13, %v11491_v51  ;;  %v7517_v38 = vrot.slane %v7503_v61, %v11491_v51 }
 0x655   : > { %v7529_v55 = vrot.slane %v7522_v41, %v11477_v26  ;;  %v7537_v23 = vrot.slane %v9639_v28, %v11477_v26  ;;  %v7545_v16 = vrot.slane %v7538_v62, %v11477_v26  ;;  %v7553_v5 = vrot.slane %v9640_v14, %v11477_v26 }
 0x656   : > { %v7518_v49 = vcombine.low %v13375_v12, %v13378_v15  ;;  %v7519_v46 = vcombine.high %v13375_v12, %v13378_v15  ;;  %v7520_v9 = vcombine.low %v7501_v43, %v7517_v38  ;;  %v7521_v20 = vcombine.high %v7501_v43, %v7517_v38 }
 0x657   : > { %v7554_v25 = vcombine.low %v7529_v55, %v7537_v23  ;;  %v7570_v11 = vcombine.low %v7545_v16, %v7553_v5  ;;  %v7555_v6 = vcombine.high %v7529_v55, %v7537_v23  ;;  %v7571_v44 = vcombine.high %v7545_v16, %v7553_v5 }
 0x659   : > { %v13387_v18 = vrot.slane %v7554_v25, %v11491_v51  ;;  %v13390_v4 = vrot.slane %v7570_v11, %v11491_v51  ;;  %v7569_v48 = vrot.slane %v7555_v6, %v11491_v51  ;;  %v7585_v24 = vrot.slane %v7571_v44, %v11491_v51 }
 0x65a   : > { %v6499_v2 = vpop.f32.mrf.mxu0  ;;  %v6543_v52 = vpop.f32.mrf.mxu1 }
 0x65b   : > { %v7587_v27 = vcombine.high %v13387_v18, %v13390_v4  ;;  %v7586_v50 = vcombine.low %v13387_v18, %v13390_v4  ;;  %v7588_v0 = vcombine.low %v7569_v48, %v7585_v24  ;;  %v7589_v42 = vcombine.high %v7569_v48, %v7585_v24 }
 0x65c   : > { %v10128_v31 = vpop.f32.mrf.mxu0  ;;  %v10134_v19 = vpop.f32.mrf.mxu1 }
 0x65d   : > { %v10303_v7 = vpack.i.bf16 %v7587_v27, %v7519_v46  ;;  %v10308_v30 = vpack.i.bf16 %v7588_v0, %v7520_v9  ;;  %v10313_v1 = vpack.i.bf16 %v7589_v42, %v7521_v20 }
 0x65e   : > { %v6502_v63 = vpop.f32.mrf.mxu0  ;;  %v6546_v57 = vpop.f32.mrf.mxu1 }
 0x65f   : > { %10304 = vrot.lane.b32.xlu0 %v10303_v7, %s10914_s30 }
 0x660   : > { %v10129_v34 = vpop.f32.mrf.mxu0  ;;  %v10135_v60 = vpop.f32.mrf.mxu1 }
 0x662   : > { %v6631_v29 = vpop.f32.mrf.mxu1 }
 0x663   : > { %10309 = vrot.lane.b32.xlu0 %v10308_v30, %s10912_s12  ;;  %v7062_v36 = vcombine.low %v6543_v52, %v6631_v29  ;;  %v7063_v58 = vcombine.high %v6543_v52, %v6631_v29 }
 0x664   : > { %v10146_v3 = vpop.f32.mrf.mxu1 }
 0x665   : > { %v7070_v62 = vrot.slane %v7062_v36, %v11477_v26  ;;  %v7077_v14 = vrot.slane %v7063_v58, %v11477_v26 }
 0x666   : > { %v6634_v59 = vpop.f32.mrf.mxu1 }
 0x667   : > { %10314 = vrot.lane.b32.xlu0 %v10313_v1, %s10913_s10  ;;  %v7130_v16 = vcombine.low %v6546_v57, %v6634_v59  ;;  %v7131_v5 = vcombine.high %v6546_v57, %v6634_v59 }
 0x668   : > { %v10147_v37 = vpop.f32.mrf.mxu1 }
 0x669   : > { %v7138_v27 = vrot.slane %v7130_v16, %v11477_v26  ;;  %v7145_v38 = vrot.slane %v7131_v5, %v11477_v26 }
 0x686   : > { %v6587_v33 = vpop.f32.mrf.mxu0 }
 0x687   : > { %v7046_v35 = vcombine.low %v6499_v2, %v6587_v33  ;;  %v7047_v41 = vcombine.high %v6499_v2, %v6587_v33 }
 0x688   : > { %v10140_v28 = vpop.f32.mrf.mxu0 }
 0x689   : > { %v7054_v55 = vrot.slane %v7046_v35, %v11477_v26  ;;  %v7061_v23 = vrot.slane %v7047_v41, %v11477_v26 }
 0x68a   : > { %v6590_v13 = vpop.f32.mrf.mxu0 }
 0x68b   : > { %v7078_v61 = vcombine.low %v7054_v55, %v7070_v62  ;;  %v7079_v25 = vcombine.high %v7054_v55, %v7070_v62  ;;  %v7094_v11 = vcombine.low %v7061_v23, %v7077_v14  ;;  %v7095_v6 = vcombine.high %v7061_v23, %v7077_v14 }
 0x68c   : > { %v7114_v44 = vcombine.low %v6502_v63, %v6590_v13  ;;  %v7115_v48 = vcombine.high %v6502_v63, %v6590_v13  ;;  %v10141_v24 = vpop.f32.mrf.mxu0 }
 0x68d   : > { %v7086_v2 = vrot.slane %v7078_v61, %v11491_v51  ;;  %v7093_v52 = vrot.slane %v7079_v25, %v11491_v51  ;;  %v7102_v43 = vrot.slane %v7094_v11, %v11491_v51  ;;  %v7109_v46 = vrot.slane %v7095_v6, %v11491_v51 }
 0x68e   : > { %v7122_v31 = vrot.slane %v7114_v44, %v11477_v26  ;;  %v7129_v19 = vrot.slane %v7115_v48, %v11477_v26 }
 0x68f   : > { %v7590_v7 = vcombine.low %v7086_v2, %v7093_v52  ;;  %v9641_v0 = vcombine.high %v7086_v2, %v7093_v52  ;;  %v7606_v63 = vcombine.low %v7102_v43, %v7109_v46  ;;  %v9642_v57 = vcombine.high %v7102_v43, %v7109_v46 }
 0x690   : > { %v7146_v9 = vcombine.low %v7122_v31, %v7138_v27  ;;  %v7147_v34 = vcombine.high %v7122_v31, %v7138_v27  ;;  %v7162_v60 = vcombine.low %v7129_v19, %v7145_v38  ;;  %v7163_v30 = vcombine.high %v7129_v19, %v7145_v38 }
 0x691   : > { %v7597_v42 = vrot.slane %v7590_v7, %v11477_v26  ;;  %v7605_v29 = vrot.slane %v9641_v0, %v11477_v26  ;;  %v7613_v20 = vrot.slane %v7606_v63, %v11477_v26  ;;  %v7621_v3 = vrot.slane %v9642_v57, %v11477_v26 }
 0x692   : > { %v7154_v1 = vrot.slane %v7146_v9, %v11491_v51  ;;  %v7161_v59 = vrot.slane %v7147_v34, %v11491_v51  ;;  %v7170_v37 = vrot.slane %v7162_v60, %v11491_v51  ;;  %v7177_v36 = vrot.slane %v7163_v30, %v11491_v51 }
 0x693   : > { %v7622_v58 = vcombine.low %v7597_v42, %v7605_v29  ;;  %v7638_v33 = vcombine.low %v7613_v20, %v7621_v3  ;;  %v7623_v35 = vcombine.high %v7597_v42, %v7605_v29  ;;  %v7639_v16 = vcombine.high %v7613_v20, %v7621_v3 }
 0x694   : > { %v10275_v41 = vpop.permute.xlu0 %10274  ;;  %v7658_v28 = vcombine.low %v7154_v1, %v7161_v59  ;;  %v9643_v62 = vcombine.high %v7154_v1, %v7161_v59  ;;  %v7674_v14 = vcombine.low %v7170_v37, %v7177_v36  ;;  %v9644_v55 = vcombine.high %v7170_v37, %v7177_v36  ;;  %v10280_v23 = vpop.permute.xlu1 %10279 }
 0x695   : > { %v13430_v11 = vrot.slane %v7622_v58, %v11491_v51  ;;  %v13433_v6 = vrot.slane %v7638_v33, %v11491_v51  ;;  %v7637_v44 = vrot.slane %v7623_v35, %v11491_v51  ;;  %v10282_v48 = vunpack.i.h.bf16 %v10280_v23 }
 0x696   : > { %v7665_v5 = vrot.slane %v7658_v28, %v11477_v26  ;;  %v7673_v13 = vrot.slane %v9643_v62, %v11477_v26  ;;  %v7681_v61 = vrot.slane %v7674_v14, %v11477_v26  ;;  %v7689_v25 = vrot.slane %v9644_v55, %v11477_v26 }
 0x697   : > { %v10281_v27 = vunpack.i.l.bf16 %v10280_v23  ;;  %v10277_v38 = vunpack.i.h.bf16 %v10275_v41  ;;  %v10276_v31 = vunpack.i.l.bf16 %v10275_v41  ;;  %v7654_v60 = vcombine.low %v13430_v11, %v13433_v6 }
 0x698   : > { %v10285_v24 = vpop.permute.xlu0 %10284  ;;  %v7690_v2 = vcombine.low %v7665_v5, %v7673_v13  ;;  %v7706_v52 = vcombine.low %v7681_v61, %v7689_v25  ;;  %v7691_v43 = vcombine.high %v7665_v5, %v7673_v13  ;;  %v7707_v46 = vcombine.high %v7681_v61, %v7689_v25 }
 0x699   : > { %v10287_v19 = vunpack.i.h.bf16 %v10285_v24  ;;  %v7823_v57 = vsel %vm4769_vm1, %v7314_v17, %v10277_v38  ;;  %v7822_v9 = vsel %vm4769_vm1, %v7246_v40, %v10276_v31  ;;  %v10286_v34 = vunpack.i.l.bf16 %v10285_v24 }
 0x69a   : > { %v13437_v26 = vrot.slane %v7690_v2, %v11491_v51  ;;  %v13440_v7 = vrot.slane %v7706_v52, %v11491_v51  ;;  %v7705_v0 = vrot.slane %v7691_v43, %v11491_v51  ;;  %v7721_v63 = vrot.slane %v7707_v46, %v11491_v51 }
 0x69b   : > { %v7655_v30 = vcombine.high %v13430_v11, %v13433_v6  ;;  %v7653_v29 = vrot.slane %v7639_v16, %v11491_v51  ;;  %v7831_v45 = vsel %vm7830_vm5, %v7822_v9, %v10281_v27  ;;  %v7832_v10 = vsel %vm7830_vm5, %v7823_v57, %v10282_v48  ;;  %v9645_v11 = vld [vmem:[%s14157_s22] ss:$0 sm:$0xff] }
 0x69c   : > { %v7723_v42 = vcombine.high %v13437_v26, %v13440_v7  ;;  %v7840_v21 = vsel %vm7839_vm6, %v7831_v45, %v10286_v34  ;;  %v7722_v56 = vcombine.low %v13437_v26, %v13440_v7  ;;  %v7724_v17 = vcombine.low %v7705_v0, %v7721_v63 }
 0x69d   : > { %v7841_v20 = vsel %vm7839_vm6, %v7832_v10, %v10287_v19  ;;  %v7656_v1 = vcombine.low %v7637_v44, %v7653_v29  ;;  %v7725_v51 = vcombine.high %v7705_v0, %v7721_v63  ;;  %v7657_v37 = vcombine.high %v7637_v44, %v7653_v29 }
 0x69e   : > { %v10318_v40 = vpack.i.bf16 %v7723_v42, %v7655_v30  ;;  %v7848_v3 = vpack.c.bf16 %v7841_v20, %v7840_v21 }
 0x69f   : > { %v10323_v59 = vpack.i.bf16 %v7724_v17, %v7656_v1  ;;  %v10328_v36 = vpack.i.bf16 %v7725_v51, %v7657_v37  ;;  %v10742_v1 = vld [vmem:[#allocation7 + $0x10] sm:$0xff]  ;;  %v10743_v37 = vld [vmem:[#allocation7 + $0x8] sm:$0xff] }
 0x6a0   : > { %10319 = vrot.lane.b32.xlu1 %v10318_v40, %s10914_s30  ;;  %10164 = vmatprep.mubr.bf16.mxu0 %v7848_v3  ;;  %v10741_v40 = vld [vmem:[#allocation7] sm:$0xff] }
 0x6a4   : > { %10324 = vrot.lane.b32.xlu1 %v10323_v59, %s10912_s12 }
 0x6a8   : > { %10329 = vrot.lane.b32.xlu1 %v10328_v36, %s10913_s10 }
 0x6b6   : > { %v10290_v58 = vpop.permute.xlu1 %10289 }
 0x6b7   : > { %v10292_v35 = vunpack.i.h.bf16 %v10290_v58  ;;  %v10291_v41 = vunpack.i.l.bf16 %v10290_v58  ;;  %v10744_v58 = vld [vmem:[#allocation7 + $0x18] sm:$0xff] }
 0x6b9   : > { %v7824_v55 = vsel %vm4769_vm1, %v7382_v53, %v10291_v41  ;;  %v7825_v23 = vsel %vm4769_vm1, %v7450_v22, %v10292_v35 }
 0x6ba   : > { %v10295_v33 = vpop.permute.xlu1 %10294 }
 0x6bb   : > { %v10297_v28 = vunpack.i.h.bf16 %v10295_v33  ;;  %v10296_v62 = vunpack.i.l.bf16 %v10295_v33 }
 0x6bd   : > { %v7833_v13 = vsel %vm7830_vm5, %v7824_v55, %v10296_v62  ;;  %v7834_v61 = vsel %vm7830_vm5, %v7825_v23, %v10297_v28  ;;  %v10745_v55 = vld [vmem:[#allocation7 + $0x20] sm:$0xff] }
 0x6be   : > { %v10300_v14 = vpop.permute.xlu1 %10299 }
 0x6bf   : > { %v10302_v16 = vunpack.i.h.bf16 %v10300_v14  ;;  %v10301_v5 = vunpack.i.l.bf16 %v10300_v14 }
 0x6c1   : > { %v7842_v25 = vsel %vm7839_vm6, %v7833_v13, %v10301_v5  ;;  %v7843_v44 = vsel %vm7839_vm6, %v7834_v61, %v10302_v16  ;;  %v10746_v13 = vld [vmem:[#allocation7 + $0x30] sm:$0xff] }
 0x6c2   : > { %v7849_v48 = vpack.c.bf16 %v7843_v44, %v7842_v25  ;;  %v10747_v44 = vld [vmem:[#allocation7 + $0x28] sm:$0xff] }
 0x6c4   : > { %10165 = vmatmul.mubr.bf16.vlgmr.msra.gmra.mxu0 %v7849_v48 }
 0x6d1   : > { %v10305_v47 = vpop.permute.xlu0 %10304 }
 0x6d2   : > { %v10307_v53 = vunpack.i.h.bf16 %v10305_v47  ;;  %v10306_v24 = vunpack.i.l.bf16 %v10305_v47  ;;  %v10748_v47 = vld [vmem:[#allocation7 + $0x38] sm:$0xff] }
 0x6d4   : > { %v7827_v22 = vsel %vm4769_vm1, %v7586_v50, %v10307_v53  ;;  %v7826_v52 = vsel %vm4769_vm1, %v7518_v49, %v10306_v24  ;;  %v10373_v53 = vld [vmem:[%s11143_s5 + $0xe0] ss:$16 sps:$4 sm:$0xff]   ;;  %v10375_v24 = vld [vmem:[%s11143_s5 + $0xe4] ss:$16 sps:$4 sm:$0xff]  }
 0x6d5   : > { %v10310_v54 = vpop.permute.xlu0 %10309  ;;  %8332 = vmatprep.subr.bf16.mxu1 %v10375_v24 }
 0x6d6   : > { %v10312_v2 = vunpack.i.h.bf16 %v10310_v54  ;;  %v10311_v8 = vunpack.i.l.bf16 %v10310_v54  ;;  %8333 = vmatpush1.bf16.msra.mxu1 %v10373_v53 }
 0x6d8   : > { %v7835_v27 = vsel %vm7830_vm5, %v7826_v52, %v10311_v8  ;;  %v7836_v38 = vsel %vm7830_vm5, %v7827_v22, %v10312_v2  ;;  %v10376_v2 = vld [vmem:[%s11143_s5 + $0xe8] ss:$16 sps:$4 sm:$0xff]   ;;  %v10378_v8 = vld [vmem:[%s11143_s5 + $0xec] ss:$16 sps:$4 sm:$0xff]  }
 0x6d9   : > { %v10315_v32 = vpop.permute.xlu0 %10314  ;;  %8405 = vmatprep.subr.bf16.mxu0 %v10378_v8 }
 0x6da   : > { %v10317_v43 = vunpack.i.h.bf16 %v10315_v32  ;;  %v10316_v46 = vunpack.i.l.bf16 %v10315_v32  ;;  %8406 = vmatpush1.bf16.msra.mxu0 %v10376_v2 }
 0x6dc   : > { %v7844_v31 = vsel %vm7839_vm6, %v7835_v27, %v10316_v46  ;;  %v7845_v19 = vsel %vm7839_vm6, %v7836_v38, %v10317_v43 }
 0x6dd   : > { %v7850_v26 = vpack.c.bf16 %v7845_v19, %v7844_v31 }
 0x6df   : > { %10168 = vmatprep.mubr.bf16.mxu0 %v7850_v26 }
 0x712   : > { %v10320_v18 = vpop.permute.xlu1 %10319 }
 0x713   : > { %v10322_v50 = vunpack.i.h.bf16 %v10320_v18  ;;  %v10321_v7 = vunpack.i.l.bf16 %v10320_v18 }
 0x715   : > { %v7828_v0 = vsel %vm4769_vm1, %v7654_v60, %v10321_v7  ;;  %v7829_v63 = vsel %vm4769_vm1, %v7722_v56, %v10322_v50 }
 0x716   : > { %v10325_v4 = vpop.permute.xlu1 %10324 }
 0x717   : > { %v10327_v12 = vunpack.i.h.bf16 %v10325_v4  ;;  %v10326_v15 = vunpack.i.l.bf16 %v10325_v4 }
 0x719   : > { %v7837_v34 = vsel %vm7830_vm5, %v7828_v0, %v10326_v15  ;;  %v7838_v30 = vsel %vm7830_vm5, %v7829_v63, %v10327_v12  ;;  %v10381_v0 = vld [vmem:[%s11143_s5 + $0xc4] ss:$16 sps:$4 sm:$0xff]   ;;  %v10382_v63 = vld [vmem:[%s11143_s5 + $0xc8] ss:$16 sps:$4 sm:$0xff]  }
 0x71a   : > { %v10330_v49 = vpop.permute.xlu1 %10329  ;;  %8334 = vmatprep.subr.bf16.mxu1 %v10381_v0 }
 0x71b   : > { %v10332_v57 = vunpack.i.h.bf16 %v10330_v49  ;;  %v10331_v9 = vunpack.i.l.bf16 %v10330_v49  ;;  %v10379_v49 = vld [vmem:[%s11143_s5 + $0xc0] ss:$16 sps:$4 sm:$0xff]  }
 0x71c   : > { %8335 = vmatpush1.bf16.msra.mxu1 %v10379_v49 }
 0x71d   : > { %v7846_v42 = vsel %vm7839_vm6, %v7837_v34, %v10331_v9  ;;  %v7847_v29 = vsel %vm7839_vm6, %v7838_v30, %v10332_v57  ;;  %v10384_v57 = vld [vmem:[%s11143_s5 + $0xcc] ss:$16 sps:$4 sm:$0xff]   ;;  %v10385_v9 = vld [vmem:[%s11143_s5 + $0xa0] ss:$16 sps:$4 sm:$0xff]   ;;  %v10387_v34 = vld [vmem:[%s11143_s5 + $0xa4] ss:$16 sps:$4 sm:$0xff]  }
 0x71e   : > { %v7851_v45 = vpack.c.bf16 %v7847_v29, %v7846_v42  ;;  %8407 = vmatprep.subr.bf16.mxu0 %v10384_v57  ;;  %v10388_v30 = vld [vmem:[%s11143_s5 + $0xa8] ss:$16 sps:$4 sm:$0xff]   ;;  %v10390_v42 = vld [vmem:[%s11143_s5 + $0xac] ss:$16 sps:$4 sm:$0xff]   ;;  %8336 = vmatprep.subr.bf16.mxu1 %v10387_v34  ;;  %v10391_v29 = vld [vmem:[%s11143_s5 + $0x80] ss:$16 sps:$4 sm:$0xff]  }
 0x71f   : > { %8408 = vmatpush1.bf16.msra.mxu0 %v10382_v63 }
 0x720   : > { %10169 = vmatmul.mubr.bf16.gmra.mxu0 %v7851_v45  ;;  %8409 = vmatprep.subr.bf16.mxu0 %v10390_v42  ;;  %v10393_v45 = vld [vmem:[%s11143_s5 + $0x84] ss:$16 sps:$4 sm:$0xff]   ;;  %v9654_v42 = vld [vmem:[%s14158_s9] ss:$0 sm:$0xff] }
 0x721   : > { %8437 = vmatprep.mubr.bf16.mxu0 %v14154_v39  ;;  %8337 = vmatpush1.bf16.msra.mxu1 %v10385_v9 }
 0x722   : > { %8338 = vmatprep.subr.bf16.mxu1 %v10393_v45 }
 0x723   : > { %8410 = vmatpush1.bf16.msra.mxu0 %v10388_v30 }
 0x725   : > { %8339 = vmatpush1.bf16.msra.mxu1 %v10391_v29 }
 0x784   : > { %v10166_v10 = vpop.f32.mrf.mxu0 }
 0x785   : > { %v7966_v56 = vadd.f32 %v10166_v10, %v9645_v11  ;;  %v10394_v10 = vld [vmem:[%s11143_s5 + $0x88] ss:$16 sps:$4 sm:$0xff]  }
 0x786   : > { %v7957_v6 = vpop.f32.mrf.mxu0 }
 0x787   : > { %v7958_v60 = vadd.f32 %v9645_v11, %v7957_v6  ;;  %v13510_v59 = vadd.f32 %v10742_v1, %v7966_v56  ;;  %v10399_v6 = vld [vmem:[%s11143_s5 + $0x64] ss:$16 sps:$4 sm:$0xff]   ;;  %v10400_v56 = vld [vmem:[%s11143_s5 + $0x68] ss:$16 sps:$4 sm:$0xff]  }
 0x788   : > { %v10167_v21 = vpop.f32.mrf.mxu0  ;;  %8340 = vmatprep.subr.bf16.mxu1 %v10399_v6  ;;  %v10406_v1 = vld [vmem:[%s11143_s5 + $0x48] ss:$16 sps:$4 sm:$0xff]   ;;  %v9655_v6 = vld [vmem:[%s14159_s25] ss:$0 sm:$0xff] }
 0x789   : > { %v13507_v17 = vadd.f32 %v10741_v40, %v7958_v60  ;;  %v7969_v51 = vadd.f32 %v10167_v21, %v9645_v11  ;;  %v10402_v60 = vld [vmem:[%s11143_s5 + $0x6c] ss:$16 sps:$4 sm:$0xff]   ;;  %v10397_v21 = vld [vmem:[%s11143_s5 + $0x60] ss:$16 sps:$4 sm:$0xff]   ;;  %v10405_v40 = vld [vmem:[%s11143_s5 + $0x44] ss:$16 sps:$4 sm:$0xff]  }
 0x78a   : > { %v7960_v20 = vpop.f32.mrf.mxu0  ;;  %8341 = vmatpush1.bf16.msra.mxu1 %v10397_v21 }
 0x78b   : > { %v7961_v3 = vadd.f32 %v9645_v11, %v7960_v20  ;;  %7998 = vadd.xlane.f32.xlu0 %v13507_v17  ;;  %v13516_v33 = vadd.f32 %v10744_v58, %v7969_v51  ;;  %v10408_v20 = vld [vmem:[%s11143_s5 + $0x4c] ss:$16 sps:$4 sm:$0xff]   ;;  %8342 = vmatprep.subr.bf16.mxu1 %v10405_v40  ;;  %v10411_v51 = vld [vmem:[%s11143_s5 + $0x24] ss:$16 sps:$4 sm:$0xff]   ;;  %v10409_v58 = vld [vmem:[%s11143_s5 + $0x20] ss:$16 sps:$4 sm:$0xff]  }
 0x78d   : > { %v13512_v36 = vadd.f32 %v10743_v37, %v7961_v3  ;;  %v10403_v3 = vld [vmem:[%s11143_s5 + $0x40] ss:$16 sps:$4 sm:$0xff]   ;;  %v10414_v37 = vld [vmem:[%s11143_s5 + $0x2c] ss:$16 sps:$4 sm:$0xff]  }
 0x78e   : > { %8343 = vmatpush1.bf16.msra.mxu1 %v10403_v3 }
 0x78f   : > { %8000 = vadd.xlane.f32.xlu1 %v13512_v36  ;;  %8002 = vadd.xlane.f32.xlu0 %v13510_v59 }
 0x790   : > { %8344 = vmatprep.subr.bf16.mxu1 %v10411_v51 }
 0x792   : > { %8345 = vmatpush1.bf16.msra.mxu1 %v10409_v58 }
 0x793   : > { %8004 = vadd.xlane.f32.xlu0 %v13516_v33 }
 0x7e0   : > { %v10170_v35 = vpop.f32.mrf.mxu0 }
 0x7e1   : > { %v7982_v14 = vadd.f32 %v10170_v35, %v9645_v11  ;;  %v10412_v35 = vld [vmem:[%s11143_s5 + $0x28] ss:$16 sps:$4 sm:$0xff]  }
 0x7e2   : > { %v7973_v41 = vpop.f32.mrf.mxu0 }
 0x7e3   : > { %v7974_v28 = vadd.f32 %v9645_v11, %v7973_v41  ;;  %v13522_v61 = vadd.f32 %v10746_v13, %v7982_v14  ;;  %v10417_v41 = vld [vmem:[%s11143_s5 + $0x4] ss:$16 sps:$4 sm:$0xff]   ;;  %v10418_v14 = vld [vmem:[%s11143_s5 + $0x8] ss:$16 sps:$4 sm:$0xff]  }
 0x7e4   : > { %v10171_v62 = vpop.f32.mrf.mxu0  ;;  %8346 = vmatprep.subr.bf16.mxu1 %v10417_v41 }
 0x7e5   : > { %v13519_v23 = vadd.f32 %v10745_v55, %v7974_v28  ;;  %v7985_v25 = vadd.f32 %v10171_v62, %v9645_v11  ;;  %v10420_v28 = vld [vmem:[%s11143_s5 + $0xc] ss:$16 sps:$4 sm:$0xff]   ;;  %v10415_v62 = vld [vmem:[%s11143_s5] ss:$16 sps:$4 sm:$0xff]  }
 0x7e6   : > { %v7976_v16 = vpop.f32.mrf.mxu0  ;;  %8347 = vmatpush1.bf16.msra.mxu1 %v10415_v62 }
 0x7e7   : > { %v7977_v5 = vadd.f32 %v9645_v11, %v7976_v16  ;;  %8006 = vadd.xlane.f32.xlu0 %v13519_v23  ;;  %v13528_v54 = vadd.f32 %v10748_v47, %v7985_v25  ;;  %v10396_v11 = vld [vmem:[%s11143_s5 + $0x8c] ss:$16 sps:$4 sm:$0xff]  }
 0x7e8   : > { %8411 = vmatprep.subr.bf16.mxu0 %v10396_v11 }
 0x7e9   : > { %v13524_v48 = vadd.f32 %v10747_v44, %v7977_v5  ;;  %8412 = vmatpush1.bf16.msra.mxu0 %v10394_v10 }
 0x7ea   : > { %8413 = vmatprep.subr.bf16.mxu0 %v10402_v60 }
 0x7eb   : > { %8008 = vadd.xlane.f32.xlu1 %v13524_v48  ;;  %8010 = vadd.xlane.f32.xlu0 %v13522_v61 }
 0x7ed   : > { %8414 = vmatpush1.bf16.msra.mxu0 %v10400_v56 }
 0x7ee   : > { %8415 = vmatprep.subr.bf16.mxu0 %v10408_v20 }
 0x7ef   : > { %8012 = vadd.xlane.f32.xlu1 %v13528_v54 }
 0x7f1   : > { %8416 = vmatpush1.bf16.msra.mxu0 %v10406_v1 }
 0x7f2   : > { %8417 = vmatprep.subr.bf16.mxu0 %v10414_v37 }
 0x7f5   : > { %8418 = vmatpush1.bf16.msra.mxu0 %v10412_v35 }
 0x7f6   : > { %8419 = vmatprep.subr.bf16.mxu0 %v10420_v28 }
 0x7f9   : > { %8420 = vmatpush1.bf16.msra.mxu0 %v10418_v14 }
 0x814   : > { %v7999_v32 = vpop.xlane.xlu0 %7998 }
 0x815   : > { %v8014_v22 = vmul.f32 0.0078125, %v7999_v32 }
 0x817   : > { %v13536_v52 = vsub.f32 %v13507_v17, %v8014_v22 }
 0x818   : > { %v8001_v43 = vpop.xlane.xlu1 %8000  ;;  %v8003_v46 = vpop.xlane.xlu0 %8002 }
 0x819   : > { %v8015_v27 = vmul.f32 0.0078125, %v8001_v43  ;;  %v8016_v38 = vmul.f32 0.0078125, %v8003_v46  ;;  %v8030_v31 = vmul.f32 %v13536_v52, %v13536_v52 }
 0x81b   : > { %v13541_v19 = vsub.f32 %v13512_v36, %v8015_v27  ;;  %v13544_v26 = vsub.f32 %v13510_v59, %v8016_v38  ;;  %8038 = vadd.xlane.f32.xlu0 %v8030_v31 }
 0x81c   : > { %v8005_v18 = vpop.xlane.xlu0 %8004 }
 0x81d   : > { %v8017_v4 = vmul.f32 0.0078125, %v8005_v18  ;;  %v8031_v50 = vmul.f32 %v13541_v19, %v13541_v19  ;;  %v8032_v7 = vmul.f32 %v13544_v26, %v13544_v26 }
 0x81f   : > { %v13551_v12 = vsub.f32 %v13516_v33, %v8017_v4  ;;  %8040 = vadd.xlane.f32.xlu1 %v8031_v50  ;;  %8042 = vadd.xlane.f32.xlu0 %v8032_v7 }
 0x821   : > { %v8033_v15 = vmul.f32 %v13551_v12, %v13551_v12 }
 0x823   : > { %8044 = vadd.xlane.f32.xlu1 %v8033_v15 }
 0x870   : > { %v8007_v55 = vpop.xlane.xlu0 %8006 }
 0x871   : > { %v8018_v16 = vmul.f32 0.0078125, %v8007_v55 }
 0x873   : > { %v13584_v5 = vsub.f32 %v13519_v23, %v8018_v16 }
 0x874   : > { %v8009_v13 = vpop.xlane.xlu1 %8008  ;;  %v8011_v25 = vpop.xlane.xlu0 %8010 }
 0x875   : > { %v8019_v44 = vmul.f32 0.0078125, %v8009_v13  ;;  %v8020_v47 = vmul.f32 0.0078125, %v8011_v25  ;;  %v8034_v53 = vmul.f32 %v13584_v5, %v13584_v5 }
 0x877   : > { %v13589_v24 = vsub.f32 %v13524_v48, %v8019_v44  ;;  %v13592_v2 = vsub.f32 %v13522_v61, %v8020_v47  ;;  %8046 = vadd.xlane.f32.xlu0 %v8034_v53 }
 0x878   : > { %v8013_v8 = vpop.xlane.xlu1 %8012 }
 0x879   : > { %v8021_v32 = vmul.f32 0.0078125, %v8013_v8  ;;  %v8035_v22 = vmul.f32 %v13589_v24, %v13589_v24  ;;  %v8036_v43 = vmul.f32 %v13592_v2, %v13592_v2 }
 0x87b   : > { %v13599_v46 = vsub.f32 %v13528_v54, %v8021_v32  ;;  %8048 = vadd.xlane.f32.xlu1 %v8035_v22  ;;  %8050 = vadd.xlane.f32.xlu0 %v8036_v43 }
 0x87d   : > { %v8037_v27 = vmul.f32 %v13599_v46, %v13599_v46 }
 0x87f   : > { %8052 = vadd.xlane.f32.xlu1 %v8037_v27 }
 0x8a4   : > { %v8039_v38 = vpop.xlane.xlu0 %8038 }
 0x8a5   : > { %v8054_v31 = vmul.f32 0.0078125, %v8039_v38 }
 0x8a7   : > { %v8062_v18 = vadd.f32 1e-05, %v8054_v31 }
 0x8a8   : > { %v8041_v4 = vpop.xlane.xlu1 %8040  ;;  %v8043_v50 = vpop.xlane.xlu0 %8042 }
 0x8a9   : > { %10597 = vrsqrt.f32 %v8062_v18  ;;  %v8055_v7 = vmul.f32 0.0078125, %v8041_v4  ;;  %v8056_v15 = vmul.f32 0.0078125, %v8043_v50 }
 0x8ab   : > { %v8063_v49 = vadd.f32 1e-05, %v8055_v7  ;;  %v8064_v0 = vadd.f32 1e-05, %v8056_v15 }
 0x8ac   : > { %v8045_v63 = vpop.xlane.xlu1 %8044 }
 0x8ad   : > { %10599 = vrsqrt.f32 %v8063_v49  ;;  %v8057_v57 = vmul.f32 0.0078125, %v8045_v63  ;;  %v10423_v63 = vld [vmem:[%s11097_s24 + $0x38] sm:$0xff]  }
 0x8ae   : > { %10601 = vrsqrt.f32 %v8064_v0  ;;  %v10422_v0 = vld [vmem:[%s11097_s24 + $0xf8] sm:$0xff]  }
 0x8af   : > { %v8065_v9 = vadd.f32 1e-05, %v8057_v57  ;;  %v13631_v57 = vld [vmem:[%s11097_s24 + $0xb8] sm:$0xff]   ;;  %9892 = vmatprep.subr.bf16.mxu0 %v10422_v0 }
 0x8b1   : > { %10603 = vrsqrt.f32 %v8065_v9  ;;  %v10425_v9 = vld [vmem:[%s11097_s24 + $0x70] sm:$0xff]  }
 0x8b6   : > { %v10598_v34 = vpop.eup %10597 }
 0x8b7   : > { %v8078_v30 = vmul.f32 %v10598_v34, %v13536_v52  ;;  %v10427_v34 = vld [vmem:[%s11097_s24 + $0x30] sm:$0xff]  }
 0x8b9   : > { %v8092_v10 = vmul.f32 %v9654_v42, %v8078_v30  ;;  %v13640_v30 = vld [vmem:[%s11097_s24 + $0xb0] sm:$0xff]  }
 0x8ba   : > { %v10600_v29 = vpop.eup %10599 }
 0x8bb   : > { %v8079_v45 = vmul.f32 %v10600_v29, %v13541_v19  ;;  %v10602_v11 = vpop.eup %10601  ;;  %v8106_v56 = vadd.f32 %v9655_v6, %v8092_v10  ;;  %v13645_v29 = vld [vmem:[%s11097_s24 + $0xe8] sm:$0xff]  }
 0x8bc   : > { %v8080_v52 = vmul.f32 %v10602_v11, %v13544_v26  ;;  %v13650_v10 = vld [vmem:[%s11097_s24 + $0xa8] sm:$0xff]   ;;  %v10433_v11 = vld [vmem:[%s11097_s24 + $0x60] sm:$0xff]  }
 0x8bd   : > { %v8093_v60 = vmul.f32 %v9654_v42, %v8079_v45  ;;  %v10431_v45 = vld [vmem:[%s11097_s24 + $0x28] sm:$0xff]  }
 0x8be   : > { %v10604_v21 = vpop.eup %10603  ;;  %v8094_v19 = vmul.f32 %v9654_v42, %v8080_v52  ;;  %v10439_v52 = vld [vmem:[%s11097_s24 + $0x18] sm:$0xff]  }
 0x8bf   : > { %v8107_v40 = vadd.f32 %v9655_v6, %v8093_v60  ;;  %v8081_v20 = vmul.f32 %v10604_v21, %v13551_v12  ;;  %v10435_v60 = vld [vmem:[%s11097_s24 + $0x20] sm:$0xff]  }
 0x8c0   : > { %v8108_v37 = vadd.f32 %v9655_v6, %v8094_v19  ;;  %v13660_v21 = vld [vmem:[%s11097_s24 + $0xa0] sm:$0xff]   ;;  %v10443_v19 = vld [vmem:[%s11097_s24 + $0x10] sm:$0xff]  }
 0x8c1   : > { %v8114_v3 = vpack.c.bf16 %v8107_v40, %v8106_v56  ;;  %v8095_v1 = vmul.f32 %v9654_v42, %v8081_v20  ;;  %v10437_v56 = vld [vmem:[%s11097_s24 + $0x58] sm:$0xff]  }
 0x8c2   : > { %v13665_v40 = vld [vmem:[%s11097_s24 + $0xd8] sm:$0xff]  }
 0x8c3   : > { %8365 = vmatmul.mubr.bf16.vlgmr.msra.gmra.mxu1 %v8114_v3  ;;  %8438 = vmatmul.mubr.bf16.vlgmr.msra.gmra.mxu0 %v8114_v3  ;;  %v8109_v51 = vadd.f32 %v9655_v6, %v8095_v1  ;;  %v13670_v20 = vld [vmem:[%s11097_s24 + $0x98] sm:$0xff]   ;;  %v10441_v3 = vld [vmem:[%s11097_s24 + $0x50] sm:$0xff]  }
 0x8c4   : > { %8374 = vmatprep.mubr.bf16.mxu1 %v14154_v39  ;;  %8447 = vmatprep.mubr.bf16.mxu0 %v14154_v39  ;;  %v13675_v1 = vld [vmem:[%s11097_s24 + $0xd0] sm:$0xff]  }
 0x8c5   : > { %v8115_v58 = vpack.c.bf16 %v8109_v51, %v8108_v37  ;;  %9893 = vmatpush3.bf16.msra.mxu0 %v13631_v57  ;;  %v13680_v51 = vld [vmem:[%s11097_s24 + $0x90] sm:$0xff]   ;;  %v10445_v37 = vld [vmem:[%s11097_s24 + $0x48] sm:$0xff]  }
 0x8cb   : > { %8375 = vmatmul.mubr.bf16.gmra.mxu1 %v8115_v58  ;;  %8448 = vmatmul.mubr.bf16.gmra.mxu0 %v8115_v58  ;;  %v13685_v58 = vld [vmem:[%s11097_s24 + $0xc8] sm:$0xff]  }
 0x8cc   : > { %8384 = vmatprep.mubr.bf16.mxu1 %v14154_v39  ;;  %8457 = vmatprep.mubr.bf16.mxu0 %v14154_v39 }
 0x900   : > { %v8047_v26 = vpop.xlane.xlu0 %8046 }
 0x901   : > { %v8058_v12 = vmul.f32 0.0078125, %v8047_v26  ;;  %v10447_v26 = vld [vmem:[%s11097_s24 + $0x8] sm:$0xff]  }
 0x903   : > { %v8066_v35 = vadd.f32 1e-05, %v8058_v12  ;;  %v13690_v12 = vld [vmem:[%s11097_s24 + $0x88] sm:$0xff]  }
 0x904   : > { %v8049_v41 = vpop.xlane.xlu1 %8048  ;;  %v8051_v28 = vpop.xlane.xlu0 %8050 }
 0x905   : > { %10605 = vrsqrt.f32 %v8066_v35  ;;  %v8059_v62 = vmul.f32 0.0078125, %v8049_v41  ;;  %v8060_v14 = vmul.f32 0.0078125, %v8051_v28  ;;  %v10449_v35 = vld [vmem:[%s11097_s24 + $0x40] sm:$0xff]  }
 0x906   : > { %v13695_v41 = vld [vmem:[%s11097_s24 + $0xc0] sm:$0xff]  }
 0x907   : > { %v8067_v55 = vadd.f32 1e-05, %v8059_v62  ;;  %v8068_v16 = vadd.f32 1e-05, %v8060_v14  ;;  %v10451_v28 = vld [vmem:[%s11097_s24] sm:$0xff]  }
 0x908   : > { %v8053_v13 = vpop.xlane.xlu1 %8052  ;;  %v13700_v62 = vld [vmem:[%s11097_s24 + $0x80] sm:$0xff]  }
 0x909   : > { %10607 = vrsqrt.f32 %v8067_v55  ;;  %v8061_v25 = vmul.f32 0.0078125, %v8053_v13  ;;  %v8150_v14 = vld [vmem:[%s11149_s18] sm:$0xf] }
 0x90a   : > { %10609 = vrsqrt.f32 %v8068_v16  ;;  %v14160_v55 = vld [vmem:[#allocation15_spill] sm:$0xff] }
 0x90b   : > { %v8069_v44 = vadd.f32 1e-05, %v8061_v25  ;;  %v8166_v16 = vsub.s32 3, %v14160_v55  ;;  %v14161_v13 = vsub.s32 0, %v14160_v55 }
 0x90d   : > { %10611 = vrsqrt.f32 %v8069_v44  ;;  %v13708_v25 = vrot.slane %v8150_v14, %v14161_v13  ;;  %v14162_v44 = vsub.s32 2, %v14160_v55 }
 0x912   : > { %v10606_v47 = vpop.eup %10605 }
 0x913   : > { %v8082_v53 = vmul.f32 %v10606_v47, %v13584_v5  ;;  %v13712_v47 = vrot.slane %v8150_v14, %v14162_v44 }
 0x915   : > { %v8096_v22 = vmul.f32 %v9654_v42, %v8082_v53  ;;  %v14163_v53 = vsub.s32 1, %v14160_v55 }
 0x916   : > { %v10608_v8 = vpop.eup %10607 }
 0x917   : > { %v8083_v32 = vmul.f32 %v10608_v8, %v13589_v24  ;;  %v10610_v43 = vpop.eup %10609  ;;  %v8110_v31 = vadd.f32 %v9655_v6, %v8096_v22  ;;  %v13716_v8 = vrot.slane %v8150_v14, %v14163_v53 }
 0x918   : > { %v8084_v4 = vmul.f32 %v10610_v43, %v13592_v2 }
 0x919   : > { %v8097_v27 = vmul.f32 %v9654_v42, %v8083_v32  ;;  %v13718_v32 = vrot.slane %v8150_v14, %v8166_v16 }
 0x91a   : > { %v10612_v38 = vpop.eup %10611  ;;  %v8098_v5 = vmul.f32 %v9654_v42, %v8084_v4 }
 0x91b   : > { %v8111_v18 = vadd.f32 %v9655_v6, %v8097_v27  ;;  %v8085_v50 = vmul.f32 %v10612_v38, %v13599_v46  ;;  %v10421_v46 = vld [vmem:[%s11097_s24 + $0x78] sm:$0xff]  }
 0x91c   : > { %v8112_v49 = vadd.f32 %v9655_v6, %v8098_v5  ;;  %9852 = vmatprep.subr.bf16.mxu1 %v10421_v46 }
 0x91d   : > { %v8116_v7 = vpack.c.bf16 %v8111_v18, %v8110_v31  ;;  %v8099_v15 = vmul.f32 %v9654_v42, %v8085_v50  ;;  %9853 = vmatpush3.bf16.msra.mxu1 %v10423_v63  ;;  %v10429_v42 = vld [vmem:[%s11097_s24 + $0x68] sm:$0xff]  }
 0x91e   : > { %9854 = vmatprep.subr.bf16.mxu1 %v10425_v9 }
 0x91f   : > { %8385 = vmatmul.mubr.bf16.gmra.mxu1 %v8116_v7  ;;  %8458 = vmatmul.mubr.bf16.gmra.mxu0 %v8116_v7  ;;  %v8113_v24 = vadd.f32 %v9655_v6, %v8099_v15  ;;  %v13655_v6 = vld [vmem:[%s11097_s24 + $0xe0] sm:$0xff]  }
 0x920   : > { %8394 = vmatprep.mubr.bf16.mxu1 %v14154_v39  ;;  %8467 = vmatprep.mubr.bf16.mxu0 %v14154_v39  ;;  %v13635_v39 = vld [vmem:[%s11097_s24 + $0xf0] sm:$0xff]  }
 0x921   : > { %v8117_v2 = vpack.c.bf16 %v8113_v24, %v8112_v49  ;;  %9894 = vmatprep.subr.bf16.mxu0 %v13635_v39  ;;  %9855 = vmatpush3.bf16.msra.mxu1 %v10427_v34 }
 0x922   : > { %9895 = vmatpush3.bf16.msra.mxu0 %v13640_v30  ;;  %9856 = vmatprep.subr.bf16.mxu1 %v10429_v42 }
 0x923   : > { %9896 = vmatprep.subr.bf16.mxu0 %v13645_v29 }
 0x925   : > { %9857 = vmatpush3.bf16.msra.mxu1 %v10431_v45 }
 0x926   : > { %9897 = vmatpush3.bf16.msra.mxu0 %v13650_v10  ;;  %9858 = vmatprep.subr.bf16.mxu1 %v10433_v11 }
 0x927   : > { %8395 = vmatmul.mubr.bf16.gmra.mxu1 %v8117_v2  ;;  %8468 = vmatmul.mubr.bf16.gmra.mxu0 %v8117_v2 }
 0x928   : > { %9898 = vmatprep.subr.bf16.mxu0 %v13655_v6 }
 0x929   : > { %9859 = vmatpush3.bf16.msra.mxu1 %v10435_v60 }
 0x92a   : > { %9899 = vmatpush3.bf16.msra.mxu0 %v13660_v21  ;;  %9860 = vmatprep.subr.bf16.mxu1 %v10437_v56 }
 0x92b   : > { %9900 = vmatprep.subr.bf16.mxu0 %v13665_v40 }
 0x92d   : > { %9861 = vmatpush3.bf16.msra.mxu1 %v10439_v52 }
 0x92e   : > { %9901 = vmatpush3.bf16.msra.mxu0 %v13670_v20  ;;  %9862 = vmatprep.subr.bf16.mxu1 %v10441_v3 }
 0x92f   : > { %9902 = vmatprep.subr.bf16.mxu0 %v13675_v1 }
 0x931   : > { %9863 = vmatpush3.bf16.msra.mxu1 %v10443_v19 }
 0x932   : > { %9903 = vmatpush3.bf16.msra.mxu0 %v13680_v51  ;;  %9864 = vmatprep.subr.bf16.mxu1 %v10445_v37 }
 0x933   : > { %9904 = vmatprep.subr.bf16.mxu0 %v13685_v58 }
 0x935   : > { %9865 = vmatpush3.bf16.msra.mxu1 %v10447_v26 }
 0x936   : > { %9905 = vmatpush3.bf16.msra.mxu0 %v13690_v12  ;;  %9866 = vmatprep.subr.bf16.mxu1 %v10449_v35 }
 0x937   : > { %9906 = vmatprep.subr.bf16.mxu0 %v13695_v41 }
 0x939   : > { %9867 = vmatpush3.bf16.msra.mxu1 %v10451_v28 }
 0x93a   : > { %9907 = vmatpush3.bf16.msra.mxu0 %v13700_v62  ;;  %10172 = vmatprep.subr.bf16.mxu1 %v10422_v0 }
 0x983   : > { %v8366_v22 = vpop.f32.mrf.mxu1  ;;  %v8439_v43 = vpop.f32.mrf.mxu0 }
 0x984   : > { %v13721_v27 = vadd.f32 %v8366_v22, %v13708_v25  ;;  %v13724_v38 = vadd.f32 %v8439_v43, %v13712_v47 }
 0x985   : > { %v8368_v31 = vpop.f32.mrf.mxu1  ;;  %v8441_v18 = vpop.f32.mrf.mxu0 }
 0x986   : > { %v9688_v4 = vmul.f32 -1.702, %v13721_v27  ;;  %v9690_v50 = vmul.f32 -1.702, %v13724_v38  ;;  %v13729_v7 = vadd.f32 %v8368_v31, %v13716_v8  ;;  %v13732_v15 = vadd.f32 %v8441_v18, %v13718_v32 }
 0x987   : > { %v8370_v5 = vpop.f32.mrf.mxu1  ;;  %v8443_v24 = vpop.f32.mrf.mxu0 }
 0x988   : > { %v8542_v49 = vmul.f32 1.442695, %v9688_v4  ;;  %v8546_v2 = vmul.f32 1.442695, %v9690_v50  ;;  %v9689_v46 = vmul.f32 -1.702, %v13729_v7  ;;  %v13736_v0 = vadd.f32 %v8370_v5, %v13708_v25 }
 0x989   : > { %v9691_v63 = vmul.f32 -1.702, %v13732_v15  ;;  %v13740_v9 = vadd.f32 %v8443_v24, %v13712_v47  ;;  %v8372_v34 = vpop.f32.mrf.mxu1  ;;  %v8445_v42 = vpop.f32.mrf.mxu0 }
 0x98a   : > { %10613 = vpow2.f32 %v8542_v49  ;;  %v8544_v45 = vmul.f32 1.442695, %v9689_v46  ;;  %v9692_v11 = vmul.f32 -1.702, %v13736_v0  ;;  %v13744_v60 = vadd.f32 %v8372_v34, %v13716_v8 }
 0x98b   : > { %10615 = vpow2.f32 %v8546_v2  ;;  %v8548_v56 = vmul.f32 1.442695, %v9691_v63  ;;  %v9694_v52 = vmul.f32 -1.702, %v13740_v9  ;;  %v13748_v3 = vadd.f32 %v8445_v42, %v13718_v32  ;;  %v8376_v19 = vpop.f32.mrf.mxu1  ;;  %v8449_v37 = vpop.f32.mrf.mxu0 }
 0x98c   : > { %10617 = vpow2.f32 %v8544_v45  ;;  %v8550_v26 = vmul.f32 1.442695, %v9692_v11  ;;  %v9693_v35 = vmul.f32 -1.702, %v13744_v60  ;;  %v13752_v28 = vadd.f32 %v8376_v19, %v13708_v25 }
 0x98d   : > { %10619 = vpow2.f32 %v8548_v56  ;;  %v8554_v14 = vmul.f32 1.442695, %v9694_v52  ;;  %v9695_v55 = vmul.f32 -1.702, %v13748_v3  ;;  %v13756_v16 = vadd.f32 %v8449_v37, %v13712_v47  ;;  %v8378_v13 = vpop.f32.mrf.mxu1  ;;  %v8451_v44 = vpop.f32.mrf.mxu0 }
 0x98e   : > { %10621 = vpow2.f32 %v8550_v26  ;;  %v8552_v53 = vmul.f32 1.442695, %v9693_v35  ;;  %v9696_v22 = vmul.f32 -1.702, %v13752_v28  ;;  %v13760_v43 = vadd.f32 %v8378_v13, %v13716_v8 }
 0x98f   : > { %10623 = vpow2.f32 %v8554_v14  ;;  %v8556_v31 = vmul.f32 1.442695, %v9695_v55  ;;  %v9698_v18 = vmul.f32 -1.702, %v13756_v16  ;;  %v13764_v4 = vadd.f32 %v8451_v44, %v13718_v32  ;;  %v8380_v50 = vpop.f32.mrf.mxu1  ;;  %v8453_v5 = vpop.f32.mrf.mxu0 }
 0x990   : > { %10625 = vpow2.f32 %v8552_v53  ;;  %v8558_v24 = vmul.f32 1.442695, %v9696_v22  ;;  %v9697_v49 = vmul.f32 -1.702, %v13760_v43  ;;  %v13768_v2 = vadd.f32 %v8380_v50, %v13708_v25 }
 0x991   : > { %10627 = vpow2.f32 %v8556_v31  ;;  %v8562_v46 = vmul.f32 1.442695, %v9698_v18  ;;  %v9699_v63 = vmul.f32 -1.702, %v13764_v4  ;;  %v13772_v34 = vadd.f32 %v8453_v5, %v13712_v47  ;;  %v8382_v42 = vpop.f32.mrf.mxu1  ;;  %v8455_v45 = vpop.f32.mrf.mxu0 }
 0x992   : > { %10629 = vpow2.f32 %v8558_v24  ;;  %v8560_v11 = vmul.f32 1.442695, %v9697_v49  ;;  %v9700_v56 = vmul.f32 -1.702, %v13768_v2  ;;  %v13776_v52 = vadd.f32 %v8382_v42, %v13716_v8 }
 0x993   : > { %10631 = vpow2.f32 %v8562_v46  ;;  %v8564_v19 = vmul.f32 1.442695, %v9699_v63  ;;  %v9702_v37 = vmul.f32 -1.702, %v13772_v34  ;;  %v13780_v26 = vadd.f32 %v8455_v45, %v13718_v32 }
 0x994   : > { %10633 = vpow2.f32 %v8560_v11  ;;  %v8566_v35 = vmul.f32 1.442695, %v9700_v56  ;;  %v9701_v14 = vmul.f32 -1.702, %v13776_v52 }
 0x995   : > { %10635 = vpow2.f32 %v8564_v19  ;;  %v8570_v55 = vmul.f32 1.442695, %v9702_v37  ;;  %v9703_v13 = vmul.f32 -1.702, %v13780_v26 }
 0x996   : > { %10637 = vpow2.f32 %v8566_v35  ;;  %v8568_v44 = vmul.f32 1.442695, %v9701_v14 }
 0x997   : > { %v10614_v53 = vpop.eup %10613  ;;  %10639 = vpow2.f32 %v8570_v55  ;;  %v8572_v22 = vmul.f32 1.442695, %v9703_v13 }
 0x998   : > { %v10616_v31 = vpop.eup %10615  ;;  %v8606_v18 = vadd.f32 1.0, %v10614_v53  ;;  %10641 = vpow2.f32 %v8568_v44 }
 0x999   : > { %v10618_v50 = vpop.eup %10617  ;;  %v8608_v5 = vadd.f32 1.0, %v10616_v31  ;;  %10643 = vpow2.f32 %v8572_v22 }
 0x99a   : > { %v10620_v24 = vpop.eup %10619  ;;  %10645 = vrcp.f32 %v8606_v18  ;;  %v8607_v49 = vadd.f32 1.0, %v10618_v50 }
 0x99b   : > { %v10622_v46 = vpop.eup %10621  ;;  %10647 = vrcp.f32 %v8608_v5  ;;  %v8609_v63 = vadd.f32 1.0, %v10620_v24 }
 0x99c   : > { %v10624_v42 = vpop.eup %10623  ;;  %10649 = vrcp.f32 %v8607_v49  ;;  %v8610_v45 = vadd.f32 1.0, %v10622_v46 }
 0x99d   : > { %v10626_v11 = vpop.eup %10625  ;;  %10651 = vrcp.f32 %v8609_v63  ;;  %v8612_v56 = vadd.f32 1.0, %v10624_v42 }
 0x99e   : > { %v10628_v19 = vpop.eup %10627  ;;  %10653 = vrcp.f32 %v8610_v45  ;;  %v8611_v37 = vadd.f32 1.0, %v10626_v11 }
 0x99f   : > { %v10630_v35 = vpop.eup %10629  ;;  %10655 = vrcp.f32 %v8612_v56  ;;  %v8613_v14 = vadd.f32 1.0, %v10628_v19 }
 0x9a0   : > { %v10632_v55 = vpop.eup %10631  ;;  %10657 = vrcp.f32 %v8611_v37  ;;  %v8614_v13 = vadd.f32 1.0, %v10630_v35 }
 0x9a1   : > { %v10634_v44 = vpop.eup %10633  ;;  %10659 = vrcp.f32 %v8613_v14  ;;  %v8616_v53 = vadd.f32 1.0, %v10632_v55 }
 0x9a2   : > { %v10636_v22 = vpop.eup %10635  ;;  %10661 = vrcp.f32 %v8614_v13  ;;  %v8615_v31 = vadd.f32 1.0, %v10634_v44 }
 0x9a3   : > { %v10638_v18 = vpop.eup %10637  ;;  %10663 = vrcp.f32 %v8616_v53  ;;  %v8617_v50 = vadd.f32 1.0, %v10636_v22 }
 0x9a4   : > { %v10640_v5 = vpop.eup %10639  ;;  %10665 = vrcp.f32 %v8615_v31  ;;  %v8618_v24 = vadd.f32 1.0, %v10638_v18 }
 0x9a5   : > { %v10642_v49 = vpop.eup %10641  ;;  %10667 = vrcp.f32 %v8617_v50  ;;  %v8620_v46 = vadd.f32 1.0, %v10640_v5 }
 0x9a6   : > { %v10644_v63 = vpop.eup %10643  ;;  %10669 = vrcp.f32 %v8618_v24  ;;  %v8619_v42 = vadd.f32 1.0, %v10642_v49 }
 0x9a7   : > { %v10646_v45 = vpop.eup %10645  ;;  %10671 = vrcp.f32 %v8620_v46  ;;  %v8621_v11 = vadd.f32 1.0, %v10644_v63 }
 0x9a8   : > { %v10648_v56 = vpop.eup %10647  ;;  %10673 = vrcp.f32 %v8619_v42  ;;  %v8702_v50 = vmul.f32 %v10646_v45, %v13721_v27 }
 0x9a9   : > { %v10650_v19 = vpop.eup %10649  ;;  %10675 = vrcp.f32 %v8621_v11  ;;  %v8704_v46 = vmul.f32 %v10648_v56, %v13724_v38 }
 0x9aa   : > { %v10652_v37 = vpop.eup %10651  ;;  %v8703_v53 = vmul.f32 %v10650_v19, %v13729_v7 }
 0x9ab   : > { %v10654_v35 = vpop.eup %10653  ;;  %v8705_v5 = vmul.f32 %v10652_v37, %v13732_v15 }
 0x9ac   : > { %v10656_v14 = vpop.eup %10655  ;;  %v8706_v13 = vmul.f32 %v10654_v35, %v13736_v0 }
 0x9ad   : > { %v10658_v55 = vpop.eup %10657  ;;  %v8708_v22 = vmul.f32 %v10656_v14, %v13740_v9 }
 0x9ae   : > { %v10660_v44 = vpop.eup %10659  ;;  %v8707_v31 = vmul.f32 %v10658_v55, %v13744_v60  ;;  %v8734_v0 = vpack.c.bf16 %v8706_v13, %v8702_v50 }
 0x9af   : > { %v10662_v18 = vpop.eup %10661  ;;  %v8709_v24 = vmul.f32 %v10660_v44, %v13748_v3  ;;  %v8736_v7 = vpack.c.bf16 %v8708_v22, %v8704_v46 }
 0x9b0   : > { %v10664_v49 = vpop.eup %10663  ;;  %v8735_v63 = vpack.c.bf16 %v8707_v31, %v8703_v53  ;;  %v8710_v19 = vmul.f32 %v10662_v18, %v13752_v28 }
 0x9b1   : > { %v10666_v42 = vpop.eup %10665  ;;  %v8737_v11 = vpack.c.bf16 %v8709_v24, %v8705_v5 }
 0x9b2   : > { %v10668_v35 = vpop.eup %10667  ;;  %9045 = vmatprep.mubr.bf16.mxu1 %v8735_v63  ;;  %v8711_v3 = vmul.f32 %v10666_v42, %v13760_v43 }
 0x9b3   : > { %v10670_v9 = vpop.eup %10669  ;;  %9110 = vmatprep.mubr.bf16.mxu0 %v8737_v11  ;;  %9046 = vmatmul.mubr.bf16.vlgmr.msra.gmra.mxu1 %v8734_v0  ;;  %v8713_v37 = vmul.f32 %v10668_v35, %v13764_v4 }
 0x9b4   : > { %v10672_v60 = vpop.eup %10671  ;;  %9111 = vmatmul.mubr.bf16.vlgmr.msra.gmra.mxu0 %v8736_v7  ;;  %10180 = vmatpush3.bf16.msra.mxu1 %v13631_v57  ;;  %v8714_v15 = vmul.f32 %v10670_v9, %v13768_v2  ;;  %v8712_v57 = vmul.f32 %v10664_v49, %v13756_v16 }
 0x9b5   : > { %v10674_v27 = vpop.eup %10673  ;;  %10173 = vmatprep.subr.bf16.mxu1 %v13635_v39  ;;  %v8716_v45 = vmul.f32 %v10672_v60, %v13772_v34 }
 0x9b6   : > { %v10676_v38 = vpop.eup %10675  ;;  %v8715_v56 = vmul.f32 %v10674_v27, %v13776_v52  ;;  %v8738_v39 = vpack.c.bf16 %v8714_v15, %v8710_v19 }
 0x9b7   : > { %v8717_v14 = vmul.f32 %v10676_v38, %v13780_v26  ;;  %v8740_v43 = vpack.c.bf16 %v8716_v45, %v8712_v57 }
 0x9b8   : > { %v8739_v55 = vpack.c.bf16 %v8715_v56, %v8711_v3  ;;  %10181 = vmatpush3.bf16.msra.mxu1 %v13640_v30 }
 0x9b9   : > { %v8741_v2 = vpack.c.bf16 %v8717_v14, %v8713_v37  ;;  %10174 = vmatprep.subr.bf16.mxu1 %v13645_v29 }
 0x9ba   : > { %9053 = vmatprep.mubr.bf16.mxu1 %v8739_v55 }
 0x9bb   : > { %9118 = vmatprep.mubr.bf16.mxu0 %v8741_v2  ;;  %9054 = vmatmul.mubr.bf16.gmra.mxu1 %v8738_v39 }
 0x9bc   : > { %9119 = vmatmul.mubr.bf16.gmra.mxu0 %v8740_v43  ;;  %10182 = vmatpush3.bf16.msra.mxu1 %v13650_v10 }
 0x9bd   : > { %10175 = vmatprep.subr.bf16.mxu1 %v13655_v6 }
 0x9c0   : > { %10183 = vmatpush3.bf16.msra.mxu1 %v13660_v21 }
 0x9c1   : > { %10176 = vmatprep.subr.bf16.mxu1 %v13665_v40 }
 0x9c4   : > { %10184 = vmatpush3.bf16.msra.mxu1 %v13670_v20 }
 0x9c5   : > { %10177 = vmatprep.subr.bf16.mxu1 %v13675_v1 }
 0x9c8   : > { %10185 = vmatpush3.bf16.msra.mxu1 %v13680_v51 }
 0x9c9   : > { %10178 = vmatprep.subr.bf16.mxu1 %v13685_v58 }
 0x9cc   : > { %10186 = vmatpush3.bf16.msra.mxu1 %v13690_v12 }
 0x9cd   : > { %10179 = vmatprep.subr.bf16.mxu1 %v13695_v41 }
 0x9d0   : > { %10187 = vmatpush3.bf16.msra.mxu1 %v13700_v62 }
 0x9df   : > { %v8386_v30 = vpop.f32.mrf.mxu1  ;;  %v8459_v29 = vpop.f32.mrf.mxu0 }
 0x9e0   : > { %v13816_v10 = vadd.f32 %v8386_v30, %v13708_v25  ;;  %v13850_v11 = vadd.f32 %v8459_v29, %v13712_v47 }
 0x9e1   : > { %v8388_v6 = vpop.f32.mrf.mxu1  ;;  %v8461_v21 = vpop.f32.mrf.mxu0 }
 0x9e2   : > { %v9704_v40 = vmul.f32 -1.702, %v13816_v10  ;;  %v13820_v20 = vadd.f32 %v8388_v6, %v13716_v8  ;;  %v13823_v1 = vadd.f32 %v8461_v21, %v13718_v32  ;;  %v9706_v57 = vmul.f32 -1.702, %v13850_v11 }
 0x9e3   : > { %v8390_v51 = vpop.f32.mrf.mxu1  ;;  %v8463_v58 = vpop.f32.mrf.mxu0 }
 0x9e4   : > { %v8574_v12 = vmul.f32 1.442695, %v9704_v40  ;;  %v9705_v41 = vmul.f32 -1.702, %v13820_v20  ;;  %v13827_v62 = vadd.f32 %v8390_v51, %v13708_v25  ;;  %v9707_v28 = vmul.f32 -1.702, %v13823_v1 }
 0x9e5   : > { %v8392_v16 = vpop.f32.mrf.mxu1  ;;  %v8465_v4 = vpop.f32.mrf.mxu0  ;;  %v13842_v5 = vadd.f32 %v8463_v58, %v13712_v47  ;;  %v8578_v21 = vmul.f32 1.442695, %v9706_v57 }
 0x9e6   : > { %v8576_v34 = vmul.f32 1.442695, %v9705_v41  ;;  %v9708_v52 = vmul.f32 -1.702, %v13827_v62  ;;  %v13832_v26 = vadd.f32 %v8392_v16, %v13716_v8  ;;  %10677 = vpow2.f32 %v8574_v12 }
 0x9e7   : > { %v8580_v13 = vmul.f32 1.442695, %v9707_v28  ;;  %v13835_v44 = vadd.f32 %v8465_v4, %v13718_v32  ;;  %v8396_v53 = vpop.f32.mrf.mxu1  ;;  %v8469_v22 = vpop.f32.mrf.mxu0  ;;  %v9710_v3 = vmul.f32 -1.702, %v13842_v5 }
 0x9e8   : > { %10679 = vpow2.f32 %v8576_v34  ;;  %v8582_v31 = vmul.f32 1.442695, %v9708_v52  ;;  %v9709_v18 = vmul.f32 -1.702, %v13832_v26  ;;  %v13839_v50 = vadd.f32 %v8396_v53, %v13708_v25 }
 0x9e9   : > { %v9711_v24 = vmul.f32 -1.702, %v13835_v44  ;;  %v8398_v49 = vpop.f32.mrf.mxu1  ;;  %v8471_v46 = vpop.f32.mrf.mxu0  ;;  %v8586_v43 = vmul.f32 1.442695, %v9710_v3 }
 0x9ea   : > { %10681 = vpow2.f32 %v8582_v31  ;;  %v8584_v63 = vmul.f32 1.442695, %v9709_v18  ;;  %v9712_v42 = vmul.f32 -1.702, %v13839_v50  ;;  %v13847_v0 = vadd.f32 %v8398_v49, %v13716_v8 }
 0x9eb   : > { %10683 = vpow2.f32 %v8580_v13  ;;  %v8588_v35 = vmul.f32 1.442695, %v9711_v24  ;;  %v13853_v7 = vadd.f32 %v8471_v46, %v13718_v32  ;;  %v8400_v9 = vpop.f32.mrf.mxu1  ;;  %v8473_v60 = vpop.f32.mrf.mxu0 }
 0x9ec   : > { %10685 = vpow2.f32 %v8584_v63  ;;  %v8590_v27 = vmul.f32 1.442695, %v9712_v42  ;;  %v9713_v15 = vmul.f32 -1.702, %v13847_v0  ;;  %v13857_v38 = vadd.f32 %v8400_v9, %v13708_v25 }
 0x9ed   : > { %10687 = vpow2.f32 %v8588_v35  ;;  %v8402_v45 = vpop.f32.mrf.mxu1  ;;  %v8475_v56 = vpop.f32.mrf.mxu0  ;;  %v9715_v25 = vmul.f32 -1.702, %v13853_v7  ;;  %v13871_v30 = vadd.f32 %v8473_v60, %v13712_v47 }
 0x9ee   : > { %v8592_v19 = vmul.f32 1.442695, %v9713_v15  ;;  %v9716_v37 = vmul.f32 -1.702, %v13857_v38  ;;  %v13862_v14 = vadd.f32 %v8402_v45, %v13716_v8  ;;  %10689 = vpow2.f32 %v8590_v27 }
 0x9ef   : > { %v13866_v55 = vadd.f32 %v8475_v56, %v13718_v32  ;;  %v13875_v8 = vadd.f32 %v8469_v22, %v13712_v47  ;;  %v8596_v51 = vmul.f32 1.442695, %v9715_v25  ;;  %v9718_v12 = vmul.f32 -1.702, %v13871_v30 }
 0x9f0   : > { %10691 = vpow2.f32 %v8592_v19  ;;  %v8598_v2 = vmul.f32 1.442695, %v9716_v37  ;;  %v9717_v39 = vmul.f32 -1.702, %v13862_v14 }
 0x9f1   : > { %v9719_v29 = vmul.f32 -1.702, %v13866_v55  ;;  %v9714_v28 = vmul.f32 -1.702, %v13875_v8  ;;  %v8602_v13 = vmul.f32 1.442695, %v9718_v12 }
 0x9f2   : > { %10693 = vpow2.f32 %v8598_v2  ;;  %v8600_v6 = vmul.f32 1.442695, %v9717_v39 }
 0x9f3   : > { %v8604_v32 = vmul.f32 1.442695, %v9719_v29  ;;  %v10678_v40 = vpop.eup %10677  ;;  %v8594_v31 = vmul.f32 1.442695, %v9714_v28 }
 0x9f4   : > { %10695 = vpow2.f32 %v8600_v6  ;;  %v8622_v4 = vadd.f32 1.0, %v10678_v40 }
 0x9f5   : > { %v10680_v58 = vpop.eup %10679  ;;  %10697 = vpow2.f32 %v8586_v43 }
 0x9f6   : > { %v8623_v41 = vadd.f32 1.0, %v10680_v58  ;;  %10699 = vpow2.f32 %v8604_v32 }
 0x9f7   : > { %v10682_v16 = vpop.eup %10681  ;;  %10701 = vpow2.f32 %v8578_v21 }
 0x9f8   : > { %v10684_v47 = vpop.eup %10683  ;;  %v8626_v34 = vadd.f32 1.0, %v10682_v16  ;;  %10703 = vpow2.f32 %v8596_v51 }
 0x9f9   : > { %v10686_v52 = vpop.eup %10685  ;;  %10705 = vrcp.f32 %v8623_v41  ;;  %v8625_v18 = vadd.f32 1.0, %v10684_v47 }
 0x9fa   : > { %v10688_v53 = vpop.eup %10687  ;;  %10707 = vrcp.f32 %v8626_v34  ;;  %v8627_v22 = vadd.f32 1.0, %v10686_v52 }
 0x9fb   : > { %10709 = vrcp.f32 %v8622_v4  ;;  %v10690_v24 = vpop.eup %10689  ;;  %v8629_v49 = vadd.f32 1.0, %v10688_v53 }
 0x9fc   : > { %10711 = vrcp.f32 %v8627_v22  ;;  %v8630_v35 = vadd.f32 1.0, %v10690_v24 }
 0x9fd   : > { %v10692_v46 = vpop.eup %10691  ;;  %10713 = vpow2.f32 %v8602_v13 }
 0x9fe   : > { %10715 = vpow2.f32 %v8594_v31  ;;  %v8631_v63 = vadd.f32 1.0, %v10692_v46 }
 0x9ff   : > { %v10694_v42 = vpop.eup %10693  ;;  %10717 = vrcp.f32 %v8625_v18 }
 0xa00   : > { %10719 = vrcp.f32 %v8629_v49  ;;  %v8634_v9 = vadd.f32 1.0, %v10694_v42 }
 0xa01   : > { %v10696_v60 = vpop.eup %10695  ;;  %10721 = vrcp.f32 %v8631_v63 }
 0xa02   : > { %v10698_v27 = vpop.eup %10697  ;;  %10723 = vrcp.f32 %v8634_v9  ;;  %v8635_v15 = vadd.f32 1.0, %v10696_v60 }
 0xa03   : > { %v10700_v3 = vpop.eup %10699  ;;  %10725 = vrcp.f32 %v8630_v35  ;;  %v8628_v19 = vadd.f32 1.0, %v10698_v27 }
 0xa04   : > { %v10702_v45 = vpop.eup %10701  ;;  %10727 = vrcp.f32 %v8635_v15  ;;  %v8637_v57 = vadd.f32 1.0, %v10700_v3 }
 0xa05   : > { %v10704_v56 = vpop.eup %10703  ;;  %v8624_v2 = vadd.f32 1.0, %v10702_v45  ;;  %10729 = vrcp.f32 %v8628_v19 }
 0xa06   : > { %v10706_v37 = vpop.eup %10705  ;;  %v8633_v43 = vadd.f32 1.0, %v10704_v56  ;;  %10731 = vrcp.f32 %v8637_v57 }
 0xa07   : > { %v10708_v25 = vpop.eup %10707  ;;  %v8719_v32 = vmul.f32 %v10706_v37, %v13820_v20  ;;  %10733 = vrcp.f32 %v8624_v2 }
 0xa08   : > { %v10710_v39 = vpop.eup %10709  ;;  %v8722_v6 = vmul.f32 %v10708_v25, %v13827_v62  ;;  %10735 = vrcp.f32 %v8633_v43 }
 0xa09   : > { %v10712_v29 = vpop.eup %10711  ;;  %v8718_v58 = vmul.f32 %v10710_v39, %v13816_v10 }
 0xa0a   : > { %v10714_v21 = vpop.eup %10713  ;;  %v8723_v40 = vmul.f32 %v10712_v29, %v13832_v26 }
 0xa0b   : > { %v10716_v51 = vpop.eup %10715  ;;  %v8636_v16 = vadd.f32 1.0, %v10714_v21  ;;  %v8742_v4 = vpack.c.bf16 %v8722_v6, %v8718_v58 }
 0xa0c   : > { %v10718_v12 = vpop.eup %10717  ;;  %v8743_v41 = vpack.c.bf16 %v8723_v40, %v8719_v32  ;;  %v8632_v34 = vadd.f32 1.0, %v10716_v51 }
 0xa0d   : > { %v10720_v28 = vpop.eup %10719  ;;  %10737 = vrcp.f32 %v8636_v16  ;;  %v8721_v31 = vmul.f32 %v10718_v12, %v13823_v1 }
 0xa0e   : > { %v10722_v47 = vpop.eup %10721  ;;  %9061 = vmatprep.mubr.bf16.mxu1 %v8743_v41  ;;  %v8725_v13 = vmul.f32 %v10720_v28, %v13835_v44  ;;  %10739 = vrcp.f32 %v8632_v34 }
 0xa0f   : > { %v10724_v62 = vpop.eup %10723  ;;  %9062 = vmatmul.mubr.bf16.gmra.mxu1 %v8742_v4  ;;  %v8727_v10 = vmul.f32 %v10722_v47, %v13847_v0 }
 0xa10   : > { %v10726_v52 = vpop.eup %10725  ;;  %v8730_v26 = vmul.f32 %v10724_v62, %v13857_v38  ;;  %v8745_v46 = vpack.c.bf16 %v8725_v13, %v8721_v31 }
 0xa11   : > { %v10728_v20 = vpop.eup %10727  ;;  %v8726_v22 = vmul.f32 %v10726_v52, %v13839_v50 }
 0xa12   : > { %v8731_v53 = vmul.f32 %v10728_v20, %v13862_v14  ;;  %v10730_v49 = vpop.eup %10729 }
 0xa13   : > { %v8746_v24 = vpack.c.bf16 %v8730_v26, %v8726_v22  ;;  %v10732_v63 = vpop.eup %10731  ;;  %v8724_v44 = vmul.f32 %v10730_v49, %v13842_v5 }
 0xa14   : > { %v8747_v18 = vpack.c.bf16 %v8731_v53, %v8727_v10  ;;  %v10734_v38 = vpop.eup %10733  ;;  %v8733_v0 = vmul.f32 %v10732_v63, %v13866_v55 }
 0xa15   : > { %v10736_v42 = vpop.eup %10735  ;;  %v8720_v50 = vmul.f32 %v10734_v38, %v13850_v11  ;;  %v13900_v11 = vld [vmem:[%s740_s28] ss:$0 sm:$0xff] }
 0xa16   : > { %9069 = vmatprep.mubr.bf16.mxu1 %v8747_v18  ;;  %v8729_v14 = vmul.f32 %v10736_v42, %v13853_v7 }
 0xa17   : > { %9070 = vmatmul.mubr.bf16.gmra.mxu1 %v8746_v24  ;;  %v8744_v1 = vpack.c.bf16 %v8724_v44, %v8720_v50 }
 0xa18   : > { %9126 = vmatprep.mubr.bf16.mxu1 %v8745_v46  ;;  %v8749_v9 = vpack.c.bf16 %v8733_v0, %v8729_v14 }
 0xa1a   : > { %v10738_v35 = vpop.eup %10737 }
 0xa1b   : > { %v10740_v60 = vpop.eup %10739  ;;  %v8732_v27 = vmul.f32 %v10738_v35, %v13871_v30 }
 0xa1c   : > { %v8728_v15 = vmul.f32 %v10740_v60, %v13875_v8 }
 0xa1e   : > { %v8748_v3 = vpack.c.bf16 %v8732_v27, %v8728_v15 }
 0xa1f   : > { %9127 = vmatmul.mubr.bf16.vlgmr.msra.gmra.mxu1 %v8744_v1 }
 0xa20   : > { %9134 = vmatprep.mubr.bf16.mxu1 %v8749_v9 }
 0xa27   : > { %9135 = vmatmul.mubr.bf16.gmra.mxu1 %v8748_v3 }
 0xa73   : > { %v9868_v5 = vpop.f32.mrf.mxu1 }
 0xa74   : > { %v9908_v45 = vpop.f32.mrf.mxu0 }
 0xa75   : > { %v9869_v7 = vpop.f32.mrf.mxu1 }
 0xa76   : > { %v9870_v55 = vadd.f32 %v9869_v7, %v9868_v5  ;;  %v9909_v56 = vpop.f32.mrf.mxu0 }
 0xa77   : > { %v9871_v19 = vpop.f32.mrf.mxu1  ;;  %v9910_v57 = vadd.f32 %v9909_v56, %v9908_v45 }
 0xa78   : > { %v9048_v37 = vadd.f32 %v9870_v55, %v13900_v11  ;;  %v9911_v30 = vpop.f32.mrf.mxu0 }
 0xa79   : > { %v9872_v25 = vpop.f32.mrf.mxu1 }
 0xa7a   : > { %v9113_v8 = vadd.f32 %v9910_v57, %v9048_v37  ;;  %v9873_v2 = vadd.f32 %v9872_v25, %v9871_v19  ;;  %v9912_v39 = vpop.f32.mrf.mxu0 }
 0xa7b   : > { %v9874_v43 = vpop.f32.mrf.mxu1  ;;  %v9913_v21 = vadd.f32 %v9912_v39, %v9911_v30 }
 0xa7c   : > { %v13904_v29 = vadd.f32 %v9113_v8, %v13507_v17  ;;  %v9051_v6 = vadd.f32 %v9873_v2, %v13900_v11  ;;  %v9914_v32 = vpop.f32.mrf.mxu0 }
 0xa7d   : > { %v9875_v40 = vpop.f32.mrf.mxu1 }
 0xa7e   : > { %v9116_v51 = vadd.f32 %v9913_v21, %v9051_v6  ;;  %v9876_v58 = vadd.f32 %v9875_v40, %v9874_v43  ;;  %v9915_v12 = vpop.f32.mrf.mxu0 }
 0xa7f   : > { %v9877_v41 = vpop.f32.mrf.mxu1  ;;  %v9916_v4 = vadd.f32 %v9915_v12, %v9914_v32 }
 0xa80   : > { %v13908_v28 = vadd.f32 %v9116_v51, %v13512_v36  ;;  %v9056_v16 = vadd.f32 %v9876_v58, %v13900_v11  ;;  %v9917_v47 = vpop.f32.mrf.mxu0 }
 0xa81   : > { %v9878_v62 = vpop.f32.mrf.mxu1 }
 0xa82   : > { %v9121_v34 = vadd.f32 %v9916_v4, %v9056_v16  ;;  %v9879_v17 = vadd.f32 %v9878_v62, %v9877_v41  ;;  %v9918_v52 = vpop.f32.mrf.mxu0 }
 0xa83   : > { %v9919_v13 = vadd.f32 %v9918_v52, %v9917_v47 }
 0xa84   : > { %v13912_v20 = vadd.f32 %v9121_v34, %v13510_v59  ;;  %v9059_v26 = vadd.f32 %v9879_v17, %v13900_v11 }
 0xa86   : > { %v9124_v10 = vadd.f32 %v9919_v13, %v9059_v26 }
 0xa88   : > { %v13916_v53 = vadd.f32 %v9124_v10, %v13516_v33 }
 0xacf   : > { %v9880_v36 = vpop.f32.mrf.mxu1 }
 0xad1   : > { %v9881_v22 = vpop.f32.mrf.mxu1 }
 0xad2   : > { %v9882_v38 = vadd.f32 %v9881_v22, %v9880_v36 }
 0xad3   : > { %v9883_v31 = vpop.f32.mrf.mxu1 }
 0xad4   : > { %v9064_v59 = vadd.f32 %v9882_v38, %v13900_v11 }
 0xad5   : > { %v9884_v18 = vpop.f32.mrf.mxu1 }
 0xad6   : > { %v9885_v0 = vadd.f32 %v9884_v18, %v9883_v31 }
 0xad7   : > { %v9886_v24 = vpop.f32.mrf.mxu1 }
 0xad8   : > { %v9067_v33 = vadd.f32 %v9885_v0, %v13900_v11 }
 0xad9   : > { %v9887_v49 = vpop.f32.mrf.mxu1 }
 0xada   : > { %v9888_v9 = vadd.f32 %v9887_v49, %v9886_v24 }
 0xadb   : > { %v9889_v46 = vpop.f32.mrf.mxu1 }
 0xadc   : > { %v9072_v45 = vadd.f32 %v9888_v9, %v13900_v11 }
 0xadd   : > { %v9890_v63 = vpop.f32.mrf.mxu1 }
 0xade   : > { %v9891_v7 = vadd.f32 %v9890_v63, %v9889_v46 }
 0xadf   : > { %v9920_v42 = vpop.f32.mrf.mxu1 }
 0xae0   : > { %v9075_v30 = vadd.f32 %v9891_v7, %v13900_v11 }
 0xae1   : > { %v9921_v44 = vpop.f32.mrf.mxu1 }
 0xae2   : > { %v9922_v50 = vadd.f32 %v9921_v44, %v9920_v42 }
 0xae3   : > { %v9923_v14 = vpop.f32.mrf.mxu1 }
 0xae4   : > { %v9129_v1 = vadd.f32 %v9922_v50, %v9064_v59 }
 0xae5   : > { %v9924_v35 = vpop.f32.mrf.mxu1 }
 0xae6   : > { %v9147_v60 = vadd.f32 %v9129_v1, %v13519_v23  ;;  %v9925_v27 = vadd.f32 %v9924_v35, %v9923_v14 }
 0xae7   : > { %v9926_v15 = vpop.f32.mrf.mxu1 }
 0xae8   : > { %v9132_v3 = vadd.f32 %v9925_v27, %v9067_v33 }
 0xae9   : > { %v9927_v5 = vpop.f32.mrf.mxu1 }
 0xaea   : > { %v9148_v55 = vadd.f32 %v9132_v3, %v13524_v48  ;;  %v9928_v56 = vadd.f32 %v9927_v5, %v9926_v15 }
 0xaeb   : > { %v9929_v19 = vpop.f32.mrf.mxu1 }
 0xaec   : > { %v9137_v37 = vadd.f32 %v9928_v56, %v9072_v45 }
 0xaed   : > { %v9930_v57 = vpop.f32.mrf.mxu1 }
 0xaee   : > { %v9149_v25 = vadd.f32 %v9137_v37, %v13522_v61  ;;  %v9931_v8 = vadd.f32 %v9930_v57, %v9929_v19  ;;  %9154 = sbr.rel (%p9753_p10) target bundleno = 2807 (0xaf7), region = 96 }
 0xaf0   : > { %v9140_v2 = vadd.f32 %v9931_v8, %v9075_v30 }
 0xaf2   : > { %v9150_v23 = vadd.f32 %v9140_v2, %v13528_v54 }
 0xaf3   : > { %9155 = vst [vmem:[#allocation7] sm:$0xff] %v13904_v29  ;;  %9156 = vst [vmem:[#allocation7 + $0x8] sm:$0xff] %v13908_v28 }
 0xaf4   : > { %9157 = vst [vmem:[#allocation7 + $0x10] sm:$0xff] %v13912_v20  ;;  %9158 = vst [vmem:[#allocation7 + $0x18] sm:$0xff] %v13916_v53 }
 0xaf5   : > { %9159 = vst [vmem:[#allocation7 + $0x20] sm:$0xff] %v9147_v60  ;;  %9160 = vst [vmem:[#allocation7 + $0x28] sm:$0xff] %v9148_v55 }
 0xaf6   : > { %9161 = vst [vmem:[#allocation7 + $0x30] sm:$0xff] %v9149_v25  ;;  %9162 = vst [vmem:[#allocation7 + $0x38] sm:$0xff] %v9150_v23 }
 0xaf7 PF: > { %p9754_p3 = scmp.ne.s32.totalorder %s10895_s21, 1 }
 0xaf8   : > { %s14165_s28 = sld [smem:[#allocation37_spill]] (!%p9754_p3) }
 0xaf9   : > { %9166 = sbr.rel (%p9754_p3) target bundleno = 3137 (0xc41), region = 100  ;;  %s14166_s17 = sld [smem:[#allocation38_spill]] (!%p9754_p3) }
 0xafe   : > { %9169 = vadd.xlane.f32.xlu0 %v13904_v29  ;;  %9173 = vadd.xlane.f32.xlu1 %v13912_v20  ;;  %v9755_v19 = vld [vmem:[%s14165_s28] ss:$0 sm:$0xff] }
 0xaff   : > { %v9756_v30 = vld [vmem:[%s14166_s17] ss:$0 sm:$0xff] }
 0xb02   : > { %9171 = vadd.xlane.f32.xlu0 %v13908_v28  ;;  %9175 = vadd.xlane.f32.xlu1 %v13916_v53 }
 0xb06   : > { %9177 = vadd.xlane.f32.xlu0 %v9147_v60  ;;  %9179 = vadd.xlane.f32.xlu1 %v9148_v55 }
 0xb0a   : > { %9181 = vadd.xlane.f32.xlu0 %v9149_v25  ;;  %9183 = vadd.xlane.f32.xlu1 %v9150_v23 }
 0xb87   : > { %v9170_v61 = vpop.xlane.xlu0 %9169  ;;  %v9174_v48 = vpop.xlane.xlu1 %9173 }
 0xb88   : > { %v9185_v54 = vmul.f32 0.0078125, %v9170_v61  ;;  %v9187_v11 = vmul.f32 0.0078125, %v9174_v48 }
 0xb8a   : > { %v13937_v39 = vsub.f32 %v13904_v29, %v9185_v54  ;;  %v13940_v43 = vsub.f32 %v13912_v20, %v9187_v11 }
 0xb8b   : > { %v9172_v6 = vpop.xlane.xlu0 %9171  ;;  %v9176_v21 = vpop.xlane.xlu1 %9175 }
 0xb8c   : > { %v9186_v32 = vmul.f32 0.0078125, %v9172_v6  ;;  %v9201_v40 = vmul.f32 %v13937_v39, %v13937_v39  ;;  %v9188_v51 = vmul.f32 0.0078125, %v9176_v21  ;;  %v9203_v29 = vmul.f32 %v13940_v43, %v13940_v43 }
 0xb8e   : > { %v13945_v58 = vsub.f32 %v13908_v28, %v9186_v32  ;;  %9209 = vadd.xlane.f32.xlu0 %v9201_v40  ;;  %v13948_v12 = vsub.f32 %v13916_v53, %v9188_v51 }
 0xb8f   : > { %v9178_v41 = vpop.xlane.xlu0 %9177  ;;  %v9180_v16 = vpop.xlane.xlu1 %9179 }
 0xb90   : > { %v9189_v4 = vmul.f32 0.0078125, %v9178_v41  ;;  %v9202_v47 = vmul.f32 %v13945_v58, %v13945_v58  ;;  %v9190_v62 = vmul.f32 0.0078125, %v9180_v16  ;;  %v9204_v17 = vmul.f32 %v13948_v12, %v13948_v12 }
 0xb92   : > { %v13954_v34 = vsub.f32 %v9147_v60, %v9189_v4  ;;  %9213 = vadd.xlane.f32.xlu0 %v9203_v29  ;;  %9211 = vadd.xlane.f32.xlu1 %v9202_v47  ;;  %v13956_v28 = vsub.f32 %v9148_v55, %v9190_v62 }
 0xb93   : > { %v9182_v52 = vpop.xlane.xlu0 %9181  ;;  %v9184_v20 = vpop.xlane.xlu1 %9183 }
 0xb94   : > { %v9191_v26 = vmul.f32 0.0078125, %v9182_v52  ;;  %v9205_v13 = vmul.f32 %v13954_v34, %v13954_v34  ;;  %v9192_v10 = vmul.f32 0.0078125, %v9184_v20  ;;  %v9206_v22 = vmul.f32 %v13956_v28, %v13956_v28 }
 0xb96   : > { %v13962_v53 = vsub.f32 %v9149_v25, %v9191_v26  ;;  %9215 = vadd.xlane.f32.xlu1 %v9204_v17  ;;  %9217 = vadd.xlane.f32.xlu0 %v9205_v13  ;;  %v13964_v36 = vsub.f32 %v9150_v23, %v9192_v10 }
 0xb98   : > { %v9207_v31 = vmul.f32 %v13962_v53, %v13962_v53  ;;  %v9208_v18 = vmul.f32 %v13964_v36, %v13964_v36 }
 0xb9a   : > { %9219 = vadd.xlane.f32.xlu1 %v9206_v22  ;;  %9221 = vadd.xlane.f32.xlu0 %v9207_v31 }
 0xb9e   : > { %9223 = vadd.xlane.f32.xlu1 %v9208_v18 }
 0xc17   : > { %v9210_v24 = vpop.xlane.xlu0 %9209 }
 0xc18   : > { %v9225_v49 = vmul.f32 0.0078125, %v9210_v24 }
 0xc1a   : > { %v9233_v46 = vadd.f32 1e-05, %v9225_v49 }
 0xc1b   : > { %v9212_v63 = vpop.xlane.xlu1 %9211  ;;  %v9214_v38 = vpop.xlane.xlu0 %9213 }
 0xc1c   : > { %10749 = vrsqrt.f32 %v9233_v46  ;;  %v9226_v42 = vmul.f32 0.0078125, %v9212_v63  ;;  %v9227_v44 = vmul.f32 0.0078125, %v9214_v38 }
 0xc1e   : > { %v9234_v59 = vadd.f32 1e-05, %v9226_v42  ;;  %v9235_v0 = vadd.f32 1e-05, %v9227_v44 }
 0xc1f   : > { %v9216_v50 = vpop.xlane.xlu1 %9215  ;;  %v9218_v14 = vpop.xlane.xlu0 %9217 }
 0xc20   : > { %10751 = vrsqrt.f32 %v9234_v59  ;;  %v9228_v1 = vmul.f32 0.0078125, %v9216_v50  ;;  %v9229_v35 = vmul.f32 0.0078125, %v9218_v14 }
 0xc21   : > { %10753 = vrsqrt.f32 %v9235_v0 }
 0xc22   : > { %v9236_v33 = vadd.f32 1e-05, %v9228_v1  ;;  %v9237_v9 = vadd.f32 1e-05, %v9229_v35 }
 0xc23   : > { %v9220_v60 = vpop.xlane.xlu1 %9219  ;;  %v9222_v27 = vpop.xlane.xlu0 %9221 }
 0xc24   : > { %10755 = vrsqrt.f32 %v9236_v33  ;;  %v9230_v15 = vmul.f32 0.0078125, %v9220_v60  ;;  %v9231_v3 = vmul.f32 0.0078125, %v9222_v27 }
 0xc25   : > { %10757 = vrsqrt.f32 %v9237_v9 }
 0xc26   : > { %v9238_v5 = vadd.f32 1e-05, %v9230_v15  ;;  %v9239_v45 = vadd.f32 1e-05, %v9231_v3 }
 0xc27   : > { %v9224_v7 = vpop.xlane.xlu1 %9223 }
 0xc28   : > { %10759 = vrsqrt.f32 %v9238_v5  ;;  %v9232_v55 = vmul.f32 0.0078125, %v9224_v7 }
 0xc29   : > { %v10750_v56 = vpop.eup %10749  ;;  %10761 = vrsqrt.f32 %v9239_v45 }
 0xc2a   : > { %v9249_v37 = vmul.f32 %v10750_v56, %v13937_v39  ;;  %v9240_v57 = vadd.f32 1e-05, %v9232_v55 }
 0xc2c   : > { %v9263_v25 = vmul.f32 %v9755_v19, %v9249_v37  ;;  %10763 = vrsqrt.f32 %v9240_v57 }
 0xc2d   : > { %v10752_v8 = vpop.eup %10751 }
 0xc2e   : > { %v10754_v2 = vpop.eup %10753  ;;  %v9277_v23 = vadd.f32 %v9756_v30, %v9263_v25  ;;  %v9250_v61 = vmul.f32 %v10752_v8, %v13945_v58 }
 0xc2f   : > { %v9251_v48 = vmul.f32 %v10754_v2, %v13940_v43 }
 0xc30   : > { %9285 = vst [vmem:[#allocation7] sm:$0xff] %v9277_v23  ;;  %v9264_v54 = vmul.f32 %v9755_v19, %v9250_v61 }
 0xc31   : > { %v10756_v11 = vpop.eup %10755  ;;  %v9265_v6 = vmul.f32 %v9755_v19, %v9251_v48 }
 0xc32   : > { %v10758_v21 = vpop.eup %10757  ;;  %v9278_v39 = vadd.f32 %v9756_v30, %v9264_v54  ;;  %v9252_v32 = vmul.f32 %v10756_v11, %v13948_v12 }
 0xc33   : > { %v9279_v40 = vadd.f32 %v9756_v30, %v9265_v6  ;;  %v9253_v51 = vmul.f32 %v10758_v21, %v13954_v34 }
 0xc34   : > { %9286 = vst [vmem:[#allocation7 + $0x8] sm:$0xff] %v9278_v39  ;;  %v9266_v29 = vmul.f32 %v9755_v19, %v9252_v32 }
 0xc35   : > { %v10760_v41 = vpop.eup %10759  ;;  %9287 = vst [vmem:[#allocation7 + $0x10] sm:$0xff] %v9279_v40  ;;  %v9267_v16 = vmul.f32 %v9755_v19, %v9253_v51 }
 0xc36   : > { %v10762_v4 = vpop.eup %10761  ;;  %v9280_v58 = vadd.f32 %v9756_v30, %v9266_v29  ;;  %v9254_v43 = vmul.f32 %v10760_v41, %v13956_v28 }
 0xc37   : > { %v9281_v47 = vadd.f32 %v9756_v30, %v9267_v16  ;;  %v9255_v62 = vmul.f32 %v10762_v4, %v13962_v53 }
 0xc38   : > { %9288 = vst [vmem:[#allocation7 + $0x18] sm:$0xff] %v9280_v58  ;;  %v9268_v17 = vmul.f32 %v9755_v19, %v9254_v43 }
 0xc39   : > { %v10764_v52 = vpop.eup %10763  ;;  %9289 = vst [vmem:[#allocation7 + $0x20] sm:$0xff] %v9281_v47  ;;  %v9269_v12 = vmul.f32 %v9755_v19, %v9255_v62 }
 0xc3a   : > { %v9282_v20 = vadd.f32 %v9756_v30, %v9268_v17  ;;  %v9256_v34 = vmul.f32 %v10764_v52, %v13964_v36 }
 0xc3b   : > { %v9283_v26 = vadd.f32 %v9756_v30, %v9269_v12 }
 0xc3c   : > { %9290 = vst [vmem:[#allocation7 + $0x28] sm:$0xff] %v9282_v20  ;;  %v9270_v13 = vmul.f32 %v9755_v19, %v9256_v34 }
 0xc3d   : > { %9291 = vst [vmem:[#allocation7 + $0x30] sm:$0xff] %v9283_v26 }
 0xc3e   : > { %v9284_v10 = vadd.f32 %v9756_v30, %v9270_v13 }
 0xc40   : > { %9292 = vst [vmem:[#allocation7 + $0x38] sm:$0xff] %v9284_v10 }
 0xc41 PF: > { %s14167_s13 = sadd.s32 4294967295, %s10903_s23   ;;  %s10919_s12 = smov [#allocation7]  }
 0xc42   : > { %p13988_p4 = scmp.eq.s32.totalorder %s14167_s13, 1  ;;  %s9303_s10 = sshll.u32 %s10919_s12, 4  ;;  %s9304_s10 = int_to_ptr.vmem [resolvable:$true] %s9303_s10 }
 0xc43   : > { %s10821_s30 = scalar_lea.vmem %s9304_s10, 1024  ;;  %p10828_p11 = scmp.lt.s32.totalorder %s9304_s10, %s9304_s10 }
 0xc44   : > { %p10822_p5 = scmp.ne.s32.totalorder %s9304_s10, %s10821_s30  ;;  %p10829_p12 = scmp.lt.s32.totalorder %s10821_s30, %s10821_s30 }
 0xc46   : > { %p10823_p6 = pnand %p10822_p5, %p13988_p4  ;;  %p10830_p13 = por %p10829_p12, %p10828_p11 }
 0xc48   : > { %p10824_p8 = pneg %p10823_p6 }
 0xc4a   : > { %p10831_p0 = pnand %p10830_p13, %p10824_p8 }
 0xc4c   : > { %10834 = shalt.err (!%p10831_p0)
}
 0xc4d   : > { %s10920_s20 = smov 128   ;;  %s10921_s27 = smov 8  }
 0xc4e   : > { %s14169_s29 = sld [smem:[#allocation39_spill]] }
 0xc54   : > { %10197 = dma.vmem_to_hbm [thread:$0]  (%p13988_p4), %s9304_s10, 1024, %s14169_s29, [#allocation4], %s10920_s20, %s10920_s20, %s10921_s27  }
 0xc55   : > { %10878 = dma.done.wait (%p13988_p4), [#allocation4], 1024  }
 0xc56   : > { %10880 = vsyncadd (%p13988_p4), [#allocation4], 4294966272 }
 0xc57 PF: > { %s32_s23 = sadd.s32 1, %s10903_s23   ;;  %s14170_s9 = sld [smem:[#allocation11_spill]] }
 0xc58   : > { %p29_p1 = scmp.ge.s32.totalorder %s32_s23, 4   ;;  %s14171_s20 = sld [smem:[#allocation14_spill]] }
 0xc59   : > { %s14172_s21 = sld [smem:[#allocation12_spill]]  ;;  %s14174_s18 = smov %s10887_s19 }
 0xc5a   : > { %s14173_s22 = sld [smem:[#allocation13_spill]]  ;;  %31 = sbr.rel (!%p29_p1) target bundleno = 19 (0x13), region = 176 }
 0xc5d   : > { %s14175_s19 = smov %s14170_s9 }
 0xc5f   :  { %9319 = vsyncpa [#allocation3], 1 }
 0xc60   :  { %9321 = vsyncpa [#allocation3 + $0x1], 1 }
 0xc61   :  { %9322 = vsyncpa [#allocation6], 1 }
 0xc62   :  { %9324 = vsyncpa [#allocation6 + $0x1], 1 }
 0xc63   :  { %9325 = vsyncpa [#allocation4], 1 }
 0xc64   :  { %9327 = vsyncpa [#allocation4 + $0x1], 1 }

</bundles_post_ra>
